<compile_context>
chip_gen: v5e
topology: v5e:2x2
jax: 0.10.0
libtpu: 0.0.40
codegen_flags: <defaults>
</compile_context>

<pallas_src>
import functools

import jax
import jax.numpy as jnp
import numpy as np
from jax.experimental import pallas as pl
from jax.experimental.pallas import tpu as pltpu

EPS = 1e-5


def _mod_const(x, m):
    """x % m for a compile-time positive int m (bitwise when m is a power of 2)."""
    if m & (m - 1) == 0:
        return jnp.bitwise_and(x, m - 1)
    return jax.lax.rem(x, jnp.int32(m))


def _build_consts(N, C, S, P):
    """Iota-built structural 0/1 matrices shared by all three static_modules.

    Lane index convention: l = (p*N + n)*S + s  (node major, time minor).
    """
    L = P * N * S          # lanes per activation row
    G = P * N              # head-max groups (node, batch)
    NS = N * S
    # node membership, both orientations (avoids in-kernel transposes)
    il = jax.lax.broadcasted_iota(jnp.int32, (L, P), 0)
    ip = jax.lax.broadcasted_iota(jnp.int32, (L, P), 1)
    e_lp = jnp.where((il >= ip * NS) & (il < ip * NS + NS), 1.0, 0.0)      # (L, P)
    ip2 = jax.lax.broadcasted_iota(jnp.int32, (P, L), 0)
    il2 = jax.lax.broadcasted_iota(jnp.int32, (P, L), 1)
    e_pl = jnp.where((il2 >= ip2 * NS) & (il2 < ip2 * NS + NS), 1.0, 0.0)  # (P, L)
    # time-index-within-node boundary masks (for the k=3, pad=1 temporal conv)
    lane = jax.lax.broadcasted_iota(jnp.int32, (1, L), 1)
    s_of_lane = _mod_const(lane, S)
    first_s = s_of_lane == 0                                               # (1, L)
    last_s = s_of_lane == S - 1                                            # (1, L)
    # iotas for the head-max lane selectors: sel_s[l, g] = (l == g*S + s)
    il3 = jax.lax.broadcasted_iota(jnp.int32, (L, G), 0)
    ig3 = jax.lax.broadcasted_iota(jnp.int32, (L, G), 1)
    return e_lp, e_pl, first_s, last_s, il3, ig3


def _static_module(x, wp, gp, bp, wt2d, gt, bt, consts, *, N, C, S, P):
    """static_module forward on a (C, P*N*S) lane-major block (training-mode BN)."""
    e_lp, e_pl, first_s, last_s, _, _ = consts
    L = P * N * S
    inv1 = 1.0 / float(L)        # BN(p-branch): stats over (p, n, s) per channel
    inv2 = 1.0 / float(N * S)    # BN(t-branch): stats over (n, s) per (node, channel)

    # ---- "p" branch: Conv1d(C, C, k=1, bias=False) == channel-mixing matmul ----
    y1 = jnp.dot(wp, x, preferred_element_type=jnp.float32)               # (C, L)
    s1 = jnp.sum(y1, axis=1, keepdims=True)                               # (C, 1)
    q1 = jnp.sum(y1 * y1, axis=1, keepdims=True)                          # (C, 1)
    m1 = s1 * inv1
    v1 = jnp.maximum(q1 * inv1 - m1 * m1, 0.0)
    sc1 = gp * jax.lax.rsqrt(v1 + EPS)                                    # (C, 1)
    y1 = y1 * sc1 + (bp - m1 * sc1)

    # ---- "t" branch: per-node grouped Conv1d(k=3, pad=1) over time ----
    # taps: value at s-1 / s / s+1, zero-padded at the node-time boundaries.
    y_prev = jnp.where(first_s, 0.0, pltpu.roll(y1, 1, axis=1))
    y_next = jnp.where(last_s, 0.0, pltpu.roll(y1, L - 1, axis=1))
    taps = (y_prev, y1, y_next)
    # expand per-node weights to per-lane maps with a single dot:
    #   wt2d[(k*C + ci)*C + o, p]  ->  w_lane[(k*C + ci)*C + o, l] = wt[k, ci, o, p(l)]
    w_lane = jnp.dot(wt2d, e_pl, preferred_element_type=jnp.float32)      # (3*C*C, L)
    y2 = jnp.zeros_like(y1)
    for k in range(3):                       # static unroll: 3 taps x C input chans
        yk = taps[k]
        for ci in range(C):
            r0 = (k * C + ci) * C
            y2 = y2 + w_lane[r0:r0 + C, :] * yk[ci:ci + 1, :]             # (C, L)

    # BN over (n, s) per (node, channel): one-pass segmented sums via 0/1 matmuls.
    s2 = jnp.dot(y2, e_lp, preferred_element_type=jnp.float32)            # (C, P)
    q2 = jnp.dot(y2 * y2, e_lp, preferred_element_type=jnp.float32)       # (C, P)
    m2 = s2 * inv2
    v2 = jnp.maximum(q2 * inv2 - m2 * m2, 0.0)
    sc2 = gt * jax.lax.rsqrt(v2 + EPS)                                    # (C, P)
    sh2 = bt - m2 * sc2
    y2 = (y2 * jnp.dot(sc2, e_pl, preferred_element_type=jnp.float32)
          + jnp.dot(sh2, e_pl, preferred_element_type=jnp.float32))
    return y2
    # TODO(synk): BatchNorm running-mean/var buffer updates (training-time side
    # effect, not used by this forward pass) are not modeled.


def _group_time_max(y, consts, *, S):
    """max over the time axis per (channel, node, batch) group -> (C, P*N)."""
    _, _, _, _, il, ig = consts
    out = None
    for s in range(S):                        # static unroll over the S time steps
        sel = jnp.where(il == ig * S + s, 1.0, 0.0)                       # (L, P*N)
        cand = jnp.dot(y, sel, preferred_element_type=jnp.float32)        # (C, P*N)
        out = cand if out is None else jnp.maximum(out, cand)
    return out


def st_decoupe_kernel(x_ref, wp_ref, gp_ref, bp_ref, wt_ref, gt_ref, bt_ref,
                      o1_ref, o2_ref, *, N, C, S, P):
    consts = _build_consts(N, C, S, P)
    dims = dict(N=N, C=C, S=S, P=P)

    def module(inp, m):     # m = 0: stCommon, 1: st1, 2: st2 (leading-index loads)
        return _static_module(inp, wp_ref[m], gp_ref[m], bp_ref[m], wt_ref[m],
                              gt_ref[m], bt_ref[m], consts, **dims)

    xc = module(x_ref[...], 0)                                   # stays in VMEM
    o1_ref[...] = _group_time_max(module(xc, 1), consts, S=S).astype(o1_ref.dtype)
    o2_ref[...] = _group_time_max(module(xc, 2), consts, S=S).astype(o2_ref.dtype)


# ------------------------------- wrapper -------------------------------------
def st_decoupe_forward(x, params):
    """x: (N, C, S, P) float32 -> (s1, s2), each (N, C, P).  One fused Pallas call."""
    N, C, S, P = x.shape
    L, G = P * N * S, P * N
    # lane-major layout: x_lane[c, (p*N + n)*S + s] = x[n, c, s, p]   (glue only)
    x_lane = jnp.transpose(x, (1, 3, 0, 2)).reshape(C, L)

    def stack(name):
        return jnp.stack([params[k][name] for k in ("common", "st1", "st2")])

    wp = stack("wp")                                   # (3, C, C)
    gp, bp = stack("gp"), stack("bp")                  # (3, C, 1)
    wt = stack("wt").reshape(3, 3 * C * C, P)          # (3, 3*C*C, P)
    gt, bt = stack("gt"), stack("bt")                  # (3, C, P)

    vmem = pl.BlockSpec(memory_space=pltpu.MemorySpace.VMEM)
    kern = functools.partial(st_decoupe_kernel, N=N, C=C, S=S, P=P)
    h1, h2 = pl.pallas_call(
        kern,
        out_shape=(jax.ShapeDtypeStruct((C, G), x.dtype),
                   jax.ShapeDtypeStruct((C, G), x.dtype)),
        in_specs=[vmem] * 7,
        out_specs=(vmem, vmem),
    )(x_lane, wp, gp, bp, wt, gt, bt)

    # (C, P*N) -> (N, C, P)   (glue only; 128 elements per head)
    s1 = jnp.transpose(h1.reshape(C, P, N), (2, 0, 1))
    s2 = jnp.transpose(h2.reshape(C, P, N), (2, 0, 1))
    return s1, s2


# ------------------------------ parameters -----------------------------------
def init_static_module(key, c, p):
    """Deterministic synthetic init matching the PyTorch __init__ shapes/scales."""
    k1, k2, k3, k4 = jax.random.split(key, 4)
    # Conv1d(c, c, 1, bias=False): xavier_uniform on (c, c, 1).
    bound_p = float(np.sqrt(6.0 / (c + c)))
    wp = jax.random.uniform(k1, (c, c), jnp.float32, -bound_p, bound_p)          # [o, ci]
    # Conv1d(c*p, c*p, 3, pad=1, groups=p, bias=False): xavier_uniform on (p*c, c, 3).
    bound_t = float(np.sqrt(6.0 / (c * 3 + p * c * 3)))
    wt = jax.random.uniform(k2, (3, c, c, p), jnp.float32, -bound_t, bound_t)    # [k, ci, o, p]
    gp = 1.0 + 0.02 * jax.random.normal(k3, (c, 1), jnp.float32)                 # BN(c) weight
    gt = 1.0 + 0.02 * jax.random.normal(k4, (c, p), jnp.float32)                 # BN(p*c) weight
    return {"wp": wp, "gp": gp, "bp": jnp.zeros((c, 1), jnp.float32),
            "wt": wt, "gt": gt, "bt": jnp.zeros((c, p), jnp.float32)}


# ---------------------------- pure-JAX reference ------------------------------
def _static_module_ref(x, pr):
    # x: (P, N, C, S)
    y1 = jnp.einsum("oc,pncs->pnos", pr["wp"], x)
    m1 = jnp.mean(y1, axis=(0, 1, 3), keepdims=True)
    v1 = jnp.var(y1, axis=(0, 1, 3), keepdims=True)
    g1 = pr["gp"].reshape(1, 1, -1, 1)
    b1 = pr["bp"].reshape(1, 1, -1, 1)
    y1 = (y1 - m1) / jnp.sqrt(v1 + EPS) * g1 + b1
    S = y1.shape[-1]
    y1p = jnp.pad(y1, ((0, 0), (0, 0), (0, 0), (1, 1)))
    wt = pr["wt"]                                                  # (3, C, C, P) [k, ci, o, p]
    y2 = sum(jnp.einsum("iop,pnis->pnos", wt[k], y1p[..., k:k + S]) for k in range(3))
    m2 = jnp.mean(y2, axis=(1, 3), keepdims=True)
    v2 = jnp.var(y2, axis=(1, 3), keepdims=True)
    g2 = jnp.transpose(pr["gt"])[:, None, :, None]                 # (P, 1, C, 1)
    b2 = jnp.transpose(pr["bt"])[:, None, :, None]
    return (y2 - m2) / jnp.sqrt(v2 + EPS) * g2 + b2


def st_decoupe_ref(x, params):
    xp = jnp.transpose(x, (3, 0, 1, 2))
    xc = _static_module_ref(xp, params["common"])
    s1 = jnp.max(_static_module_ref(xc, params["st1"]), axis=-1)
    s2 = jnp.max(_static_module_ref(xc, params["st2"]), axis=-1)
    return jnp.transpose(s1, (1, 2, 0)), jnp.transpose(s2, (1, 2, 0))


# ------------------------------------------------------------------------------
if __name__ == "__main__":
    N, C, S, P = 2, 4, 8, 16          # batch, channels, time, nodes (num_nodes=16)
    key = jax.random.PRNGKey(0)
    kx, kc, k1, k2 = jax.random.split(key, 4)
    x = jax.random.normal(kx, (N, C, S, P), jnp.float32)
    params = {
        "common": init_static_module(kc, C, P),
        "st1": init_static_module(k1, C, P),
        "st2": init_static_module(k2, C, P),
    }

    s1, s2 = jax.jit(st_decoupe_forward)(x, params)
    jax.block_until_ready((s1, s2))
    assert s1.shape == (N, C, P) and s2.shape == (N, C, P)

    r1, r2 = st_decoupe_ref(x, params)
    assert np.allclose(np.asarray(s1), np.asarray(r1), rtol=1e-3, atol=1e-3)
    assert np.allclose(np.asarray(s2), np.asarray(r2), rtol=1e-3, atol=1e-3)
    print("KERNEL_OK")
</pallas_src>

<mosaic_0001>
module attributes {stable_mosaic.version = 11 : i64} {
  func.func @st_decoupe_kernel(%arg0: memref<4x256xf32, #tpu.memory_space<vmem>>, %arg1: memref<3x4x4xf32, #tpu.memory_space<vmem>>, %arg2: memref<3x4x1xf32, #tpu.memory_space<vmem>>, %arg3: memref<3x4x1xf32, #tpu.memory_space<vmem>>, %arg4: memref<3x48x16xf32, #tpu.memory_space<vmem>>, %arg5: memref<3x4x16xf32, #tpu.memory_space<vmem>>, %arg6: memref<3x4x16xf32, #tpu.memory_space<vmem>>, %arg7: memref<4x32xf32, #tpu.memory_space<vmem>>, %arg8: memref<4x32xf32, #tpu.memory_space<vmem>>) attributes {dimension_semantics = [], scalar_prefetch = 0 : i64, scratch_operands = 0 : i64, tpu.core_type = #tpu.core_type<tc>} {
    %0 = tpu.iota {dimensions = array<i32: 0>} : vector<256x16xi32>
    %1 = tpu.iota {dimensions = array<i32: 1>} : vector<256x16xi32>
    %c16_i32 = arith.constant 16 : i32
    %2 = vector.broadcast %c16_i32 : i32 to vector<256x16xi32>
    %3 = arith.muli %1, %2 : vector<256x16xi32>
    %4 = arith.cmpi sge, %0, %3 : vector<256x16xi32>
    %c16_i32_0 = arith.constant 16 : i32
    %5 = vector.broadcast %c16_i32_0 : i32 to vector<256x16xi32>
    %6 = arith.muli %1, %5 : vector<256x16xi32>
    %c16_i32_1 = arith.constant 16 : i32
    %7 = vector.broadcast %c16_i32_1 : i32 to vector<256x16xi32>
    %8 = arith.addi %6, %7 : vector<256x16xi32>
    %9 = arith.cmpi slt, %0, %8 : vector<256x16xi32>
    %10 = arith.andi %4, %9 : vector<256x16xi1>
    %cst = arith.constant 1.000000e+00 : f32
    %cst_2 = arith.constant 0.000000e+00 : f32
    %11 = vector.broadcast %cst : f32 to vector<256x16xf32>
    %12 = vector.broadcast %cst_2 : f32 to vector<256x16xf32>
    %13 = arith.select %10, %11, %12 : vector<256x16xi1>, vector<256x16xf32>
    %14 = tpu.iota {dimensions = array<i32: 0>} : vector<16x256xi32>
    %15 = tpu.iota {dimensions = array<i32: 1>} : vector<16x256xi32>
    %c16_i32_3 = arith.constant 16 : i32
    %16 = vector.broadcast %c16_i32_3 : i32 to vector<16x256xi32>
    %17 = arith.muli %14, %16 : vector<16x256xi32>
    %18 = arith.cmpi sge, %15, %17 : vector<16x256xi32>
    %c16_i32_4 = arith.constant 16 : i32
    %19 = vector.broadcast %c16_i32_4 : i32 to vector<16x256xi32>
    %20 = arith.muli %14, %19 : vector<16x256xi32>
    %c16_i32_5 = arith.constant 16 : i32
    %21 = vector.broadcast %c16_i32_5 : i32 to vector<16x256xi32>
    %22 = arith.addi %20, %21 : vector<16x256xi32>
    %23 = arith.cmpi slt, %15, %22 : vector<16x256xi32>
    %24 = arith.andi %18, %23 : vector<16x256xi1>
    %cst_6 = arith.constant 1.000000e+00 : f32
    %cst_7 = arith.constant 0.000000e+00 : f32
    %25 = vector.broadcast %cst_6 : f32 to vector<16x256xf32>
    %26 = vector.broadcast %cst_7 : f32 to vector<16x256xf32>
    %27 = arith.select %24, %25, %26 : vector<16x256xi1>, vector<16x256xf32>
    %28 = tpu.iota {dimensions = array<i32: 1>} : vector<1x256xi32>
    %c7_i32 = arith.constant 7 : i32
    %29 = vector.broadcast %c7_i32 : i32 to vector<1x256xi32>
    %30 = arith.andi %28, %29 : vector<1x256xi32>
    %c0_i32 = arith.constant 0 : i32
    %31 = vector.broadcast %c0_i32 : i32 to vector<1x256xi32>
    %32 = arith.cmpi eq, %30, %31 : vector<1x256xi32>
    %c7_i32_8 = arith.constant 7 : i32
    %33 = vector.broadcast %c7_i32_8 : i32 to vector<1x256xi32>
    %34 = arith.cmpi eq, %30, %33 : vector<1x256xi32>
    %35 = tpu.iota {dimensions = array<i32: 0>} : vector<256x32xi32>
    %36 = tpu.iota {dimensions = array<i32: 1>} : vector<256x32xi32>
    %c0 = arith.constant 0 : index
    %c0_9 = arith.constant 0 : index
    %37 = vector.load %arg0[%c0, %c0_9] : memref<4x256xf32, #tpu.memory_space<vmem>>, vector<4x256xf32>
    %c0_10 = arith.constant 0 : index
    %c0_11 = arith.constant 0 : index
    %c0_12 = arith.constant 0 : index
    %38 = vector.load %arg1[%c0_10, %c0_11, %c0_12] : memref<3x4x4xf32, #tpu.memory_space<vmem>>, vector<1x4x4xf32>
    %39 = vector.shape_cast %38 : vector<1x4x4xf32> to vector<4x4xf32>
    %c0_13 = arith.constant 0 : index
    %c0_14 = arith.constant 0 : index
    %c0_15 = arith.constant 0 : index
    %40 = vector.load %arg2[%c0_13, %c0_14, %c0_15] : memref<3x4x1xf32, #tpu.memory_space<vmem>>, vector<1x4x1xf32>
    %41 = vector.shape_cast %40 : vector<1x4x1xf32> to vector<4x1xf32>
    %c0_16 = arith.constant 0 : index
    %c0_17 = arith.constant 0 : index
    %c0_18 = arith.constant 0 : index
    %42 = vector.load %arg3[%c0_16, %c0_17, %c0_18] : memref<3x4x1xf32, #tpu.memory_space<vmem>>, vector<1x4x1xf32>
    %43 = vector.shape_cast %42 : vector<1x4x1xf32> to vector<4x1xf32>
    %c0_19 = arith.constant 0 : index
    %c0_20 = arith.constant 0 : index
    %c0_21 = arith.constant 0 : index
    %44 = vector.load %arg4[%c0_19, %c0_20, %c0_21] : memref<3x48x16xf32, #tpu.memory_space<vmem>>, vector<1x48x16xf32>
    %45 = vector.shape_cast %44 : vector<1x48x16xf32> to vector<48x16xf32>
    %c0_22 = arith.constant 0 : index
    %c0_23 = arith.constant 0 : index
    %c0_24 = arith.constant 0 : index
    %46 = vector.load %arg5[%c0_22, %c0_23, %c0_24] : memref<3x4x16xf32, #tpu.memory_space<vmem>>, vector<1x4x16xf32>
    %47 = vector.shape_cast %46 : vector<1x4x16xf32> to vector<4x16xf32>
    %c0_25 = arith.constant 0 : index
    %c0_26 = arith.constant 0 : index
    %c0_27 = arith.constant 0 : index
    %48 = vector.load %arg6[%c0_25, %c0_26, %c0_27] : memref<3x4x16xf32, #tpu.memory_space<vmem>>, vector<1x4x16xf32>
    %49 = vector.shape_cast %48 : vector<1x4x16xf32> to vector<4x16xf32>
    %cst_28 = arith.constant dense<0.000000e+00> : vector<4x256xf32>
    %50 = tpu.matmul %39, %37, %cst_28 {dimension_numbers = #tpu.dot_dimension_numbers<[1], [0], [0], [1], [0, 0, 1, 1], [], []>} : vector<4x4xf32>, vector<4x256xf32>, vector<4x256xf32> -> vector<4x256xf32>
    %cst_29 = arith.constant dense<0.000000e+00> : vector<4xf32>
    %51 = vector.multi_reduction <add>, %50, %cst_29 [1] : vector<4x256xf32> to vector<4xf32>
    %52 = vector.shape_cast %51 : vector<4xf32> to vector<4x1xf32>
    %53 = arith.mulf %50, %50 : vector<4x256xf32>
    %cst_30 = arith.constant dense<0.000000e+00> : vector<4xf32>
    %54 = vector.multi_reduction <add>, %53, %cst_30 [1] : vector<4x256xf32> to vector<4xf32>
    %55 = vector.shape_cast %54 : vector<4xf32> to vector<4x1xf32>
    %cst_31 = arith.constant 3.906250e-03 : f32
    %56 = vector.broadcast %cst_31 : f32 to vector<4x1xf32>
    %57 = arith.mulf %52, %56 : vector<4x1xf32>
    %cst_32 = arith.constant 3.906250e-03 : f32
    %58 = vector.broadcast %cst_32 : f32 to vector<4x1xf32>
    %59 = arith.mulf %55, %58 : vector<4x1xf32>
    %60 = arith.mulf %57, %57 : vector<4x1xf32>
    %61 = arith.subf %59, %60 : vector<4x1xf32>
    %cst_33 = arith.constant 0.000000e+00 : f32
    %62 = vector.broadcast %cst_33 : f32 to vector<4x1xf32>
    %63 = arith.maximumf %61, %62 : vector<4x1xf32>
    %cst_34 = arith.constant 9.99999974E-6 : f32
    %64 = vector.broadcast %cst_34 : f32 to vector<4x1xf32>
    %65 = arith.addf %63, %64 : vector<4x1xf32>
    %66 = math.rsqrt %65 : vector<4x1xf32>
    %67 = arith.mulf %41, %66 : vector<4x1xf32>
    %68 = vector.broadcast %67 : vector<4x1xf32> to vector<4x256xf32>
    %69 = arith.mulf %50, %68 : vector<4x256xf32>
    %70 = arith.mulf %57, %67 : vector<4x1xf32>
    %71 = arith.subf %43, %70 : vector<4x1xf32>
    %72 = vector.broadcast %71 : vector<4x1xf32> to vector<4x256xf32>
    %73 = arith.addf %69, %72 : vector<4x256xf32>
    %c1_i32 = arith.constant 1 : i32
    %74 = tpu.dynamic_rotate %73 by %c1_i32 dim 1 : vector<4x256xf32>, i32 -> vector<4x256xf32>
    %cst_35 = arith.constant 0.000000e+00 : f32
    %75 = vector.shape_cast %32 : vector<1x256xi1> to vector<1x256xi1>
    %76 = vector.broadcast %75 : vector<1x256xi1> to vector<4x256xi1>
    %77 = vector.broadcast %cst_35 : f32 to vector<4x256xf32>
    %78 = arith.select %76, %77, %74 : vector<4x256xi1>, vector<4x256xf32>
    %c255_i32 = arith.constant 255 : i32
    %79 = tpu.dynamic_rotate %73 by %c255_i32 dim 1 : vector<4x256xf32>, i32 -> vector<4x256xf32>
    %cst_36 = arith.constant 0.000000e+00 : f32
    %80 = vector.shape_cast %34 : vector<1x256xi1> to vector<1x256xi1>
    %81 = vector.broadcast %80 : vector<1x256xi1> to vector<4x256xi1>
    %82 = vector.broadcast %cst_36 : f32 to vector<4x256xf32>
    %83 = arith.select %81, %82, %79 : vector<4x256xi1>, vector<4x256xf32>
    %cst_37 = arith.constant dense<0.000000e+00> : vector<48x256xf32>
    %84 = tpu.matmul %45, %27, %cst_37 {dimension_numbers = #tpu.dot_dimension_numbers<[1], [0], [0], [1], [0, 0, 1, 1], [], []>} : vector<48x16xf32>, vector<16x256xf32>, vector<48x256xf32> -> vector<48x256xf32>
    %cst_38 = arith.constant 0.000000e+00 : f32
    %85 = vector.broadcast %cst_38 : f32 to vector<4x256xf32>
    %86 = vector.extract_strided_slice %84 {offsets = [0, 0], sizes = [4, 256], strides = [1, 1]} : vector<48x256xf32> to vector<4x256xf32>
    %87 = vector.extract_strided_slice %78 {offsets = [0, 0], sizes = [1, 256], strides = [1, 1]} : vector<4x256xf32> to vector<1x256xf32>
    %88 = vector.broadcast %87 : vector<1x256xf32> to vector<4x256xf32>
    %89 = arith.mulf %86, %88 : vector<4x256xf32>
    %90 = arith.addf %85, %89 : vector<4x256xf32>
    %91 = vector.extract_strided_slice %84 {offsets = [4, 0], sizes = [4, 256], strides = [1, 1]} : vector<48x256xf32> to vector<4x256xf32>
    %92 = vector.extract_strided_slice %78 {offsets = [1, 0], sizes = [1, 256], strides = [1, 1]} : vector<4x256xf32> to vector<1x256xf32>
    %93 = vector.broadcast %92 : vector<1x256xf32> to vector<4x256xf32>
    %94 = arith.mulf %91, %93 : vector<4x256xf32>
    %95 = arith.addf %90, %94 : vector<4x256xf32>
    %96 = vector.extract_strided_slice %84 {offsets = [8, 0], sizes = [4, 256], strides = [1, 1]} : vector<48x256xf32> to vector<4x256xf32>
    %97 = vector.extract_strided_slice %78 {offsets = [2, 0], sizes = [1, 256], strides = [1, 1]} : vector<4x256xf32> to vector<1x256xf32>
    %98 = vector.broadcast %97 : vector<1x256xf32> to vector<4x256xf32>
    %99 = arith.mulf %96, %98 : vector<4x256xf32>
    %100 = arith.addf %95, %99 : vector<4x256xf32>
    %101 = vector.extract_strided_slice %84 {offsets = [12, 0], sizes = [4, 256], strides = [1, 1]} : vector<48x256xf32> to vector<4x256xf32>
    %102 = vector.extract_strided_slice %78 {offsets = [3, 0], sizes = [1, 256], strides = [1, 1]} : vector<4x256xf32> to vector<1x256xf32>
    %103 = vector.broadcast %102 : vector<1x256xf32> to vector<4x256xf32>
    %104 = arith.mulf %101, %103 : vector<4x256xf32>
    %105 = arith.addf %100, %104 : vector<4x256xf32>
    %106 = vector.extract_strided_slice %84 {offsets = [16, 0], sizes = [4, 256], strides = [1, 1]} : vector<48x256xf32> to vector<4x256xf32>
    %107 = vector.extract_strided_slice %73 {offsets = [0, 0], sizes = [1, 256], strides = [1, 1]} : vector<4x256xf32> to vector<1x256xf32>
    %108 = vector.broadcast %107 : vector<1x256xf32> to vector<4x256xf32>
    %109 = arith.mulf %106, %108 : vector<4x256xf32>
    %110 = arith.addf %105, %109 : vector<4x256xf32>
    %111 = vector.extract_strided_slice %84 {offsets = [20, 0], sizes = [4, 256], strides = [1, 1]} : vector<48x256xf32> to vector<4x256xf32>
    %112 = vector.extract_strided_slice %73 {offsets = [1, 0], sizes = [1, 256], strides = [1, 1]} : vector<4x256xf32> to vector<1x256xf32>
    %113 = vector.broadcast %112 : vector<1x256xf32> to vector<4x256xf32>
    %114 = arith.mulf %111, %113 : vector<4x256xf32>
    %115 = arith.addf %110, %114 : vector<4x256xf32>
    %116 = vector.extract_strided_slice %84 {offsets = [24, 0], sizes = [4, 256], strides = [1, 1]} : vector<48x256xf32> to vector<4x256xf32>
    %117 = vector.extract_strided_slice %73 {offsets = [2, 0], sizes = [1, 256], strides = [1, 1]} : vector<4x256xf32> to vector<1x256xf32>
    %118 = vector.broadcast %117 : vector<1x256xf32> to vector<4x256xf32>
    %119 = arith.mulf %116, %118 : vector<4x256xf32>
    %120 = arith.addf %115, %119 : vector<4x256xf32>
    %121 = vector.extract_strided_slice %84 {offsets = [28, 0], sizes = [4, 256], strides = [1, 1]} : vector<48x256xf32> to vector<4x256xf32>
    %122 = vector.extract_strided_slice %73 {offsets = [3, 0], sizes = [1, 256], strides = [1, 1]} : vector<4x256xf32> to vector<1x256xf32>
    %123 = vector.broadcast %122 : vector<1x256xf32> to vector<4x256xf32>
    %124 = arith.mulf %121, %123 : vector<4x256xf32>
    %125 = arith.addf %120, %124 : vector<4x256xf32>
    %126 = vector.extract_strided_slice %84 {offsets = [32, 0], sizes = [4, 256], strides = [1, 1]} : vector<48x256xf32> to vector<4x256xf32>
    %127 = vector.extract_strided_slice %83 {offsets = [0, 0], sizes = [1, 256], strides = [1, 1]} : vector<4x256xf32> to vector<1x256xf32>
    %128 = vector.broadcast %127 : vector<1x256xf32> to vector<4x256xf32>
    %129 = arith.mulf %126, %128 : vector<4x256xf32>
    %130 = arith.addf %125, %129 : vector<4x256xf32>
    %131 = vector.extract_strided_slice %84 {offsets = [36, 0], sizes = [4, 256], strides = [1, 1]} : vector<48x256xf32> to vector<4x256xf32>
    %132 = vector.extract_strided_slice %83 {offsets = [1, 0], sizes = [1, 256], strides = [1, 1]} : vector<4x256xf32> to vector<1x256xf32>
    %133 = vector.broadcast %132 : vector<1x256xf32> to vector<4x256xf32>
    %134 = arith.mulf %131, %133 : vector<4x256xf32>
    %135 = arith.addf %130, %134 : vector<4x256xf32>
    %136 = vector.extract_strided_slice %84 {offsets = [40, 0], sizes = [4, 256], strides = [1, 1]} : vector<48x256xf32> to vector<4x256xf32>
    %137 = vector.extract_strided_slice %83 {offsets = [2, 0], sizes = [1, 256], strides = [1, 1]} : vector<4x256xf32> to vector<1x256xf32>
    %138 = vector.broadcast %137 : vector<1x256xf32> to vector<4x256xf32>
    %139 = arith.mulf %136, %138 : vector<4x256xf32>
    %140 = arith.addf %135, %139 : vector<4x256xf32>
    %141 = vector.extract_strided_slice %84 {offsets = [44, 0], sizes = [4, 256], strides = [1, 1]} : vector<48x256xf32> to vector<4x256xf32>
    %142 = vector.extract_strided_slice %83 {offsets = [3, 0], sizes = [1, 256], strides = [1, 1]} : vector<4x256xf32> to vector<1x256xf32>
    %143 = vector.broadcast %142 : vector<1x256xf32> to vector<4x256xf32>
    %144 = arith.mulf %141, %143 : vector<4x256xf32>
    %145 = arith.addf %140, %144 : vector<4x256xf32>
    %cst_39 = arith.constant dense<0.000000e+00> : vector<4x16xf32>
    %146 = tpu.matmul %145, %13, %cst_39 {dimension_numbers = #tpu.dot_dimension_numbers<[1], [0], [0], [1], [0, 0, 1, 1], [], []>} : vector<4x256xf32>, vector<256x16xf32>, vector<4x16xf32> -> vector<4x16xf32>
    %147 = arith.mulf %145, %145 : vector<4x256xf32>
    %cst_40 = arith.constant dense<0.000000e+00> : vector<4x16xf32>
    %148 = tpu.matmul %147, %13, %cst_40 {dimension_numbers = #tpu.dot_dimension_numbers<[1], [0], [0], [1], [0, 0, 1, 1], [], []>} : vector<4x256xf32>, vector<256x16xf32>, vector<4x16xf32> -> vector<4x16xf32>
    %cst_41 = arith.constant 6.250000e-02 : f32
    %149 = vector.broadcast %cst_41 : f32 to vector<4x16xf32>
    %150 = arith.mulf %146, %149 : vector<4x16xf32>
    %cst_42 = arith.constant 6.250000e-02 : f32
    %151 = vector.broadcast %cst_42 : f32 to vector<4x16xf32>
    %152 = arith.mulf %148, %151 : vector<4x16xf32>
    %153 = arith.mulf %150, %150 : vector<4x16xf32>
    %154 = arith.subf %152, %153 : vector<4x16xf32>
    %cst_43 = arith.constant 0.000000e+00 : f32
    %155 = vector.broadcast %cst_43 : f32 to vector<4x16xf32>
    %156 = arith.maximumf %154, %155 : vector<4x16xf32>
    %cst_44 = arith.constant 9.99999974E-6 : f32
    %157 = vector.broadcast %cst_44 : f32 to vector<4x16xf32>
    %158 = arith.addf %156, %157 : vector<4x16xf32>
    %159 = math.rsqrt %158 : vector<4x16xf32>
    %160 = arith.mulf %47, %159 : vector<4x16xf32>
    %161 = arith.mulf %150, %160 : vector<4x16xf32>
    %162 = arith.subf %49, %161 : vector<4x16xf32>
    %cst_45 = arith.constant dense<0.000000e+00> : vector<4x256xf32>
    %163 = tpu.matmul %160, %27, %cst_45 {dimension_numbers = #tpu.dot_dimension_numbers<[1], [0], [0], [1], [0, 0, 1, 1], [], []>} : vector<4x16xf32>, vector<16x256xf32>, vector<4x256xf32> -> vector<4x256xf32>
    %164 = arith.mulf %145, %163 : vector<4x256xf32>
    %cst_46 = arith.constant dense<0.000000e+00> : vector<4x256xf32>
    %165 = tpu.matmul %162, %27, %cst_46 {dimension_numbers = #tpu.dot_dimension_numbers<[1], [0], [0], [1], [0, 0, 1, 1], [], []>} : vector<4x16xf32>, vector<16x256xf32>, vector<4x256xf32> -> vector<4x256xf32>
    %166 = arith.addf %164, %165 : vector<4x256xf32>
    %c1 = arith.constant 1 : index
    %c0_47 = arith.constant 0 : index
    %c0_48 = arith.constant 0 : index
    %167 = vector.load %arg1[%c1, %c0_47, %c0_48] : memref<3x4x4xf32, #tpu.memory_space<vmem>>, vector<1x4x4xf32>
    %168 = vector.shape_cast %167 : vector<1x4x4xf32> to vector<4x4xf32>
    %c1_49 = arith.constant 1 : index
    %c0_50 = arith.constant 0 : index
    %c0_51 = arith.constant 0 : index
    %169 = vector.load %arg2[%c1_49, %c0_50, %c0_51] : memref<3x4x1xf32, #tpu.memory_space<vmem>>, vector<1x4x1xf32>
    %170 = vector.shape_cast %169 : vector<1x4x1xf32> to vector<4x1xf32>
    %c1_52 = arith.constant 1 : index
    %c0_53 = arith.constant 0 : index
    %c0_54 = arith.constant 0 : index
    %171 = vector.load %arg3[%c1_52, %c0_53, %c0_54] : memref<3x4x1xf32, #tpu.memory_space<vmem>>, vector<1x4x1xf32>
    %172 = vector.shape_cast %171 : vector<1x4x1xf32> to vector<4x1xf32>
    %c1_55 = arith.constant 1 : index
    %c0_56 = arith.constant 0 : index
    %c0_57 = arith.constant 0 : index
    %173 = vector.load %arg4[%c1_55, %c0_56, %c0_57] : memref<3x48x16xf32, #tpu.memory_space<vmem>>, vector<1x48x16xf32>
    %174 = vector.shape_cast %173 : vector<1x48x16xf32> to vector<48x16xf32>
    %c1_58 = arith.constant 1 : index
    %c0_59 = arith.constant 0 : index
    %c0_60 = arith.constant 0 : index
    %175 = vector.load %arg5[%c1_58, %c0_59, %c0_60] : memref<3x4x16xf32, #tpu.memory_space<vmem>>, vector<1x4x16xf32>
    %176 = vector.shape_cast %175 : vector<1x4x16xf32> to vector<4x16xf32>
    %c1_61 = arith.constant 1 : index
    %c0_62 = arith.constant 0 : index
    %c0_63 = arith.constant 0 : index
    %177 = vector.load %arg6[%c1_61, %c0_62, %c0_63] : memref<3x4x16xf32, #tpu.memory_space<vmem>>, vector<1x4x16xf32>
    %178 = vector.shape_cast %177 : vector<1x4x16xf32> to vector<4x16xf32>
    %cst_64 = arith.constant dense<0.000000e+00> : vector<4x256xf32>
    %179 = tpu.matmul %168, %166, %cst_64 {dimension_numbers = #tpu.dot_dimension_numbers<[1], [0], [0], [1], [0, 0, 1, 1], [], []>} : vector<4x4xf32>, vector<4x256xf32>, vector<4x256xf32> -> vector<4x256xf32>
    %cst_65 = arith.constant dense<0.000000e+00> : vector<4xf32>
    %180 = vector.multi_reduction <add>, %179, %cst_65 [1] : vector<4x256xf32> to vector<4xf32>
    %181 = vector.shape_cast %180 : vector<4xf32> to vector<4x1xf32>
    %182 = arith.mulf %179, %179 : vector<4x256xf32>
    %cst_66 = arith.constant dense<0.000000e+00> : vector<4xf32>
    %183 = vector.multi_reduction <add>, %182, %cst_66 [1] : vector<4x256xf32> to vector<4xf32>
    %184 = vector.shape_cast %183 : vector<4xf32> to vector<4x1xf32>
    %cst_67 = arith.constant 3.906250e-03 : f32
    %185 = vector.broadcast %cst_67 : f32 to vector<4x1xf32>
    %186 = arith.mulf %181, %185 : vector<4x1xf32>
    %cst_68 = arith.constant 3.906250e-03 : f32
    %187 = vector.broadcast %cst_68 : f32 to vector<4x1xf32>
    %188 = arith.mulf %184, %187 : vector<4x1xf32>
    %189 = arith.mulf %186, %186 : vector<4x1xf32>
    %190 = arith.subf %188, %189 : vector<4x1xf32>
    %cst_69 = arith.constant 0.000000e+00 : f32
    %191 = vector.broadcast %cst_69 : f32 to vector<4x1xf32>
    %192 = arith.maximumf %190, %191 : vector<4x1xf32>
    %cst_70 = arith.constant 9.99999974E-6 : f32
    %193 = vector.broadcast %cst_70 : f32 to vector<4x1xf32>
    %194 = arith.addf %192, %193 : vector<4x1xf32>
    %195 = math.rsqrt %194 : vector<4x1xf32>
    %196 = arith.mulf %170, %195 : vector<4x1xf32>
    %197 = vector.broadcast %196 : vector<4x1xf32> to vector<4x256xf32>
    %198 = arith.mulf %179, %197 : vector<4x256xf32>
    %199 = arith.mulf %186, %196 : vector<4x1xf32>
    %200 = arith.subf %172, %199 : vector<4x1xf32>
    %201 = vector.broadcast %200 : vector<4x1xf32> to vector<4x256xf32>
    %202 = arith.addf %198, %201 : vector<4x256xf32>
    %c1_i32_71 = arith.constant 1 : i32
    %203 = tpu.dynamic_rotate %202 by %c1_i32_71 dim 1 : vector<4x256xf32>, i32 -> vector<4x256xf32>
    %cst_72 = arith.constant 0.000000e+00 : f32
    %204 = vector.shape_cast %32 : vector<1x256xi1> to vector<1x256xi1>
    %205 = vector.broadcast %204 : vector<1x256xi1> to vector<4x256xi1>
    %206 = vector.broadcast %cst_72 : f32 to vector<4x256xf32>
    %207 = arith.select %205, %206, %203 : vector<4x256xi1>, vector<4x256xf32>
    %c255_i32_73 = arith.constant 255 : i32
    %208 = tpu.dynamic_rotate %202 by %c255_i32_73 dim 1 : vector<4x256xf32>, i32 -> vector<4x256xf32>
    %cst_74 = arith.constant 0.000000e+00 : f32
    %209 = vector.shape_cast %34 : vector<1x256xi1> to vector<1x256xi1>
    %210 = vector.broadcast %209 : vector<1x256xi1> to vector<4x256xi1>
    %211 = vector.broadcast %cst_74 : f32 to vector<4x256xf32>
    %212 = arith.select %210, %211, %208 : vector<4x256xi1>, vector<4x256xf32>
    %cst_75 = arith.constant dense<0.000000e+00> : vector<48x256xf32>
    %213 = tpu.matmul %174, %27, %cst_75 {dimension_numbers = #tpu.dot_dimension_numbers<[1], [0], [0], [1], [0, 0, 1, 1], [], []>} : vector<48x16xf32>, vector<16x256xf32>, vector<48x256xf32> -> vector<48x256xf32>
    %cst_76 = arith.constant 0.000000e+00 : f32
    %214 = vector.broadcast %cst_76 : f32 to vector<4x256xf32>
    %215 = vector.extract_strided_slice %213 {offsets = [0, 0], sizes = [4, 256], strides = [1, 1]} : vector<48x256xf32> to vector<4x256xf32>
    %216 = vector.extract_strided_slice %207 {offsets = [0, 0], sizes = [1, 256], strides = [1, 1]} : vector<4x256xf32> to vector<1x256xf32>
    %217 = vector.broadcast %216 : vector<1x256xf32> to vector<4x256xf32>
    %218 = arith.mulf %215, %217 : vector<4x256xf32>
    %219 = arith.addf %214, %218 : vector<4x256xf32>
    %220 = vector.extract_strided_slice %213 {offsets = [4, 0], sizes = [4, 256], strides = [1, 1]} : vector<48x256xf32> to vector<4x256xf32>
    %221 = vector.extract_strided_slice %207 {offsets = [1, 0], sizes = [1, 256], strides = [1, 1]} : vector<4x256xf32> to vector<1x256xf32>
    %222 = vector.broadcast %221 : vector<1x256xf32> to vector<4x256xf32>
    %223 = arith.mulf %220, %222 : vector<4x256xf32>
    %224 = arith.addf %219, %223 : vector<4x256xf32>
    %225 = vector.extract_strided_slice %213 {offsets = [8, 0], sizes = [4, 256], strides = [1, 1]} : vector<48x256xf32> to vector<4x256xf32>
    %226 = vector.extract_strided_slice %207 {offsets = [2, 0], sizes = [1, 256], strides = [1, 1]} : vector<4x256xf32> to vector<1x256xf32>
    %227 = vector.broadcast %226 : vector<1x256xf32> to vector<4x256xf32>
    %228 = arith.mulf %225, %227 : vector<4x256xf32>
    %229 = arith.addf %224, %228 : vector<4x256xf32>
    %230 = vector.extract_strided_slice %213 {offsets = [12, 0], sizes = [4, 256], strides = [1, 1]} : vector<48x256xf32> to vector<4x256xf32>
    %231 = vector.extract_strided_slice %207 {offsets = [3, 0], sizes = [1, 256], strides = [1, 1]} : vector<4x256xf32> to vector<1x256xf32>
    %232 = vector.broadcast %231 : vector<1x256xf32> to vector<4x256xf32>
    %233 = arith.mulf %230, %232 : vector<4x256xf32>
    %234 = arith.addf %229, %233 : vector<4x256xf32>
    %235 = vector.extract_strided_slice %213 {offsets = [16, 0], sizes = [4, 256], strides = [1, 1]} : vector<48x256xf32> to vector<4x256xf32>
    %236 = vector.extract_strided_slice %202 {offsets = [0, 0], sizes = [1, 256], strides = [1, 1]} : vector<4x256xf32> to vector<1x256xf32>
    %237 = vector.broadcast %236 : vector<1x256xf32> to vector<4x256xf32>
    %238 = arith.mulf %235, %237 : vector<4x256xf32>
    %239 = arith.addf %234, %238 : vector<4x256xf32>
    %240 = vector.extract_strided_slice %213 {offsets = [20, 0], sizes = [4, 256], strides = [1, 1]} : vector<48x256xf32> to vector<4x256xf32>
    %241 = vector.extract_strided_slice %202 {offsets = [1, 0], sizes = [1, 256], strides = [1, 1]} : vector<4x256xf32> to vector<1x256xf32>
    %242 = vector.broadcast %241 : vector<1x256xf32> to vector<4x256xf32>
    %243 = arith.mulf %240, %242 : vector<4x256xf32>
    %244 = arith.addf %239, %243 : vector<4x256xf32>
    %245 = vector.extract_strided_slice %213 {offsets = [24, 0], sizes = [4, 256], strides = [1, 1]} : vector<48x256xf32> to vector<4x256xf32>
    %246 = vector.extract_strided_slice %202 {offsets = [2, 0], sizes = [1, 256], strides = [1, 1]} : vector<4x256xf32> to vector<1x256xf32>
    %247 = vector.broadcast %246 : vector<1x256xf32> to vector<4x256xf32>
    %248 = arith.mulf %245, %247 : vector<4x256xf32>
    %249 = arith.addf %244, %248 : vector<4x256xf32>
    %250 = vector.extract_strided_slice %213 {offsets = [28, 0], sizes = [4, 256], strides = [1, 1]} : vector<48x256xf32> to vector<4x256xf32>
    %251 = vector.extract_strided_slice %202 {offsets = [3, 0], sizes = [1, 256], strides = [1, 1]} : vector<4x256xf32> to vector<1x256xf32>
    %252 = vector.broadcast %251 : vector<1x256xf32> to vector<4x256xf32>
    %253 = arith.mulf %250, %252 : vector<4x256xf32>
    %254 = arith.addf %249, %253 : vector<4x256xf32>
    %255 = vector.extract_strided_slice %213 {offsets = [32, 0], sizes = [4, 256], strides = [1, 1]} : vector<48x256xf32> to vector<4x256xf32>
    %256 = vector.extract_strided_slice %212 {offsets = [0, 0], sizes = [1, 256], strides = [1, 1]} : vector<4x256xf32> to vector<1x256xf32>
    %257 = vector.broadcast %256 : vector<1x256xf32> to vector<4x256xf32>
    %258 = arith.mulf %255, %257 : vector<4x256xf32>
    %259 = arith.addf %254, %258 : vector<4x256xf32>
    %260 = vector.extract_strided_slice %213 {offsets = [36, 0], sizes = [4, 256], strides = [1, 1]} : vector<48x256xf32> to vector<4x256xf32>
    %261 = vector.extract_strided_slice %212 {offsets = [1, 0], sizes = [1, 256], strides = [1, 1]} : vector<4x256xf32> to vector<1x256xf32>
    %262 = vector.broadcast %261 : vector<1x256xf32> to vector<4x256xf32>
    %263 = arith.mulf %260, %262 : vector<4x256xf32>
    %264 = arith.addf %259, %263 : vector<4x256xf32>
    %265 = vector.extract_strided_slice %213 {offsets = [40, 0], sizes = [4, 256], strides = [1, 1]} : vector<48x256xf32> to vector<4x256xf32>
    %266 = vector.extract_strided_slice %212 {offsets = [2, 0], sizes = [1, 256], strides = [1, 1]} : vector<4x256xf32> to vector<1x256xf32>
    %267 = vector.broadcast %266 : vector<1x256xf32> to vector<4x256xf32>
    %268 = arith.mulf %265, %267 : vector<4x256xf32>
    %269 = arith.addf %264, %268 : vector<4x256xf32>
    %270 = vector.extract_strided_slice %213 {offsets = [44, 0], sizes = [4, 256], strides = [1, 1]} : vector<48x256xf32> to vector<4x256xf32>
    %271 = vector.extract_strided_slice %212 {offsets = [3, 0], sizes = [1, 256], strides = [1, 1]} : vector<4x256xf32> to vector<1x256xf32>
    %272 = vector.broadcast %271 : vector<1x256xf32> to vector<4x256xf32>
    %273 = arith.mulf %270, %272 : vector<4x256xf32>
    %274 = arith.addf %269, %273 : vector<4x256xf32>
    %cst_77 = arith.constant dense<0.000000e+00> : vector<4x16xf32>
    %275 = tpu.matmul %274, %13, %cst_77 {dimension_numbers = #tpu.dot_dimension_numbers<[1], [0], [0], [1], [0, 0, 1, 1], [], []>} : vector<4x256xf32>, vector<256x16xf32>, vector<4x16xf32> -> vector<4x16xf32>
    %276 = arith.mulf %274, %274 : vector<4x256xf32>
    %cst_78 = arith.constant dense<0.000000e+00> : vector<4x16xf32>
    %277 = tpu.matmul %276, %13, %cst_78 {dimension_numbers = #tpu.dot_dimension_numbers<[1], [0], [0], [1], [0, 0, 1, 1], [], []>} : vector<4x256xf32>, vector<256x16xf32>, vector<4x16xf32> -> vector<4x16xf32>
    %cst_79 = arith.constant 6.250000e-02 : f32
    %278 = vector.broadcast %cst_79 : f32 to vector<4x16xf32>
    %279 = arith.mulf %275, %278 : vector<4x16xf32>
    %cst_80 = arith.constant 6.250000e-02 : f32
    %280 = vector.broadcast %cst_80 : f32 to vector<4x16xf32>
    %281 = arith.mulf %277, %280 : vector<4x16xf32>
    %282 = arith.mulf %279, %279 : vector<4x16xf32>
    %283 = arith.subf %281, %282 : vector<4x16xf32>
    %cst_81 = arith.constant 0.000000e+00 : f32
    %284 = vector.broadcast %cst_81 : f32 to vector<4x16xf32>
    %285 = arith.maximumf %283, %284 : vector<4x16xf32>
    %cst_82 = arith.constant 9.99999974E-6 : f32
    %286 = vector.broadcast %cst_82 : f32 to vector<4x16xf32>
    %287 = arith.addf %285, %286 : vector<4x16xf32>
    %288 = math.rsqrt %287 : vector<4x16xf32>
    %289 = arith.mulf %176, %288 : vector<4x16xf32>
    %290 = arith.mulf %279, %289 : vector<4x16xf32>
    %291 = arith.subf %178, %290 : vector<4x16xf32>
    %cst_83 = arith.constant dense<0.000000e+00> : vector<4x256xf32>
    %292 = tpu.matmul %289, %27, %cst_83 {dimension_numbers = #tpu.dot_dimension_numbers<[1], [0], [0], [1], [0, 0, 1, 1], [], []>} : vector<4x16xf32>, vector<16x256xf32>, vector<4x256xf32> -> vector<4x256xf32>
    %293 = arith.mulf %274, %292 : vector<4x256xf32>
    %cst_84 = arith.constant dense<0.000000e+00> : vector<4x256xf32>
    %294 = tpu.matmul %291, %27, %cst_84 {dimension_numbers = #tpu.dot_dimension_numbers<[1], [0], [0], [1], [0, 0, 1, 1], [], []>} : vector<4x16xf32>, vector<16x256xf32>, vector<4x256xf32> -> vector<4x256xf32>
    %295 = arith.addf %293, %294 : vector<4x256xf32>
    %c8_i32 = arith.constant 8 : i32
    %296 = vector.broadcast %c8_i32 : i32 to vector<256x32xi32>
    %297 = arith.muli %36, %296 : vector<256x32xi32>
    %c0_i32_85 = arith.constant 0 : i32
    %298 = vector.broadcast %c0_i32_85 : i32 to vector<256x32xi32>
    %299 = arith.addi %297, %298 : vector<256x32xi32>
    %300 = arith.cmpi eq, %35, %299 : vector<256x32xi32>
    %cst_86 = arith.constant 1.000000e+00 : f32
    %cst_87 = arith.constant 0.000000e+00 : f32
    %301 = vector.broadcast %cst_86 : f32 to vector<256x32xf32>
    %302 = vector.broadcast %cst_87 : f32 to vector<256x32xf32>
    %303 = arith.select %300, %301, %302 : vector<256x32xi1>, vector<256x32xf32>
    %cst_88 = arith.constant dense<0.000000e+00> : vector<4x32xf32>
    %304 = tpu.matmul %295, %303, %cst_88 {dimension_numbers = #tpu.dot_dimension_numbers<[1], [0], [0], [1], [0, 0, 1, 1], [], []>} : vector<4x256xf32>, vector<256x32xf32>, vector<4x32xf32> -> vector<4x32xf32>
    %c8_i32_89 = arith.constant 8 : i32
    %305 = vector.broadcast %c8_i32_89 : i32 to vector<256x32xi32>
    %306 = arith.muli %36, %305 : vector<256x32xi32>
    %c1_i32_90 = arith.constant 1 : i32
    %307 = vector.broadcast %c1_i32_90 : i32 to vector<256x32xi32>
    %308 = arith.addi %306, %307 : vector<256x32xi32>
    %309 = arith.cmpi eq, %35, %308 : vector<256x32xi32>
    %cst_91 = arith.constant 1.000000e+00 : f32
    %cst_92 = arith.constant 0.000000e+00 : f32
    %310 = vector.broadcast %cst_91 : f32 to vector<256x32xf32>
    %311 = vector.broadcast %cst_92 : f32 to vector<256x32xf32>
    %312 = arith.select %309, %310, %311 : vector<256x32xi1>, vector<256x32xf32>
    %cst_93 = arith.constant dense<0.000000e+00> : vector<4x32xf32>
    %313 = tpu.matmul %295, %312, %cst_93 {dimension_numbers = #tpu.dot_dimension_numbers<[1], [0], [0], [1], [0, 0, 1, 1], [], []>} : vector<4x256xf32>, vector<256x32xf32>, vector<4x32xf32> -> vector<4x32xf32>
    %314 = arith.maximumf %304, %313 : vector<4x32xf32>
    %c8_i32_94 = arith.constant 8 : i32
    %315 = vector.broadcast %c8_i32_94 : i32 to vector<256x32xi32>
    %316 = arith.muli %36, %315 : vector<256x32xi32>
    %c2_i32 = arith.constant 2 : i32
    %317 = vector.broadcast %c2_i32 : i32 to vector<256x32xi32>
    %318 = arith.addi %316, %317 : vector<256x32xi32>
    %319 = arith.cmpi eq, %35, %318 : vector<256x32xi32>
    %cst_95 = arith.constant 1.000000e+00 : f32
    %cst_96 = arith.constant 0.000000e+00 : f32
    %320 = vector.broadcast %cst_95 : f32 to vector<256x32xf32>
    %321 = vector.broadcast %cst_96 : f32 to vector<256x32xf32>
    %322 = arith.select %319, %320, %321 : vector<256x32xi1>, vector<256x32xf32>
    %cst_97 = arith.constant dense<0.000000e+00> : vector<4x32xf32>
    %323 = tpu.matmul %295, %322, %cst_97 {dimension_numbers = #tpu.dot_dimension_numbers<[1], [0], [0], [1], [0, 0, 1, 1], [], []>} : vector<4x256xf32>, vector<256x32xf32>, vector<4x32xf32> -> vector<4x32xf32>
    %324 = arith.maximumf %314, %323 : vector<4x32xf32>
    %c8_i32_98 = arith.constant 8 : i32
    %325 = vector.broadcast %c8_i32_98 : i32 to vector<256x32xi32>
    %326 = arith.muli %36, %325 : vector<256x32xi32>
    %c3_i32 = arith.constant 3 : i32
    %327 = vector.broadcast %c3_i32 : i32 to vector<256x32xi32>
    %328 = arith.addi %326, %327 : vector<256x32xi32>
    %329 = arith.cmpi eq, %35, %328 : vector<256x32xi32>
    %cst_99 = arith.constant 1.000000e+00 : f32
    %cst_100 = arith.constant 0.000000e+00 : f32
    %330 = vector.broadcast %cst_99 : f32 to vector<256x32xf32>
    %331 = vector.broadcast %cst_100 : f32 to vector<256x32xf32>
    %332 = arith.select %329, %330, %331 : vector<256x32xi1>, vector<256x32xf32>
    %cst_101 = arith.constant dense<0.000000e+00> : vector<4x32xf32>
    %333 = tpu.matmul %295, %332, %cst_101 {dimension_numbers = #tpu.dot_dimension_numbers<[1], [0], [0], [1], [0, 0, 1, 1], [], []>} : vector<4x256xf32>, vector<256x32xf32>, vector<4x32xf32> -> vector<4x32xf32>
    %334 = arith.maximumf %324, %333 : vector<4x32xf32>
    %c8_i32_102 = arith.constant 8 : i32
    %335 = vector.broadcast %c8_i32_102 : i32 to vector<256x32xi32>
    %336 = arith.muli %36, %335 : vector<256x32xi32>
    %c4_i32 = arith.constant 4 : i32
    %337 = vector.broadcast %c4_i32 : i32 to vector<256x32xi32>
    %338 = arith.addi %336, %337 : vector<256x32xi32>
    %339 = arith.cmpi eq, %35, %338 : vector<256x32xi32>
    %cst_103 = arith.constant 1.000000e+00 : f32
    %cst_104 = arith.constant 0.000000e+00 : f32
    %340 = vector.broadcast %cst_103 : f32 to vector<256x32xf32>
    %341 = vector.broadcast %cst_104 : f32 to vector<256x32xf32>
    %342 = arith.select %339, %340, %341 : vector<256x32xi1>, vector<256x32xf32>
    %cst_105 = arith.constant dense<0.000000e+00> : vector<4x32xf32>
    %343 = tpu.matmul %295, %342, %cst_105 {dimension_numbers = #tpu.dot_dimension_numbers<[1], [0], [0], [1], [0, 0, 1, 1], [], []>} : vector<4x256xf32>, vector<256x32xf32>, vector<4x32xf32> -> vector<4x32xf32>
    %344 = arith.maximumf %334, %343 : vector<4x32xf32>
    %c8_i32_106 = arith.constant 8 : i32
    %345 = vector.broadcast %c8_i32_106 : i32 to vector<256x32xi32>
    %346 = arith.muli %36, %345 : vector<256x32xi32>
    %c5_i32 = arith.constant 5 : i32
    %347 = vector.broadcast %c5_i32 : i32 to vector<256x32xi32>
    %348 = arith.addi %346, %347 : vector<256x32xi32>
    %349 = arith.cmpi eq, %35, %348 : vector<256x32xi32>
    %cst_107 = arith.constant 1.000000e+00 : f32
    %cst_108 = arith.constant 0.000000e+00 : f32
    %350 = vector.broadcast %cst_107 : f32 to vector<256x32xf32>
    %351 = vector.broadcast %cst_108 : f32 to vector<256x32xf32>
    %352 = arith.select %349, %350, %351 : vector<256x32xi1>, vector<256x32xf32>
    %cst_109 = arith.constant dense<0.000000e+00> : vector<4x32xf32>
    %353 = tpu.matmul %295, %352, %cst_109 {dimension_numbers = #tpu.dot_dimension_numbers<[1], [0], [0], [1], [0, 0, 1, 1], [], []>} : vector<4x256xf32>, vector<256x32xf32>, vector<4x32xf32> -> vector<4x32xf32>
    %354 = arith.maximumf %344, %353 : vector<4x32xf32>
    %c8_i32_110 = arith.constant 8 : i32
    %355 = vector.broadcast %c8_i32_110 : i32 to vector<256x32xi32>
    %356 = arith.muli %36, %355 : vector<256x32xi32>
    %c6_i32 = arith.constant 6 : i32
    %357 = vector.broadcast %c6_i32 : i32 to vector<256x32xi32>
    %358 = arith.addi %356, %357 : vector<256x32xi32>
    %359 = arith.cmpi eq, %35, %358 : vector<256x32xi32>
    %cst_111 = arith.constant 1.000000e+00 : f32
    %cst_112 = arith.constant 0.000000e+00 : f32
    %360 = vector.broadcast %cst_111 : f32 to vector<256x32xf32>
    %361 = vector.broadcast %cst_112 : f32 to vector<256x32xf32>
    %362 = arith.select %359, %360, %361 : vector<256x32xi1>, vector<256x32xf32>
    %cst_113 = arith.constant dense<0.000000e+00> : vector<4x32xf32>
    %363 = tpu.matmul %295, %362, %cst_113 {dimension_numbers = #tpu.dot_dimension_numbers<[1], [0], [0], [1], [0, 0, 1, 1], [], []>} : vector<4x256xf32>, vector<256x32xf32>, vector<4x32xf32> -> vector<4x32xf32>
    %364 = arith.maximumf %354, %363 : vector<4x32xf32>
    %c8_i32_114 = arith.constant 8 : i32
    %365 = vector.broadcast %c8_i32_114 : i32 to vector<256x32xi32>
    %366 = arith.muli %36, %365 : vector<256x32xi32>
    %c7_i32_115 = arith.constant 7 : i32
    %367 = vector.broadcast %c7_i32_115 : i32 to vector<256x32xi32>
    %368 = arith.addi %366, %367 : vector<256x32xi32>
    %369 = arith.cmpi eq, %35, %368 : vector<256x32xi32>
    %cst_116 = arith.constant 1.000000e+00 : f32
    %cst_117 = arith.constant 0.000000e+00 : f32
    %370 = vector.broadcast %cst_116 : f32 to vector<256x32xf32>
    %371 = vector.broadcast %cst_117 : f32 to vector<256x32xf32>
    %372 = arith.select %369, %370, %371 : vector<256x32xi1>, vector<256x32xf32>
    %cst_118 = arith.constant dense<0.000000e+00> : vector<4x32xf32>
    %373 = tpu.matmul %295, %372, %cst_118 {dimension_numbers = #tpu.dot_dimension_numbers<[1], [0], [0], [1], [0, 0, 1, 1], [], []>} : vector<4x256xf32>, vector<256x32xf32>, vector<4x32xf32> -> vector<4x32xf32>
    %374 = arith.maximumf %364, %373 : vector<4x32xf32>
    %c0_119 = arith.constant 0 : index
    %c0_120 = arith.constant 0 : index
    %375 = vector.load %arg7[%c0_119, %c0_120] : memref<4x32xf32, #tpu.memory_space<vmem>>, vector<4x32xf32>
    tpu.vector_store %arg7[%c0_119, %c0_120], %374 {strides = array<i32>} : memref<4x32xf32, #tpu.memory_space<vmem>>, vector<4x32xf32>,
    %c2 = arith.constant 2 : index
    %c0_121 = arith.constant 0 : index
    %c0_122 = arith.constant 0 : index
    %376 = vector.load %arg1[%c2, %c0_121, %c0_122] : memref<3x4x4xf32, #tpu.memory_space<vmem>>, vector<1x4x4xf32>
    %377 = vector.shape_cast %376 : vector<1x4x4xf32> to vector<4x4xf32>
    %c2_123 = arith.constant 2 : index
    %c0_124 = arith.constant 0 : index
    %c0_125 = arith.constant 0 : index
    %378 = vector.load %arg2[%c2_123, %c0_124, %c0_125] : memref<3x4x1xf32, #tpu.memory_space<vmem>>, vector<1x4x1xf32>
    %379 = vector.shape_cast %378 : vector<1x4x1xf32> to vector<4x1xf32>
    %c2_126 = arith.constant 2 : index
    %c0_127 = arith.constant 0 : index
    %c0_128 = arith.constant 0 : index
    %380 = vector.load %arg3[%c2_126, %c0_127, %c0_128] : memref<3x4x1xf32, #tpu.memory_space<vmem>>, vector<1x4x1xf32>
    %381 = vector.shape_cast %380 : vector<1x4x1xf32> to vector<4x1xf32>
    %c2_129 = arith.constant 2 : index
    %c0_130 = arith.constant 0 : index
    %c0_131 = arith.constant 0 : index
    %382 = vector.load %arg4[%c2_129, %c0_130, %c0_131] : memref<3x48x16xf32, #tpu.memory_space<vmem>>, vector<1x48x16xf32>
    %383 = vector.shape_cast %382 : vector<1x48x16xf32> to vector<48x16xf32>
    %c2_132 = arith.constant 2 : index
    %c0_133 = arith.constant 0 : index
    %c0_134 = arith.constant 0 : index
    %384 = vector.load %arg5[%c2_132, %c0_133, %c0_134] : memref<3x4x16xf32, #tpu.memory_space<vmem>>, vector<1x4x16xf32>
    %385 = vector.shape_cast %384 : vector<1x4x16xf32> to vector<4x16xf32>
    %c2_135 = arith.constant 2 : index
    %c0_136 = arith.constant 0 : index
    %c0_137 = arith.constant 0 : index
    %386 = vector.load %arg6[%c2_135, %c0_136, %c0_137] : memref<3x4x16xf32, #tpu.memory_space<vmem>>, vector<1x4x16xf32>
    %387 = vector.shape_cast %386 : vector<1x4x16xf32> to vector<4x16xf32>
    %cst_138 = arith.constant dense<0.000000e+00> : vector<4x256xf32>
    %388 = tpu.matmul %377, %166, %cst_138 {dimension_numbers = #tpu.dot_dimension_numbers<[1], [0], [0], [1], [0, 0, 1, 1], [], []>} : vector<4x4xf32>, vector<4x256xf32>, vector<4x256xf32> -> vector<4x256xf32>
    %cst_139 = arith.constant dense<0.000000e+00> : vector<4xf32>
    %389 = vector.multi_reduction <add>, %388, %cst_139 [1] : vector<4x256xf32> to vector<4xf32>
    %390 = vector.shape_cast %389 : vector<4xf32> to vector<4x1xf32>
    %391 = arith.mulf %388, %388 : vector<4x256xf32>
    %cst_140 = arith.constant dense<0.000000e+00> : vector<4xf32>
    %392 = vector.multi_reduction <add>, %391, %cst_140 [1] : vector<4x256xf32> to vector<4xf32>
    %393 = vector.shape_cast %392 : vector<4xf32> to vector<4x1xf32>
    %cst_141 = arith.constant 3.906250e-03 : f32
    %394 = vector.broadcast %cst_141 : f32 to vector<4x1xf32>
    %395 = arith.mulf %390, %394 : vector<4x1xf32>
    %cst_142 = arith.constant 3.906250e-03 : f32
    %396 = vector.broadcast %cst_142 : f32 to vector<4x1xf32>
    %397 = arith.mulf %393, %396 : vector<4x1xf32>
    %398 = arith.mulf %395, %395 : vector<4x1xf32>
    %399 = arith.subf %397, %398 : vector<4x1xf32>
    %cst_143 = arith.constant 0.000000e+00 : f32
    %400 = vector.broadcast %cst_143 : f32 to vector<4x1xf32>
    %401 = arith.maximumf %399, %400 : vector<4x1xf32>
    %cst_144 = arith.constant 9.99999974E-6 : f32
    %402 = vector.broadcast %cst_144 : f32 to vector<4x1xf32>
    %403 = arith.addf %401, %402 : vector<4x1xf32>
    %404 = math.rsqrt %403 : vector<4x1xf32>
    %405 = arith.mulf %379, %404 : vector<4x1xf32>
    %406 = vector.broadcast %405 : vector<4x1xf32> to vector<4x256xf32>
    %407 = arith.mulf %388, %406 : vector<4x256xf32>
    %408 = arith.mulf %395, %405 : vector<4x1xf32>
    %409 = arith.subf %381, %408 : vector<4x1xf32>
    %410 = vector.broadcast %409 : vector<4x1xf32> to vector<4x256xf32>
    %411 = arith.addf %407, %410 : vector<4x256xf32>
    %c1_i32_145 = arith.constant 1 : i32
    %412 = tpu.dynamic_rotate %411 by %c1_i32_145 dim 1 : vector<4x256xf32>, i32 -> vector<4x256xf32>
    %cst_146 = arith.constant 0.000000e+00 : f32
    %413 = vector.shape_cast %32 : vector<1x256xi1> to vector<1x256xi1>
    %414 = vector.broadcast %413 : vector<1x256xi1> to vector<4x256xi1>
    %415 = vector.broadcast %cst_146 : f32 to vector<4x256xf32>
    %416 = arith.select %414, %415, %412 : vector<4x256xi1>, vector<4x256xf32>
    %c255_i32_147 = arith.constant 255 : i32
    %417 = tpu.dynamic_rotate %411 by %c255_i32_147 dim 1 : vector<4x256xf32>, i32 -> vector<4x256xf32>
    %cst_148 = arith.constant 0.000000e+00 : f32
    %418 = vector.shape_cast %34 : vector<1x256xi1> to vector<1x256xi1>
    %419 = vector.broadcast %418 : vector<1x256xi1> to vector<4x256xi1>
    %420 = vector.broadcast %cst_148 : f32 to vector<4x256xf32>
    %421 = arith.select %419, %420, %417 : vector<4x256xi1>, vector<4x256xf32>
    %cst_149 = arith.constant dense<0.000000e+00> : vector<48x256xf32>
    %422 = tpu.matmul %383, %27, %cst_149 {dimension_numbers = #tpu.dot_dimension_numbers<[1], [0], [0], [1], [0, 0, 1, 1], [], []>} : vector<48x16xf32>, vector<16x256xf32>, vector<48x256xf32> -> vector<48x256xf32>
    %cst_150 = arith.constant 0.000000e+00 : f32
    %423 = vector.broadcast %cst_150 : f32 to vector<4x256xf32>
    %424 = vector.extract_strided_slice %422 {offsets = [0, 0], sizes = [4, 256], strides = [1, 1]} : vector<48x256xf32> to vector<4x256xf32>
    %425 = vector.extract_strided_slice %416 {offsets = [0, 0], sizes = [1, 256], strides = [1, 1]} : vector<4x256xf32> to vector<1x256xf32>
    %426 = vector.broadcast %425 : vector<1x256xf32> to vector<4x256xf32>
    %427 = arith.mulf %424, %426 : vector<4x256xf32>
    %428 = arith.addf %423, %427 : vector<4x256xf32>
    %429 = vector.extract_strided_slice %422 {offsets = [4, 0], sizes = [4, 256], strides = [1, 1]} : vector<48x256xf32> to vector<4x256xf32>
    %430 = vector.extract_strided_slice %416 {offsets = [1, 0], sizes = [1, 256], strides = [1, 1]} : vector<4x256xf32> to vector<1x256xf32>
    %431 = vector.broadcast %430 : vector<1x256xf32> to vector<4x256xf32>
    %432 = arith.mulf %429, %431 : vector<4x256xf32>
    %433 = arith.addf %428, %432 : vector<4x256xf32>
    %434 = vector.extract_strided_slice %422 {offsets = [8, 0], sizes = [4, 256], strides = [1, 1]} : vector<48x256xf32> to vector<4x256xf32>
    %435 = vector.extract_strided_slice %416 {offsets = [2, 0], sizes = [1, 256], strides = [1, 1]} : vector<4x256xf32> to vector<1x256xf32>
    %436 = vector.broadcast %435 : vector<1x256xf32> to vector<4x256xf32>
    %437 = arith.mulf %434, %436 : vector<4x256xf32>
    %438 = arith.addf %433, %437 : vector<4x256xf32>
    %439 = vector.extract_strided_slice %422 {offsets = [12, 0], sizes = [4, 256], strides = [1, 1]} : vector<48x256xf32> to vector<4x256xf32>
    %440 = vector.extract_strided_slice %416 {offsets = [3, 0], sizes = [1, 256], strides = [1, 1]} : vector<4x256xf32> to vector<1x256xf32>
    %441 = vector.broadcast %440 : vector<1x256xf32> to vector<4x256xf32>
    %442 = arith.mulf %439, %441 : vector<4x256xf32>
    %443 = arith.addf %438, %442 : vector<4x256xf32>
    %444 = vector.extract_strided_slice %422 {offsets = [16, 0], sizes = [4, 256], strides = [1, 1]} : vector<48x256xf32> to vector<4x256xf32>
    %445 = vector.extract_strided_slice %411 {offsets = [0, 0], sizes = [1, 256], strides = [1, 1]} : vector<4x256xf32> to vector<1x256xf32>
    %446 = vector.broadcast %445 : vector<1x256xf32> to vector<4x256xf32>
    %447 = arith.mulf %444, %446 : vector<4x256xf32>
    %448 = arith.addf %443, %447 : vector<4x256xf32>
    %449 = vector.extract_strided_slice %422 {offsets = [20, 0], sizes = [4, 256], strides = [1, 1]} : vector<48x256xf32> to vector<4x256xf32>
    %450 = vector.extract_strided_slice %411 {offsets = [1, 0], sizes = [1, 256], strides = [1, 1]} : vector<4x256xf32> to vector<1x256xf32>
    %451 = vector.broadcast %450 : vector<1x256xf32> to vector<4x256xf32>
    %452 = arith.mulf %449, %451 : vector<4x256xf32>
    %453 = arith.addf %448, %452 : vector<4x256xf32>
    %454 = vector.extract_strided_slice %422 {offsets = [24, 0], sizes = [4, 256], strides = [1, 1]} : vector<48x256xf32> to vector<4x256xf32>
    %455 = vector.extract_strided_slice %411 {offsets = [2, 0], sizes = [1, 256], strides = [1, 1]} : vector<4x256xf32> to vector<1x256xf32>
    %456 = vector.broadcast %455 : vector<1x256xf32> to vector<4x256xf32>
    %457 = arith.mulf %454, %456 : vector<4x256xf32>
    %458 = arith.addf %453, %457 : vector<4x256xf32>
    %459 = vector.extract_strided_slice %422 {offsets = [28, 0], sizes = [4, 256], strides = [1, 1]} : vector<48x256xf32> to vector<4x256xf32>
    %460 = vector.extract_strided_slice %411 {offsets = [3, 0], sizes = [1, 256], strides = [1, 1]} : vector<4x256xf32> to vector<1x256xf32>
    %461 = vector.broadcast %460 : vector<1x256xf32> to vector<4x256xf32>
    %462 = arith.mulf %459, %461 : vector<4x256xf32>
    %463 = arith.addf %458, %462 : vector<4x256xf32>
    %464 = vector.extract_strided_slice %422 {offsets = [32, 0], sizes = [4, 256], strides = [1, 1]} : vector<48x256xf32> to vector<4x256xf32>
    %465 = vector.extract_strided_slice %421 {offsets = [0, 0], sizes = [1, 256], strides = [1, 1]} : vector<4x256xf32> to vector<1x256xf32>
    %466 = vector.broadcast %465 : vector<1x256xf32> to vector<4x256xf32>
    %467 = arith.mulf %464, %466 : vector<4x256xf32>
    %468 = arith.addf %463, %467 : vector<4x256xf32>
    %469 = vector.extract_strided_slice %422 {offsets = [36, 0], sizes = [4, 256], strides = [1, 1]} : vector<48x256xf32> to vector<4x256xf32>
    %470 = vector.extract_strided_slice %421 {offsets = [1, 0], sizes = [1, 256], strides = [1, 1]} : vector<4x256xf32> to vector<1x256xf32>
    %471 = vector.broadcast %470 : vector<1x256xf32> to vector<4x256xf32>
    %472 = arith.mulf %469, %471 : vector<4x256xf32>
    %473 = arith.addf %468, %472 : vector<4x256xf32>
    %474 = vector.extract_strided_slice %422 {offsets = [40, 0], sizes = [4, 256], strides = [1, 1]} : vector<48x256xf32> to vector<4x256xf32>
    %475 = vector.extract_strided_slice %421 {offsets = [2, 0], sizes = [1, 256], strides = [1, 1]} : vector<4x256xf32> to vector<1x256xf32>
    %476 = vector.broadcast %475 : vector<1x256xf32> to vector<4x256xf32>
    %477 = arith.mulf %474, %476 : vector<4x256xf32>
    %478 = arith.addf %473, %477 : vector<4x256xf32>
    %479 = vector.extract_strided_slice %422 {offsets = [44, 0], sizes = [4, 256], strides = [1, 1]} : vector<48x256xf32> to vector<4x256xf32>
    %480 = vector.extract_strided_slice %421 {offsets = [3, 0], sizes = [1, 256], strides = [1, 1]} : vector<4x256xf32> to vector<1x256xf32>
    %481 = vector.broadcast %480 : vector<1x256xf32> to vector<4x256xf32>
    %482 = arith.mulf %479, %481 : vector<4x256xf32>
    %483 = arith.addf %478, %482 : vector<4x256xf32>
    %cst_151 = arith.constant dense<0.000000e+00> : vector<4x16xf32>
    %484 = tpu.matmul %483, %13, %cst_151 {dimension_numbers = #tpu.dot_dimension_numbers<[1], [0], [0], [1], [0, 0, 1, 1], [], []>} : vector<4x256xf32>, vector<256x16xf32>, vector<4x16xf32> -> vector<4x16xf32>
    %485 = arith.mulf %483, %483 : vector<4x256xf32>
    %cst_152 = arith.constant dense<0.000000e+00> : vector<4x16xf32>
    %486 = tpu.matmul %485, %13, %cst_152 {dimension_numbers = #tpu.dot_dimension_numbers<[1], [0], [0], [1], [0, 0, 1, 1], [], []>} : vector<4x256xf32>, vector<256x16xf32>, vector<4x16xf32> -> vector<4x16xf32>
    %cst_153 = arith.constant 6.250000e-02 : f32
    %487 = vector.broadcast %cst_153 : f32 to vector<4x16xf32>
    %488 = arith.mulf %484, %487 : vector<4x16xf32>
    %cst_154 = arith.constant 6.250000e-02 : f32
    %489 = vector.broadcast %cst_154 : f32 to vector<4x16xf32>
    %490 = arith.mulf %486, %489 : vector<4x16xf32>
    %491 = arith.mulf %488, %488 : vector<4x16xf32>
    %492 = arith.subf %490, %491 : vector<4x16xf32>
    %cst_155 = arith.constant 0.000000e+00 : f32
    %493 = vector.broadcast %cst_155 : f32 to vector<4x16xf32>
    %494 = arith.maximumf %492, %493 : vector<4x16xf32>
    %cst_156 = arith.constant 9.99999974E-6 : f32
    %495 = vector.broadcast %cst_156 : f32 to vector<4x16xf32>
    %496 = arith.addf %494, %495 : vector<4x16xf32>
    %497 = math.rsqrt %496 : vector<4x16xf32>
    %498 = arith.mulf %385, %497 : vector<4x16xf32>
    %499 = arith.mulf %488, %498 : vector<4x16xf32>
    %500 = arith.subf %387, %499 : vector<4x16xf32>
    %cst_157 = arith.constant dense<0.000000e+00> : vector<4x256xf32>
    %501 = tpu.matmul %498, %27, %cst_157 {dimension_numbers = #tpu.dot_dimension_numbers<[1], [0], [0], [1], [0, 0, 1, 1], [], []>} : vector<4x16xf32>, vector<16x256xf32>, vector<4x256xf32> -> vector<4x256xf32>
    %502 = arith.mulf %483, %501 : vector<4x256xf32>
    %cst_158 = arith.constant dense<0.000000e+00> : vector<4x256xf32>
    %503 = tpu.matmul %500, %27, %cst_158 {dimension_numbers = #tpu.dot_dimension_numbers<[1], [0], [0], [1], [0, 0, 1, 1], [], []>} : vector<4x16xf32>, vector<16x256xf32>, vector<4x256xf32> -> vector<4x256xf32>
    %504 = arith.addf %502, %503 : vector<4x256xf32>
    %c8_i32_159 = arith.constant 8 : i32
    %505 = vector.broadcast %c8_i32_159 : i32 to vector<256x32xi32>
    %506 = arith.muli %36, %505 : vector<256x32xi32>
    %c0_i32_160 = arith.constant 0 : i32
    %507 = vector.broadcast %c0_i32_160 : i32 to vector<256x32xi32>
    %508 = arith.addi %506, %507 : vector<256x32xi32>
    %509 = arith.cmpi eq, %35, %508 : vector<256x32xi32>
    %cst_161 = arith.constant 1.000000e+00 : f32
    %cst_162 = arith.constant 0.000000e+00 : f32
    %510 = vector.broadcast %cst_161 : f32 to vector<256x32xf32>
    %511 = vector.broadcast %cst_162 : f32 to vector<256x32xf32>
    %512 = arith.select %509, %510, %511 : vector<256x32xi1>, vector<256x32xf32>
    %cst_163 = arith.constant dense<0.000000e+00> : vector<4x32xf32>
    %513 = tpu.matmul %504, %512, %cst_163 {dimension_numbers = #tpu.dot_dimension_numbers<[1], [0], [0], [1], [0, 0, 1, 1], [], []>} : vector<4x256xf32>, vector<256x32xf32>, vector<4x32xf32> -> vector<4x32xf32>
    %c8_i32_164 = arith.constant 8 : i32
    %514 = vector.broadcast %c8_i32_164 : i32 to vector<256x32xi32>
    %515 = arith.muli %36, %514 : vector<256x32xi32>
    %c1_i32_165 = arith.constant 1 : i32
    %516 = vector.broadcast %c1_i32_165 : i32 to vector<256x32xi32>
    %517 = arith.addi %515, %516 : vector<256x32xi32>
    %518 = arith.cmpi eq, %35, %517 : vector<256x32xi32>
    %cst_166 = arith.constant 1.000000e+00 : f32
    %cst_167 = arith.constant 0.000000e+00 : f32
    %519 = vector.broadcast %cst_166 : f32 to vector<256x32xf32>
    %520 = vector.broadcast %cst_167 : f32 to vector<256x32xf32>
    %521 = arith.select %518, %519, %520 : vector<256x32xi1>, vector<256x32xf32>
    %cst_168 = arith.constant dense<0.000000e+00> : vector<4x32xf32>
    %522 = tpu.matmul %504, %521, %cst_168 {dimension_numbers = #tpu.dot_dimension_numbers<[1], [0], [0], [1], [0, 0, 1, 1], [], []>} : vector<4x256xf32>, vector<256x32xf32>, vector<4x32xf32> -> vector<4x32xf32>
    %523 = arith.maximumf %513, %522 : vector<4x32xf32>
    %c8_i32_169 = arith.constant 8 : i32
    %524 = vector.broadcast %c8_i32_169 : i32 to vector<256x32xi32>
    %525 = arith.muli %36, %524 : vector<256x32xi32>
    %c2_i32_170 = arith.constant 2 : i32
    %526 = vector.broadcast %c2_i32_170 : i32 to vector<256x32xi32>
    %527 = arith.addi %525, %526 : vector<256x32xi32>
    %528 = arith.cmpi eq, %35, %527 : vector<256x32xi32>
    %cst_171 = arith.constant 1.000000e+00 : f32
    %cst_172 = arith.constant 0.000000e+00 : f32
    %529 = vector.broadcast %cst_171 : f32 to vector<256x32xf32>
    %530 = vector.broadcast %cst_172 : f32 to vector<256x32xf32>
    %531 = arith.select %528, %529, %530 : vector<256x32xi1>, vector<256x32xf32>
    %cst_173 = arith.constant dense<0.000000e+00> : vector<4x32xf32>
    %532 = tpu.matmul %504, %531, %cst_173 {dimension_numbers = #tpu.dot_dimension_numbers<[1], [0], [0], [1], [0, 0, 1, 1], [], []>} : vector<4x256xf32>, vector<256x32xf32>, vector<4x32xf32> -> vector<4x32xf32>
    %533 = arith.maximumf %523, %532 : vector<4x32xf32>
    %c8_i32_174 = arith.constant 8 : i32
    %534 = vector.broadcast %c8_i32_174 : i32 to vector<256x32xi32>
    %535 = arith.muli %36, %534 : vector<256x32xi32>
    %c3_i32_175 = arith.constant 3 : i32
    %536 = vector.broadcast %c3_i32_175 : i32 to vector<256x32xi32>
    %537 = arith.addi %535, %536 : vector<256x32xi32>
    %538 = arith.cmpi eq, %35, %537 : vector<256x32xi32>
    %cst_176 = arith.constant 1.000000e+00 : f32
    %cst_177 = arith.constant 0.000000e+00 : f32
    %539 = vector.broadcast %cst_176 : f32 to vector<256x32xf32>
    %540 = vector.broadcast %cst_177 : f32 to vector<256x32xf32>
    %541 = arith.select %538, %539, %540 : vector<256x32xi1>, vector<256x32xf32>
    %cst_178 = arith.constant dense<0.000000e+00> : vector<4x32xf32>
    %542 = tpu.matmul %504, %541, %cst_178 {dimension_numbers = #tpu.dot_dimension_numbers<[1], [0], [0], [1], [0, 0, 1, 1], [], []>} : vector<4x256xf32>, vector<256x32xf32>, vector<4x32xf32> -> vector<4x32xf32>
    %543 = arith.maximumf %533, %542 : vector<4x32xf32>
    %c8_i32_179 = arith.constant 8 : i32
    %544 = vector.broadcast %c8_i32_179 : i32 to vector<256x32xi32>
    %545 = arith.muli %36, %544 : vector<256x32xi32>
    %c4_i32_180 = arith.constant 4 : i32
    %546 = vector.broadcast %c4_i32_180 : i32 to vector<256x32xi32>
    %547 = arith.addi %545, %546 : vector<256x32xi32>
    %548 = arith.cmpi eq, %35, %547 : vector<256x32xi32>
    %cst_181 = arith.constant 1.000000e+00 : f32
    %cst_182 = arith.constant 0.000000e+00 : f32
    %549 = vector.broadcast %cst_181 : f32 to vector<256x32xf32>
    %550 = vector.broadcast %cst_182 : f32 to vector<256x32xf32>
    %551 = arith.select %548, %549, %550 : vector<256x32xi1>, vector<256x32xf32>
    %cst_183 = arith.constant dense<0.000000e+00> : vector<4x32xf32>
    %552 = tpu.matmul %504, %551, %cst_183 {dimension_numbers = #tpu.dot_dimension_numbers<[1], [0], [0], [1], [0, 0, 1, 1], [], []>} : vector<4x256xf32>, vector<256x32xf32>, vector<4x32xf32> -> vector<4x32xf32>
    %553 = arith.maximumf %543, %552 : vector<4x32xf32>
    %c8_i32_184 = arith.constant 8 : i32
    %554 = vector.broadcast %c8_i32_184 : i32 to vector<256x32xi32>
    %555 = arith.muli %36, %554 : vector<256x32xi32>
    %c5_i32_185 = arith.constant 5 : i32
    %556 = vector.broadcast %c5_i32_185 : i32 to vector<256x32xi32>
    %557 = arith.addi %555, %556 : vector<256x32xi32>
    %558 = arith.cmpi eq, %35, %557 : vector<256x32xi32>
    %cst_186 = arith.constant 1.000000e+00 : f32
    %cst_187 = arith.constant 0.000000e+00 : f32
    %559 = vector.broadcast %cst_186 : f32 to vector<256x32xf32>
    %560 = vector.broadcast %cst_187 : f32 to vector<256x32xf32>
    %561 = arith.select %558, %559, %560 : vector<256x32xi1>, vector<256x32xf32>
    %cst_188 = arith.constant dense<0.000000e+00> : vector<4x32xf32>
    %562 = tpu.matmul %504, %561, %cst_188 {dimension_numbers = #tpu.dot_dimension_numbers<[1], [0], [0], [1], [0, 0, 1, 1], [], []>} : vector<4x256xf32>, vector<256x32xf32>, vector<4x32xf32> -> vector<4x32xf32>
    %563 = arith.maximumf %553, %562 : vector<4x32xf32>
    %c8_i32_189 = arith.constant 8 : i32
    %564 = vector.broadcast %c8_i32_189 : i32 to vector<256x32xi32>
    %565 = arith.muli %36, %564 : vector<256x32xi32>
    %c6_i32_190 = arith.constant 6 : i32
    %566 = vector.broadcast %c6_i32_190 : i32 to vector<256x32xi32>
    %567 = arith.addi %565, %566 : vector<256x32xi32>
    %568 = arith.cmpi eq, %35, %567 : vector<256x32xi32>
    %cst_191 = arith.constant 1.000000e+00 : f32
    %cst_192 = arith.constant 0.000000e+00 : f32
    %569 = vector.broadcast %cst_191 : f32 to vector<256x32xf32>
    %570 = vector.broadcast %cst_192 : f32 to vector<256x32xf32>
    %571 = arith.select %568, %569, %570 : vector<256x32xi1>, vector<256x32xf32>
    %cst_193 = arith.constant dense<0.000000e+00> : vector<4x32xf32>
    %572 = tpu.matmul %504, %571, %cst_193 {dimension_numbers = #tpu.dot_dimension_numbers<[1], [0], [0], [1], [0, 0, 1, 1], [], []>} : vector<4x256xf32>, vector<256x32xf32>, vector<4x32xf32> -> vector<4x32xf32>
    %573 = arith.maximumf %563, %572 : vector<4x32xf32>
    %c8_i32_194 = arith.constant 8 : i32
    %574 = vector.broadcast %c8_i32_194 : i32 to vector<256x32xi32>
    %575 = arith.muli %36, %574 : vector<256x32xi32>
    %c7_i32_195 = arith.constant 7 : i32
    %576 = vector.broadcast %c7_i32_195 : i32 to vector<256x32xi32>
    %577 = arith.addi %575, %576 : vector<256x32xi32>
    %578 = arith.cmpi eq, %35, %577 : vector<256x32xi32>
    %cst_196 = arith.constant 1.000000e+00 : f32
    %cst_197 = arith.constant 0.000000e+00 : f32
    %579 = vector.broadcast %cst_196 : f32 to vector<256x32xf32>
    %580 = vector.broadcast %cst_197 : f32 to vector<256x32xf32>
    %581 = arith.select %578, %579, %580 : vector<256x32xi1>, vector<256x32xf32>
    %cst_198 = arith.constant dense<0.000000e+00> : vector<4x32xf32>
    %582 = tpu.matmul %504, %581, %cst_198 {dimension_numbers = #tpu.dot_dimension_numbers<[1], [0], [0], [1], [0, 0, 1, 1], [], []>} : vector<4x256xf32>, vector<256x32xf32>, vector<4x32xf32> -> vector<4x32xf32>
    %583 = arith.maximumf %573, %582 : vector<4x32xf32>
    %c0_199 = arith.constant 0 : index
    %c0_200 = arith.constant 0 : index
    %584 = vector.load %arg8[%c0_199, %c0_200] : memref<4x32xf32, #tpu.memory_space<vmem>>, vector<4x32xf32>
    tpu.vector_store %arg8[%c0_199, %c0_200], %583 {strides = array<i32>} : memref<4x32xf32, #tpu.memory_space<vmem>>, vector<4x32xf32>,
    return
  }
}

</mosaic_0001>

<bundles_post_ra>
// kernel: st_decoupe_forward.1
= control target key start
LH: loop header
LB: loop body
LE: loop exit
PB: predicated region body
PF: predicated region fallthrough
CT: control target
= control target key end

     0   :  { %vm7995_vm0 = vcmask 1043456   ;;  %vm7994_vm1 = vcmask 31744   ;;  %v28_v14 = vlaneseq  ;;  %v8456_v22 = vmov 0  ;;  %s3793_s24 = smov 127   ;;  %s3794_s25 = smov 1   ;;  %s7985_s0 = inlined_call_operand.vmem [shape: f32[4,256], index: 0, kind: input, shape index: {}]   ;;  %s7986_s1 = inlined_call_operand.vmem [shape: f32[3,4,4], index: 1, kind: input, shape index: {}]   ;;  %s7987_s4 = inlined_call_operand.vmem [shape: f32[3,48,16], index: 4, kind: input, shape index: {}]   ;;  %s7988_s2 = inlined_call_operand.vmem [shape: f32[3,4,1], index: 2, kind: input, shape index: {}]   ;;  %s7989_s3 = inlined_call_operand.vmem [shape: f32[3,4,1], index: 3, kind: input, shape index: {}]   ;;  %s7990_s5 = inlined_call_operand.vmem [shape: f32[3,4,16], index: 5, kind: input, shape index: {}]   ;;  %s7991_s6 = inlined_call_operand.vmem [shape: f32[3,4,16], index: 6, kind: input, shape index: {}]   ;;  %s7992_s7 = inlined_call_operand.vmem [shape: f32[4,32], index: 7, kind: output, shape index: {0}]   ;;  %s7993_s8 = inlined_call_operand.vmem [shape: f32[4,32], index: 8, kind: output, shape index: {1}]  }
   0x1   :  { %v220_v0 = vld [vmem:[%s7985_s0] sm:$0xff]  ;;  %v8131_v23 = vmov 1.0   ;;  %v8458_v24 = vmov 0  ;;  %vm7996_vm12 = vcmask 130048   ;;  %v8460_v27 = vmov 0  ;;  %v225_v29 = vld [vmem:[%s7987_s4 + $0x8] sm:$0xff] }
   0x2   :  { %233 = vst [vmem:[#allocation1] ss:$2 sm:$0xff] %v220_v0  ;;  %v221_v1 = vld [vmem:[%s7986_s1] sm:$0xf]  ;;  %v3864_v15 = vshrl.u32 %v28_v14, 7  ;;  %v3869_v17 = vand.u32 127, %v28_v14 }
   0x3   :  { %v224_v26 = vld [vmem:[%s7987_s4] sm:$0xff]  ;;  %v8462_v28 = vmov 0  ;;  %v226_v30 = vld [vmem:[%s7987_s4 + $0x10] sm:$0xff]  ;;  %v3792_v31 = vmov 0   ;;  %v227_v32 = vld [vmem:[%s7987_s4 + $0x18] sm:$0xff]  ;;  %v8483_v14 = vmov 0 }
   0x4   :  { %8453 = vst [vmem:[#allocation2_spill] sm:$0xff] %v3864_v15  ;;  %v3867_v16 = vadd.s32 8, %v3864_v15  ;;  %v3873_v20 = vadd.s32 128, %v3869_v17  ;;  %v194_v21 = vmul.u32 16, %v3864_v15  ;;  %3777 = vset.pattern.permute.xlu1 %v3792_v31  ;;  %3778 = vset.pattern.permute.xlu0 %v3792_v31  ;;  %v222_v46 = vld [vmem:[%s7988_s2] sm:$0xf] }
   0x5   :  { %8455 = vst [vmem:[#allocation4_spill] sm:$0xff] %v3869_v17  ;;  %v223_v51 = vld [vmem:[%s7989_s3] sm:$0xf]  ;;  %v229_v54 = vld [vmem:[%s7987_s4 + $0x28] sm:$0xff]  ;;  %v3963_v61 = vmul.u32 16, %v3869_v17  ;;  %v3966_v62 = vadd.s32 120, %v3864_v15 }
   0x6   :  { %8454 = vst [vmem:[#allocation3_spill] sm:$0xff] %v3867_v16  ;;  %v195_v18 = vmul.u32 16, %v3867_v16  ;;  %vm196_vm8 = vcmp.ge.s32.totalorder %v3869_v17, %v194_v21  ;;  %v200_v25 = vadd.s32 16, %v194_v21  ;;  %vm197_vm9 = vcmp.ge.s32.totalorder %v3873_v20, %v194_v21  ;;  %v228_v53 = vld [vmem:[%s7987_s4 + $0x20] sm:$0xff] }
   0x7   :  { %8465 = vst [vmem:[#allocation6_spill] sm:$0xff] %v3966_v62  ;;  %v3969_v63 = vadd.s32 16, %v3963_v61  ;;  %v3972_v0 = vadd.s32 248, %v3864_v15  ;;  %v8487_v21 = vmov 0  ;;  %v4136_v31 = vadd.s32 72, %v3864_v15 }
   0x8   :  { %v201_v19 = vadd.s32 16, %v195_v18  ;;  %vm198_vm2 = vcmp.ge.s32.totalorder %v3869_v17, %v195_v18  ;;  %vm199_vm5 = vcmp.ge.s32.totalorder %v3873_v20, %v195_v18  ;;  %vm202_vm10 = vcmp.lt.s32.totalorder %v3869_v17, %v200_v25 }
   0x9   :  { %v234_v2 = vld.sshfl [vmem:[#allocation1] sm:$0xff pattern:$0x75316420]  ;;  %v235_v3 = vld.sshfl [vmem:[#allocation1 + $0x8] sm:$0xff pattern:$0x75316420]  ;;  %vm203_vm11 = vcmp.lt.s32.totalorder %v3873_v20, %v200_v25  ;;  %vm3901_vm13 = vmand %vm196_vm8, %vm202_vm10  ;;  %vm95_vm8 = vcmp.ge.s32.totalorder %v3972_v0, %v3963_v61 }
   0xa   :  { %2951 = vmatpush.msk.msra.mxu0 %vm7995_vm0, %v234_v2  ;;  %2953 = vmatpush.msk.msra.mxu1 %vm7995_vm0, %v235_v3  ;;  %vm204_vm3 = vcmp.lt.s32.totalorder %v3869_v17, %v201_v19  ;;  %vm205_vm6 = vcmp.lt.s32.totalorder %v3873_v20, %v201_v19  ;;  %v8461_v27 = vsel %vm3901_vm13, 4294967295, %v8460_v27  ;;  %vm3908_vm14 = vmand %vm197_vm9, %vm203_vm11  ;;  %8466 = vst [vmem:[#allocation7_spill] sm:$0xff] %v3972_v0  ;;  %v8469_v2 = vmov 0 }
   0xb   :  { %2952 = vmatmul.msk.f32.vlgmr.msra.gmra.mxu0 %vm7994_vm1, %v221_v1  ;;  %2954 = vmatmul.msk.f32.vlgmr.msra.gmra.mxu1 %vm7994_vm1, %v221_v1  ;;  %vm3878_vm4 = vmand %vm198_vm2, %vm204_vm3  ;;  %v8463_v28 = vsel %vm3908_vm14, 4294967295, %v8462_v28  ;;  %vm128_vm9 = vcmp.lt.s32.totalorder %v3972_v0, %v3969_v63  ;;  %v4003_v3 = vadd.s32 112, %v3864_v15  ;;  %v4083_v18 = vadd.s32 88, %v3864_v15  ;;  %8495 = vst [vmem:[#allocation18_spill] sm:$0xff] %v4136_v31 }
   0xc   :  { %v8457_v22 = vsel %vm3878_vm4, 4294967295, %v8456_v22  ;;  %2955 = vmatpush.msk.msra.mxu2 %vm3878_vm4, %v8131_v23  ;;  %vm3887_vm7 = vmand %vm199_vm5, %vm205_vm6  ;;  %8464 = vst [vmem:[#allocation5_spill] sm:$0xff] %v8463_v28  ;;  %vm79_vm5 = vcmp.ge.s32.totalorder %v3966_v62, %v3963_v61  ;;  %vm112_vm6 = vcmp.lt.s32.totalorder %v3966_v62, %v3969_v63  ;;  %v4086_v19 = vadd.s32 216, %v3864_v15 }
   0xd   :  { %v8459_v24 = vsel %vm3887_vm7, 4294967295, %v8458_v24  ;;  %2963 = vmatpush.msk.msra.mxu3 %vm3887_vm7, %v8131_v23  ;;  %vm3982_vm10 = vmand %vm79_vm5, %vm112_vm6  ;;  %8471 = vst [vmem:[#allocation8_spill] sm:$0xff] %v4003_v3  ;;  %v4099_v25 = vadd.s32 80, %v3864_v15 }
   0xe   :  { %2956 = vmatpush.msk.msra.mxu2 %vm3901_vm13, %v8131_v23  ;;  %2971 = vmatpush.msk.msrb.mxu0 %vm3982_vm10, %v8131_v23  ;;  %vm3989_vm11 = vmand %vm95_vm8, %vm128_vm9  ;;  %8485 = vst [vmem:[#allocation14_spill] sm:$0xff] %v4083_v18 }
   0xf   :  { %2964 = vmatpush.msk.msra.mxu3 %vm3908_vm14, %v8131_v23  ;;  %2957 = vmatmul.msk.f32.vlgmr.msra.gmra.mxu2 %vm7996_vm12, %v224_v26  ;;  %v8470_v2 = vsel %vm3989_vm11, 4294967295, %v8469_v2  ;;  %8486 = vst [vmem:[#allocation15_spill] sm:$0xff] %v4086_v19 }
  0x10   :  { %2965 = vmatmul.msk.f32.vlgmr.msra.gmra.mxu3 %vm7996_vm12, %v224_v26  ;;  %3003 = vmatpush.msk.msrb.mxu2 %vm3982_vm10, %v8131_v23  ;;  %8489 = vst [vmem:[#allocation16_spill] sm:$0xff] %v4099_v25  ;;  %v4102_v26 = vadd.s32 208, %v3864_v15 }
  0x11   :  { %2987 = vmatpush.msk.msrb.mxu1 %vm3989_vm11, %v8131_v23  ;;  %3019 = vmatpush.msk.msrb.mxu3 %vm3989_vm11, %v8131_v23 }
  0x12   :  { %8490 = vst [vmem:[#allocation17_spill] sm:$0xff] %v4102_v26 }
  0x17   :  { %2958 = vmatmul.msk.f32.gmra.mxu2 %vm7996_vm12, %v225_v29 }
  0x18   :  { %2966 = vmatmul.msk.f32.gmra.mxu3 %vm7996_vm12, %v225_v29  ;;  %v8491_v29 = vmov 0 }
  0x1f   :  { %2959 = vmatmul.msk.f32.gmra.mxu2 %vm7996_vm12, %v226_v30 }
  0x20   :  { %2967 = vmatmul.msk.f32.gmra.mxu3 %vm7996_vm12, %v226_v30  ;;  %v8493_v30 = vmov 0 }
  0x27   :  { %2960 = vmatmul.msk.f32.gmra.mxu2 %vm7996_vm12, %v227_v32 }
  0x28   :  { %2968 = vmatmul.msk.f32.gmra.mxu3 %vm7996_vm12, %v227_v32  ;;  %v8496_v32 = vmov 0 }
  0x2f   :  { %2961 = vmatmul.msk.f32.gmra.mxu2 %vm7996_vm12, %v228_v53 }
  0x30   :  { %2969 = vmatmul.msk.f32.gmra.mxu3 %vm7996_vm12, %v228_v53  ;;  %v8535_v53 = vmov 0 }
  0x37   :  { %2962 = vmatmul.msk.f32.gmra.mxu2 %vm7996_vm12, %v229_v54 }
  0x38   :  { %2970 = vmatmul.msk.f32.gmra.mxu3 %vm7996_vm12, %v229_v54  ;;  %v8538_v54 = vmov 0 }
  0x88   :  { %v3850_v4 = vpop.f32.mrf.mxu0  ;;  %v3852_v5 = vpop.f32.mrf.mxu1 }
  0x89   :  { %v285_v6 = vsel %vm7995_vm0, %v3850_v4, 0.0  ;;  %v286_v7 = vsel %vm7995_vm0, %v3852_v5, 0.0  ;;  %v290_v9 = vmul.f32 %v3850_v4, %v3850_v4  ;;  %v291_v10 = vmul.f32 %v3852_v5, %v3852_v5 }
  0x8a   :  { %v287_v8 = vadd.f32 %v286_v7, %v285_v6  ;;  %v4021_v6 = vadd.s32 104, %v3864_v15  ;;  %v4024_v7 = vadd.s32 232, %v3864_v15 }
  0x8b   :  { %v292_v11 = vsel %vm7995_vm0, %v290_v9, 0.0  ;;  %v293_v12 = vsel %vm7995_vm0, %v291_v10, 0.0  ;;  %v4037_v9 = vadd.s32 96, %v3864_v15  ;;  %v4040_v10 = vadd.s32 224, %v3864_v15 }
  0x8c   :  { %288 = vadd.xlane.f32.xlu0 %v287_v8  ;;  %v294_v13 = vadd.f32 %v293_v12, %v292_v11  ;;  %8475 = vst [vmem:[#allocation10_spill] sm:$0xff] %v4021_v6  ;;  %v8477_v8 = vmov 0  ;;  %vm77_vm9 = vcmp.ge.s32.totalorder %v4021_v6, %v3963_v61 }
  0x8d   :  { %8476 = vst [vmem:[#allocation11_spill] sm:$0xff] %v4024_v7  ;;  %vm76_vm1 = vcmp.ge.s32.totalorder %v4037_v9, %v3963_v61  ;;  %vm109_vm0 = vcmp.lt.s32.totalorder %v4037_v9, %v3969_v63  ;;  %vm92_vm12 = vcmp.ge.s32.totalorder %v4040_v10, %v3963_v61 }
  0x8e   :  { %8479 = vst [vmem:[#allocation12_spill] sm:$0xff] %v4037_v9 }
  0x8f   :  { %8480 = vst [vmem:[#allocation13_spill] sm:$0xff] %v4040_v10 }
  0x92   :  { %v4042_v11 = vpop.f32.mrf.mxu2 }
  0x93   :  { %v4055_v12 = vpop.f32.mrf.mxu3 }
  0x94   :  { %295 = vadd.xlane.f32.xlu0 %v294_v13  ;;  %v8481_v13 = vmov 0 }
  0xff   :  { %v289_v33 = vpop.xlane.xlu0 %288 }
 0x100   :  { %v297_v34 = vmul.f32 0.00390625, %v289_v33  ;;  %v4151_v33 = vadd.s32 200, %v3864_v15 }
 0x102   :  { %v299_v36 = vmul.f32 %v297_v34, %v297_v34  ;;  %8498 = vst [vmem:[#allocation19_spill] sm:$0xff] %v4151_v33 }
 0x107   :  { %v296_v35 = vpop.xlane.xlu0 %295 }
 0x108   :  { %v298_v37 = vmul.f32 0.00390625, %v296_v35  ;;  %v4168_v35 = vadd.s32 64, %v3864_v15 }
 0x10a   :  { %v300_v38 = vsub.f32 %v298_v37, %v299_v36  ;;  %8501 = vst [vmem:[#allocation20_spill] sm:$0xff] %v4168_v35  ;;  %v4171_v36 = vadd.s32 192, %v3864_v15  ;;  %v8504_v37 = vmov 0 }
 0x10c   :  { %v301_v39 = vmax.f32 %v300_v38, 0.0  ;;  %8502 = vst [vmem:[#allocation21_spill] sm:$0xff] %v4171_v36  ;;  %v8507_v38 = vmov 0 }
 0x10e   :  { %v302_v40 = vadd.f32 1e-05, %v301_v39  ;;  %v4207_v39 = vadd.s32 56, %v3864_v15 }
 0x110   :  { %3779 = vrsqrt.f32 %v302_v40  ;;  %vm309_vm2 = vweird.f32 %v302_v40  ;;  %8510 = vst [vmem:[#allocation24_spill] sm:$0xff] %v4207_v39 }
 0x116   :  { %v3780_v41 = vpop.eup %3779 }
 0x117   :  { %v304_v42 = vmul.f32 %v3780_v41, %v302_v40  ;;  %vm310_vm15 = vweird.f32 %v3780_v41  ;;  %v4209_v40 = vpop.f32.mrf.mxu2 }
 0x118   :  { %vm311_vm3 = vmor %vm309_vm2, %vm310_vm15  ;;  %vm78_vm15 = vcmp.ge.s32.totalorder %v4003_v3, %v3963_v61  ;;  %vm111_vm2 = vcmp.lt.s32.totalorder %v4003_v3, %v3969_v63 }
 0x119   :  { %v305_v43 = vmul.f32 %v3780_v41, %v304_v42  ;;  %vm4016_vm6 = vmand %vm78_vm15, %vm111_vm2  ;;  %vm110_vm15 = vcmp.lt.s32.totalorder %v4021_v6, %v3969_v63  ;;  %vm93_vm2 = vcmp.ge.s32.totalorder %v4024_v7, %v3963_v61  ;;  %v4224_v42 = vadd.s32 184, %v3864_v15 }
 0x11a   :  { %2972 = vmatpush.msk.msrb.mxu0 %vm4016_vm6, %v8131_v23  ;;  %3004 = vmatpush.msk.msrb.mxu2 %vm4016_vm6, %v8131_v23 }
 0x11b   :  { %v306_v44 = vmul.f32 0.5, %v305_v43  ;;  %8514 = vst [vmem:[#allocation26_spill] sm:$0xff] %v4224_v42  ;;  %v4226_v43 = vpop.f32.mrf.mxu3 }
 0x11d   :  { %v307_v45 = vsub.f32 1.5, %v306_v44  ;;  %v8515_v44 = vmov 0 }
 0x11f   :  { %v308_v47 = vmul.f32 %v3780_v41, %v307_v45  ;;  %v8519_v45 = vmov 0 }
 0x121   :  { %v312_v48 = vsel %vm311_vm3, %v3780_v41, %v308_v47  ;;  %v8511_v41 = vmov 0  ;;  %v8523_v47 = vmov 0 }
 0x122   :  { %v313_v49 = vmul.f32 %v312_v48, %v222_v46  ;;  %v4260_v46 = vadd.s32 48, %v3864_v15  ;;  %v4273_v48 = vadd.s32 176, %v3864_v15 }
 0x124   :  { %316 = vperm.xlu1 %3777, %v313_v49   ;;  %v321_v50 = vmul.f32 %v313_v49, %v297_v34  ;;  %v8499_v34 = vmov 0  ;;  %8522 = vst [vmem:[#allocation29_spill] sm:$0xff] %v4260_v46  ;;  %v8527_v49 = vmov 0 }
 0x125   :  { %8526 = vst [vmem:[#allocation31_spill] sm:$0xff] %v4273_v48 }
 0x126   :  { %v322_v52 = vsub.f32 %v223_v51, %v321_v50  ;;  %v8530_v50 = vmov 0  ;;  %v4304_v51 = vadd.s32 40, %v3864_v15 }
 0x128   :  { %8533 = vst [vmem:[#allocation34_spill] sm:$0xff] %v4304_v51 }
 0x12c   :  { %325 = vperm.xlu1 %3777, %v322_v52   ;;  %v4307_v52 = vadd.s32 168, %v3864_v15 }
 0x12e   :  { %8534 = vst [vmem:[#allocation35_spill] sm:$0xff] %v4307_v52 }
 0x196   :  { %v317_v55 = vpop.permute.xlu1 %316 }
 0x197   :  { %v319_v56 = vmul.f32 %v317_v55, %v3850_v4  ;;  %v320_v57 = vmul.f32 %v317_v55, %v3852_v5  ;;  %v4006_v4 = vadd.s32 240, %v3864_v15  ;;  %v8473_v5 = vmov 0 }
 0x198   :  { %v8474_v5 = vsel %vm4016_vm6, 4294967295, %v8473_v5  ;;  %vm125_vm6 = vcmp.lt.s32.totalorder %v4040_v10, %v3969_v63  ;;  %v4341_v55 = vadd.s32 32, %v3864_v15 }
 0x199   :  { %8472 = vst [vmem:[#allocation9_spill] sm:$0xff] %v4006_v4  ;;  %vm94_vm3 = vcmp.ge.s32.totalorder %v4006_v4, %v3963_v61  ;;  %vm127_vm5 = vcmp.lt.s32.totalorder %v4006_v4, %v3969_v63 }
 0x19a   :  { %vm4029_vm8 = vmand %vm94_vm3, %vm127_vm5  ;;  %vm126_vm3 = vcmp.lt.s32.totalorder %v4024_v7, %v3969_v63  ;;  %8541 = vst [vmem:[#allocation38_spill] sm:$0xff] %v4341_v55 }
 0x19b   :  { %v8478_v8 = vsel %vm4029_vm8, 4294967295, %v8477_v8  ;;  %2988 = vmatpush.msk.msrb.mxu1 %vm4029_vm8, %v8131_v23  ;;  %vm4057_vm5 = vmand %vm77_vm9, %vm110_vm15  ;;  %3020 = vmatpush.msk.msrb.mxu3 %vm4029_vm8, %v8131_v23 }
 0x19c   :  { %v8482_v13 = vsel %vm4057_vm5, 4294967295, %v8481_v13  ;;  %2973 = vmatpush.msk.msrb.mxu0 %vm4057_vm5, %v8131_v23  ;;  %vm4075_vm9 = vmand %vm93_vm2, %vm126_vm3  ;;  %3005 = vmatpush.msk.msrb.mxu2 %vm4057_vm5, %v8131_v23  ;;  %vm91_vm3 = vcmp.ge.s32.totalorder %v4086_v19, %v3963_v61  ;;  %vm107_vm5 = vcmp.lt.s32.totalorder %v4099_v25, %v3969_v63 }
 0x19d   :  { %v8484_v14 = vsel %vm4075_vm9, 4294967295, %v8483_v14  ;;  %2989 = vmatpush.msk.msrb.mxu1 %vm4075_vm9, %v8131_v23  ;;  %vm4091_vm15 = vmand %vm76_vm1, %vm109_vm0  ;;  %3021 = vmatpush.msk.msrb.mxu3 %vm4075_vm9, %v8131_v23  ;;  %vm75_vm0 = vcmp.ge.s32.totalorder %v4083_v18, %v3963_v61  ;;  %vm108_vm1 = vcmp.lt.s32.totalorder %v4083_v18, %v3969_v63  ;;  %vm124_vm9 = vcmp.lt.s32.totalorder %v4086_v19, %v3969_v63 }
 0x19e   :  { %v326_v58 = vpop.permute.xlu1 %325  ;;  %v8488_v21 = vsel %vm4091_vm15, 4294967295, %v8487_v21  ;;  %2974 = vmatpush.msk.msrb.mxu0 %vm4091_vm15, %v8131_v23  ;;  %vm4107_vm2 = vmand %vm92_vm12, %vm125_vm6  ;;  %3006 = vmatpush.msk.msrb.mxu2 %vm4091_vm15, %v8131_v23  ;;  %vm74_vm6 = vcmp.ge.s32.totalorder %v4099_v25, %v3963_v61  ;;  %v8576_v25 = vmov 0 }
 0x19f   :  { %v3950_v59 = vadd.f32 %v326_v58, %v319_v56  ;;  %v3952_v60 = vadd.f32 %v326_v58, %v320_v57  ;;  %v8492_v29 = vsel %vm4107_vm2, 4294967295, %v8491_v29  ;;  %2990 = vmatpush.msk.msrb.mxu1 %vm4107_vm2, %v8131_v23  ;;  %vm4122_vm12 = vmand %vm75_vm0, %vm108_vm1  ;;  %3022 = vmatpush.msk.msrb.mxu3 %vm4107_vm2, %v8131_v23  ;;  %vm123_vm1 = vcmp.lt.s32.totalorder %v4102_v26, %v3969_v63 }
 0x1a0   :  { %v8494_v30 = vsel %vm4122_vm12, 4294967295, %v8493_v30  ;;  %2975 = vmatpush.msk.msrb.mxu0 %vm4122_vm12, %v8131_v23  ;;  %vm4141_vm0 = vmand %vm91_vm3, %vm124_vm9  ;;  %3007 = vmatpush.msk.msrb.mxu2 %vm4122_vm12, %v8131_v23  ;;  %vm73_vm9 = vcmp.ge.s32.totalorder %v4136_v31, %v3963_v61  ;;  %vm106_vm3 = vcmp.lt.s32.totalorder %v4136_v31, %v3969_v63  ;;  %vm89_vm12 = vcmp.ge.s32.totalorder %v4151_v33, %v3963_v61 }
 0x1a1   :  { %345 = vrot.lane.b32.xlu1 %v3952_v60, %s3793_s24  ;;  %343 = vrot.lane.b32.xlu0 %v3950_v59, %s3793_s24  ;;  %v8497_v32 = vsel %vm4141_vm0, 4294967295, %v8496_v32  ;;  %vm4156_vm8 = vmand %vm74_vm6, %vm107_vm5  ;;  %vm8503_vm5 = vcmp.ge.s32.totalorder %v4102_v26, %v3963_v61  ;;  %vm122_vm2 = vcmp.lt.s32.totalorder %v4151_v33, %v3969_v63  ;;  %v4344_v56 = vadd.s32 160, %v3864_v15 }
 0x1a2   :  { %330 = vrot.lane.b32.xlu2 %v3950_v59, %s3794_s25  ;;  %2991 = vmatpush.msk.msrb.mxu1 %vm4141_vm0, %v8131_v23  ;;  %v8500_v34 = vsel %vm4156_vm8, 4294967295, %v8499_v34  ;;  %vm4179_vm6 = vmand %vm8503_vm5, %vm123_vm1  ;;  %vm72_vm1 = vcmp.ge.s32.totalorder %v4168_v35, %v3963_v61  ;;  %vm105_vm5 = vcmp.lt.s32.totalorder %v4168_v35, %v3969_v63  ;;  %v8543_v57 = vmov 0 }
 0x1a3   :  { %2976 = vmatpush.msk.msrb.mxu0 %vm4156_vm8, %v8131_v23  ;;  %v8505_v37 = vsel %vm4179_vm6, 4294967295, %v8504_v37  ;;  %3023 = vmatpush.msk.msrb.mxu3 %vm4141_vm0, %v8131_v23  ;;  %vm4193_vm15 = vmand %vm73_vm9, %vm106_vm3  ;;  %vm121_vm3 = vcmp.lt.s32.totalorder %v4171_v36, %v3969_v63  ;;  %vm104_vm0 = vcmp.lt.s32.totalorder %v4207_v39, %v3969_v63  ;;  %8542 = vst [vmem:[#allocation39_spill] sm:$0xff] %v4344_v56  ;;  %v4354_v58 = vadd.s32 24, %v3864_v15 }
 0x1a4   :  { %8506 = vst [vmem:[#allocation22_spill] sm:$0xff] %v8505_v37  ;;  %2992 = vmatpush.msk.msrb.mxu1 %vm4179_vm6, %v8131_v23  ;;  %v8508_v38 = vsel %vm4193_vm15, 4294967295, %v8507_v38  ;;  %3008 = vmatpush.msk.msrb.mxu2 %vm4156_vm8, %v8131_v23  ;;  %vm4214_vm9 = vmand %vm89_vm12, %vm122_vm2  ;;  %vm71_vm12 = vcmp.ge.s32.totalorder %v4207_v39, %v3963_v61  ;;  %v8556_v39 = vmov 0  ;;  %v8561_v35 = vmov 0 }
 0x1a5   :  { %8509 = vst [vmem:[#allocation23_spill] sm:$0xff] %v8508_v38  ;;  %2977 = vmatpush.msk.msrb.mxu0 %vm4193_vm15, %v8131_v23  ;;  %v8512_v41 = vsel %vm4214_vm9, 4294967295, %v8511_v41  ;;  %3024 = vmatpush.msk.msrb.mxu3 %vm4179_vm6, %v8131_v23  ;;  %vm4231_vm2 = vmand %vm72_vm1, %vm105_vm5  ;;  %vm8518_vm1 = vcmp.ge.s32.totalorder %v4171_v36, %v3963_v61  ;;  %vm120_vm6 = vcmp.lt.s32.totalorder %v4224_v42, %v3969_v63  ;;  %v8552_v36 = vmov 0 }
 0x1a6   :  { %8513 = vst [vmem:[#allocation25_spill] sm:$0xff] %v8512_v41  ;;  %2993 = vmatpush.msk.msrb.mxu1 %vm4214_vm9, %v8131_v23  ;;  %v8516_v44 = vsel %vm4231_vm2, 4294967295, %v8515_v44  ;;  %3009 = vmatpush.msk.msrb.mxu2 %vm4193_vm15, %v8131_v23  ;;  %vm4248_vm5 = vmand %vm8518_vm1, %vm121_vm3  ;;  %vm87_vm15 = vcmp.ge.s32.totalorder %v4224_v42, %v3963_v61  ;;  %v8548_v42 = vmov 0  ;;  %v8571_v33 = vand.u32 7, %v3869_v17 }
 0x1a7   :  { %8517 = vst [vmem:[#allocation27_spill] sm:$0xff] %v8516_v44  ;;  %2978 = vmatpush.msk.msrb.mxu0 %vm4231_vm2, %v8131_v23  ;;  %v8520_v45 = vsel %vm4248_vm5, 4294967295, %v8519_v45  ;;  %3025 = vmatpush.msk.msrb.mxu3 %vm4214_vm9, %v8131_v23  ;;  %vm4265_vm3 = vmand %vm71_vm12, %vm104_vm0  ;;  %vm70_vm0 = vcmp.ge.s32.totalorder %v4260_v46, %v3963_v61  ;;  %vm103_vm12 = vcmp.lt.s32.totalorder %v4260_v46, %v3969_v63  ;;  %v4372_v46 = vpop.f32.mrf.mxu3  ;;  %v8572_v31 = vmov 0 }
 0x1a8   :  { %8521 = vst [vmem:[#allocation28_spill] sm:$0xff] %v8520_v45  ;;  %2994 = vmatpush.msk.msrb.mxu1 %vm4248_vm5, %v8131_v23  ;;  %v8524_v47 = vsel %vm4265_vm3, 4294967295, %v8523_v47  ;;  %3010 = vmatpush.msk.msrb.mxu2 %vm4231_vm2, %v8131_v23  ;;  %vm4278_vm1 = vmand %vm87_vm15, %vm120_vm6  ;;  %vm86_vm15 = vcmp.ge.s32.totalorder %v4273_v48, %v3963_v61  ;;  %vm119_vm6 = vcmp.lt.s32.totalorder %v4273_v48, %v3969_v63  ;;  %v8575_v26 = vand.u32 7, %v3873_v20 }
 0x1a9   :  { %8525 = vst [vmem:[#allocation30_spill] sm:$0xff] %v8524_v47  ;;  %2979 = vmatpush.msk.msrb.mxu0 %vm4265_vm3, %v8131_v23  ;;  %v8528_v49 = vsel %vm4278_vm1, 4294967295, %v8527_v49  ;;  %3026 = vmatpush.msk.msrb.mxu3 %vm4248_vm5, %v8131_v23  ;;  %vm4292_vm2 = vmand %vm70_vm0, %vm103_vm12  ;;  %vm69_vm12 = vcmp.ge.s32.totalorder %v4304_v51, %v3963_v61  ;;  %vm100_vm9 = vcmp.lt.s32.totalorder %v4354_v58, %v3969_v63  ;;  %vm8589_vm8 = vcmp.lt.s32.totalorder %v3869_v17, 1 }
 0x1aa   :  { %332 = vrot.lane.b32.xlu2 %v3952_v60, %s3794_s25  ;;  %8529 = vst [vmem:[#allocation32_spill] sm:$0xff] %v8528_v49  ;;  %2995 = vmatpush.msk.msrb.mxu1 %vm4278_vm1, %v8131_v23  ;;  %v8531_v50 = vsel %vm4292_vm2, 4294967295, %v8530_v50  ;;  %vm4312_vm0 = vmand %vm86_vm15, %vm119_vm6  ;;  %vm85_vm15 = vcmp.ge.s32.totalorder %v4307_v52, %v3963_v61  ;;  %vm118_vm6 = vcmp.lt.s32.totalorder %v4307_v52, %v3969_v63  ;;  %v4357_v52 = vadd.s32 152, %v3864_v15 }
 0x1ab   :  { %8532 = vst [vmem:[#allocation33_spill] sm:$0xff] %v8531_v50  ;;  %3011 = vmatpush.msk.msrb.mxu2 %vm4265_vm3, %v8131_v23  ;;  %2980 = vmatpush.msk.msrb.mxu0 %vm4292_vm2, %v8131_v23  ;;  %v8536_v53 = vsel %vm4312_vm0, 4294967295, %v8535_v53  ;;  %vm102_vm3 = vcmp.lt.s32.totalorder %v4304_v51, %v3969_v63  ;;  %v4359_v51 = vpop.f32.mrf.mxu2  ;;  %v8793_v1 = vld [vmem:[#allocation22_spill] sm:$0xff] }
 0x1ac   :  { %8537 = vst [vmem:[#allocation36_spill] sm:$0xff] %v8536_v53  ;;  %3027 = vmatpush.msk.msrb.mxu3 %vm4278_vm1, %v8131_v23  ;;  %2996 = vmatpush.msk.msrb.mxu1 %vm4312_vm0, %v8131_v23  ;;  %vm4330_vm5 = vmand %vm69_vm12, %vm102_vm3  ;;  %vm68_vm12 = vcmp.ge.s32.totalorder %v4341_v55, %v3963_v61  ;;  %vm67_vm1 = vcmp.ge.s32.totalorder %v4354_v58, %v3963_v61 }
 0x1ad   :  { %v8539_v54 = vsel %vm4330_vm5, 4294967295, %v8538_v54  ;;  %3012 = vmatpush.msk.msrb.mxu2 %vm4292_vm2, %v8131_v23  ;;  %2981 = vmatpush.msk.msrb.mxu0 %vm4330_vm5, %v8131_v23  ;;  %vm4349_vm3 = vmand %vm85_vm15, %vm118_vm6  ;;  %8546 = vst [vmem:[#allocation41_spill] sm:$0xff] %v4354_v58  ;;  %vm101_vm15 = vcmp.lt.s32.totalorder %v4341_v55, %v3969_v63  ;;  %vm84_vm6 = vcmp.ge.s32.totalorder %v4344_v56, %v3963_v61  ;;  %v4405_v58 = vadd.s32 144, %v3864_v15 }
 0x1ae   :  { %8540 = vst [vmem:[#allocation37_spill] sm:$0xff] %v8539_v54  ;;  %3028 = vmatpush.msk.msrb.mxu3 %vm4312_vm0, %v8131_v23  ;;  %v8544_v57 = vsel %vm4349_vm3, 4294967295, %v8543_v57  ;;  %2997 = vmatpush.msk.msrb.mxu1 %vm4349_vm3, %v8131_v23  ;;  %vm117_vm0 = vcmp.lt.s32.totalorder %v4344_v56, %v3969_v63  ;;  %vm4374_vm2 = vmand %vm68_vm12, %vm101_vm15  ;;  %v4391_v56 = vadd.s32 16, %v3864_v15  ;;  %v4424_v55 = vadd.s32 136, %v3864_v15 }
 0x1af   :  { %8545 = vst [vmem:[#allocation40_spill] sm:$0xff] %v8544_v57  ;;  %v8549_v42 = vsel %vm4374_vm2, 4294967295, %v8548_v42  ;;  %3013 = vmatpush.msk.msrb.mxu2 %vm4330_vm5, %v8131_v23  ;;  %2982 = vmatpush.msk.msrb.mxu0 %vm4374_vm2, %v8131_v23  ;;  %vm4398_vm15 = vmand %vm84_vm6, %vm117_vm0  ;;  %vm82_vm5 = vcmp.ge.s32.totalorder %v4405_v58, %v3963_v61 }
 0x1b0   :  { %8547 = vst [vmem:[#allocation42_spill] sm:$0xff] %v4357_v52  ;;  %3029 = vmatpush.msk.msrb.mxu3 %vm4349_vm3, %v8131_v23  ;;  %v8553_v36 = vsel %vm4398_vm15, 4294967295, %v8552_v36  ;;  %vm116_vm3 = vcmp.lt.s32.totalorder %v4357_v52, %v3969_v63  ;;  %2998 = vmatpush.msk.msrb.mxu1 %vm4398_vm15, %v8131_v23  ;;  %vm4410_vm12 = vmand %vm67_vm1, %vm100_vm9  ;;  %vm66_vm0 = vcmp.ge.s32.totalorder %v4391_v56, %v3963_v61 }
 0x1b1   :  { %8550 = vst [vmem:[#allocation43_spill] sm:$0xff] %v8549_v42  ;;  %v8557_v39 = vsel %vm4410_vm12, 4294967295, %v8556_v39  ;;  %3014 = vmatpush.msk.msrb.mxu2 %vm4374_vm2, %v8131_v23  ;;  %vm99_vm6 = vcmp.lt.s32.totalorder %v4391_v56, %v3969_v63  ;;  %2983 = vmatpush.msk.msrb.mxu0 %vm4410_vm12, %v8131_v23  ;;  %vm8560_vm9 = vcmp.ge.s32.totalorder %v4357_v52, %v3963_v61  ;;  %v8565_v52 = vmov 0 }
 0x1b2   :  { %8551 = vst [vmem:[#allocation44_spill] sm:$0xff] %v4391_v56  ;;  %vm4432_vm1 = vmand %vm8560_vm9, %vm116_vm3  ;;  %3030 = vmatpush.msk.msrb.mxu3 %vm4398_vm15, %v8131_v23  ;;  %vm115_vm2 = vcmp.lt.s32.totalorder %v4405_v58, %v3969_v63  ;;  %v4446_v56 = vadd.s32 128, %v3864_v15  ;;  %vm4479_vm15 = vcmp.eq.s32.totalorder %v8571_v33, 0  ;;  %v8581_v33 = vmov 0 }
 0x1b3   :  { %8554 = vst [vmem:[#allocation45_spill] sm:$0xff] %v8553_v36  ;;  %v8562_v35 = vsel %vm4432_vm1, 4294967295, %v8561_v35  ;;  %2999 = vmatpush.msk.msrb.mxu1 %vm4432_vm1, %v8131_v23  ;;  %vm4451_vm3 = vmand %vm66_vm0, %vm99_vm6  ;;  %3015 = vmatpush.msk.msrb.mxu2 %vm4410_vm12, %v8131_v23  ;;  %v8573_v31 = vsel %vm4479_vm15, 4294967295, %v8572_v31  ;;  %vm8580_vm6 = vcmp.ge.s32.totalorder %v3867_v16, %v3963_v61  ;;  %v401_v10 = vpop.f32.mrf.mxu2 }
 0x1b4   :  { %8555 = vst [vmem:[#allocation46_spill] sm:$0xff] %v4405_v58  ;;  %v8566_v52 = vsel %vm4451_vm3, 4294967295, %v8565_v52  ;;  %2984 = vmatpush.msk.msrb.mxu0 %vm4451_vm3, %v8131_v23  ;;  %vm4466_vm0 = vmand %vm82_vm5, %vm115_vm2  ;;  %v8568_v58 = vmov 0  ;;  %3031 = vmatpush.msk.msrb.mxu3 %vm4432_vm1, %v8131_v23  ;;  %vm4485_vm2 = vcmp.eq.s32.totalorder %v8575_v26, 0  ;;  %vm8579_vm5 = vcmp.lt.s32.totalorder %v3867_v16, %v3969_v63 }
 0x1b5   :  { %8558 = vst [vmem:[#allocation47_spill] sm:$0xff] %v8557_v39  ;;  %v8569_v58 = vsel %vm4466_vm0, 4294967295, %v8568_v58  ;;  %v8577_v25 = vsel %vm4485_vm2, 4294967295, %v8576_v25  ;;  %3000 = vmatpush.msk.msrb.mxu1 %vm4466_vm0, %v8131_v23  ;;  %vm4498_vm9 = vmand %vm8580_vm6, %vm8579_vm5  ;;  %3016 = vmatpush.msk.msrb.mxu2 %vm4451_vm3, %v8131_v23  ;;  %vm113_vm1 = vcmp.lt.s32.totalorder %v4446_v56, %v3969_v63  ;;  %vm8584_vm6 = vcmp.lt.s32.totalorder %v4424_v55, %v3969_v63 }
 0x1b6   :  { %8559 = vst [vmem:[#allocation48_spill] sm:$0xff] %v4424_v55  ;;  %v8582_v33 = vsel %vm4498_vm9, 4294967295, %v8581_v33  ;;  %2985 = vmatpush.msk.msrb.mxu0 %vm4498_vm9, %v8131_v23  ;;  %vm8585_vm5 = vcmp.ge.s32.totalorder %v4424_v55, %v3963_v61  ;;  %v8586_v16 = vmov 0  ;;  %3032 = vmatpush.msk.msrb.mxu3 %vm4466_vm0, %v8131_v23  ;;  %vm8590_vm3 = vmmov %vm8589_vm8  ;;  %v8593_v55 = vmov 0 }
 0x1b7   :  { %8563 = vst [vmem:[#allocation49_spill] sm:$0xff] %v8562_v35  ;;  %vm4518_vm12 = vmand %vm8585_vm5, %vm8584_vm6  ;;  %vm8591_vm6 = vcmp.lt.s32.totalorder %v3864_v15, %v3969_v63  ;;  %vm8592_vm5 = vcmp.ge.s32.totalorder %v3864_v15, %v3963_v61  ;;  %3017 = vmatpush.msk.msrb.mxu2 %vm4498_vm9, %v8131_v23  ;;  %v8597_v63 = vmov 0  ;;  %v4562_v15 = vpop.f32.mrf.mxu3 }
 0x1b8   :  { %8564 = vst [vmem:[#allocation50_spill] sm:$0xff] %v4446_v56  ;;  %v8587_v16 = vsel %vm4518_vm12, 4294967295, %v8586_v16  ;;  %3001 = vmatpush.msk.msrb.mxu1 %vm4518_vm12, %v8131_v23  ;;  %vm4538_vm11 = vmand %vm8592_vm5, %vm8591_vm6  ;;  %3033 = vmatpush.msk.msrb.mxu3 %vm4518_vm12, %v8131_v23 }
 0x1b9   :  { %8567 = vst [vmem:[#allocation51_spill] sm:$0xff] %v8566_v52  ;;  %v8594_v55 = vsel %vm4538_vm11, 4294967295, %v8593_v55  ;;  %2986 = vmatpush.msk.msrb.mxu0 %vm4538_vm11, %v8131_v23  ;;  %3018 = vmatpush.msk.msrb.mxu2 %vm4538_vm11, %v8131_v23 }
 0x1ba   :  { %8570 = vst [vmem:[#allocation52_spill] sm:$0xff] %v8569_v58 }
 0x1bb   :  { %8574 = vst [vmem:[#allocation53_spill] sm:$0xff] %v8573_v31  ;;  %3035 = vmatpush.msk.msra.mxu0 %vm3878_vm4, %v8131_v23  ;;  %v487_v31 = vperm.slane %v3950_v59, 1  ;;  %3062 = vmatpush.msk.msra.mxu2 %vm3878_vm4, %v8131_v23 }
 0x1bc   :  { %8578 = vst [vmem:[#allocation54_spill] sm:$0xff] %v8577_v25 }
 0x1bd   :  { %8583 = vst [vmem:[#allocation55_spill] sm:$0xff] %v8582_v33  ;;  %3036 = vmatpush.msk.msra.mxu0 %vm3901_vm13, %v8131_v23  ;;  %3063 = vmatpush.msk.msra.mxu2 %vm3901_vm13, %v8131_v23  ;;  %v489_v33 = vmul.f32 %v487_v31, %v4359_v51 }
 0x1be   :  { %8588 = vst [vmem:[#allocation56_spill] sm:$0xff] %v8587_v16  ;;  %v404_v16 = vpop.f32.mrf.mxu2 }
 0x1bf   :  { %8595 = vst [vmem:[#allocation57_spill] sm:$0xff] %v8594_v55  ;;  %v506_v55 = vperm.slane %v3952_v60, 3 }
 0x1c1   :  { %v508_v35 = vmul.f32 %v506_v55, %v4562_v15 }
 0x1fc   :  { %v331_v48 = vpop.permute.xlu2 %330 }
 0x204   :  { %v333_v26 = vpop.permute.xlu2 %332 }
 0x205   :  { %v335_v19 = vsel %vm8589_vm8, %v331_v48, %v333_v26  ;;  %v336_v18 = vsel %vm8590_vm3, %v333_v26, %v331_v48  ;;  %vm8596_vm8 = vcmp.ge.s32.totalorder %v4446_v56, %v3963_v61 }
 0x206   :  { %v341_v48 = vsel %vm4479_vm15, 0.0, %v336_v18  ;;  %v342_v26 = vsel %vm4485_vm2, 0.0, %v335_v19  ;;  %vm4555_vm3 = vmand %vm8596_vm8, %vm113_vm1  ;;  %vm8137_vm1 = vcmp.lt.s32.totalorder %v3869_v17, 127  ;;  %vm8609_vm8 = vnez %v8470_v2  ;;  %v8795_v2 = vld [vmem:[#allocation23_spill] sm:$0xff] }
 0x207   :  { %v8598_v63 = vsel %vm4555_vm3, 4294967295, %v8597_v63  ;;  %v445_v18 = vperm.slane %v341_v48, 0  ;;  %v446_v9 = vperm.slane %v342_v26, 0  ;;  %v451_v19 = vperm.slane %v341_v48, 1  ;;  %3002 = vmatpush.msk.msrb.mxu1 %vm4555_vm3, %v8131_v23  ;;  %3034 = vmatpush.msk.msrb.mxu3 %vm4555_vm3, %v8131_v23 }
 0x208   :  { %8599 = vst [vmem:[#allocation58_spill] sm:$0xff] %v8598_v63  ;;  %v452_v7 = vperm.slane %v342_v26, 1  ;;  %v469_v61 = vperm.slane %v341_v48, 3  ;;  %v470_v56 = vperm.slane %v342_v26, 3  ;;  %v463_v3 = vperm.slane %v341_v48, 2 }
 0x209   :  { %v453_v6 = vmul.f32 %v451_v19, %v4042_v11  ;;  %v464_v0 = vperm.slane %v342_v26, 2  ;;  %3038 = vmatpush.msk.msra.mxu1 %vm3887_vm7, %v8131_v23  ;;  %v447_v62 = vmul.f32 %v445_v18, %v4042_v11  ;;  %v448_v25 = vmul.f32 %v446_v9, %v4055_v12  ;;  %3070 = vmatpush.msk.msra.mxu3 %vm3887_vm7, %v8131_v23 }
 0x20a   :  { %v454_v4 = vmul.f32 %v452_v7, %v4055_v12  ;;  %v488_v63 = vperm.slane %v3952_v60, 1  ;;  %v471_v48 = vmul.f32 %v469_v61, %v4209_v40  ;;  %v472_v26 = vmul.f32 %v470_v56, %v4226_v43 }
 0x20b   :  { %v457_v19 = vrot.slane %v453_v6, 4  ;;  %3039 = vmatpush.msk.msra.mxu1 %vm3908_vm14, %v8131_v23  ;;  %v505_v9 = vperm.slane %v3950_v59, 3  ;;  %v482_v11 = vperm.slane %v3952_v60, 0  ;;  %v481_v12 = vperm.slane %v3950_v59, 0  ;;  %3071 = vmatpush.msk.msra.mxu3 %vm3908_vm14, %v8131_v23 }
 0x20c   :  { %v458_v7 = vrot.slane %v454_v4, 4  ;;  %v465_v56 = vmul.f32 %v463_v3, %v4209_v40  ;;  %v466_v18 = vmul.f32 %v464_v0, %v4226_v43  ;;  %v499_v61 = vperm.slane %v3950_v59, 2  ;;  %v439_v40 = vpop.f32.mrf.mxu3 }
 0x20d   :  { %v461_v4 = vadd.f32 %v457_v19, %v447_v62  ;;  %v490_v58 = vmul.f32 %v488_v63, %v4372_v46  ;;  %v475_v0 = vrot.slane %v471_v48, 4  ;;  %v507_v43 = vmul.f32 %v505_v9, %v401_v10 }
 0x20e   :  { %v462_v6 = vadd.f32 %v458_v7, %v448_v25  ;;  %v476_v25 = vrot.slane %v472_v26, 4  ;;  %v500_v19 = vperm.slane %v3952_v60, 2  ;;  %v484_v59 = vmul.f32 %v482_v11, %v4372_v46 }
 0x20f   :  { %v467_v62 = vadd.f32 %v465_v56, %v461_v4  ;;  %v483_v31 = vmul.f32 %v481_v12, %v4359_v51  ;;  %v501_v63 = vmul.f32 %v499_v61, %v401_v10  ;;  %v8600_v4 = vand.u32 7, %v3869_v17 }
 0x210   :  { %v468_v3 = vadd.f32 %v466_v18, %v462_v6  ;;  %v8601_v48 = vmov 0  ;;  %v8604_v26 = vand.u32 7, %v3873_v20  ;;  %v8605_v60 = vmov 0 }
 0x211   :  { %v479_v7 = vadd.f32 %v475_v0, %v467_v62  ;;  %vm4621_vm6 = vcmp.eq.s32.totalorder %v8600_v4, 7  ;;  %v493_v12 = vrot.slane %v489_v33, 4  ;;  %v494_v10 = vrot.slane %v490_v58, 4 }
 0x212   :  { %v480_v52 = vadd.f32 %v476_v25, %v468_v3  ;;  %v8602_v48 = vsel %vm4621_vm6, 4294967295, %v8601_v48  ;;  %vm4627_vm5 = vcmp.eq.s32.totalorder %v8604_v26, 7  ;;  %v511_v6 = vrot.slane %v507_v43, 4 }
 0x213   :  { %8603 = vst [vmem:[#allocation59_spill] sm:$0xff] %v8602_v48  ;;  %v8606_v60 = vsel %vm4627_vm5, 4294967295, %v8605_v60  ;;  %v485_v46 = vadd.f32 %v483_v31, %v479_v7  ;;  %v346_v51 = vpop.permute.xlu1 %345  ;;  %v344_v11 = vpop.permute.xlu0 %343  ;;  %v502_v55 = vmul.f32 %v500_v19, %v4562_v15  ;;  %v512_v25 = vrot.slane %v508_v35, 4 }
 0x214   :  { %8607 = vst [vmem:[#allocation60_spill] sm:$0xff] %v8606_v60  ;;  %v486_v9 = vadd.f32 %v484_v59, %v480_v52  ;;  %v348_v56 = vsel %vm8137_vm1, %v344_v11, %v346_v51  ;;  %v349_v18 = vsel %vm8137_vm1, %v346_v51, %v344_v11  ;;  %v407_v31 = vpop.f32.mrf.mxu2  ;;  %vm8610_vm1 = vnez %v8474_v5  ;;  %v8797_v5 = vld [vmem:[#allocation25_spill] sm:$0xff] }
 0x215   :  { %v354_v20 = vsel %vm4621_vm6, 0.0, %v348_v56  ;;  %v355_v61 = vsel %vm4627_vm5, 0.0, %v349_v18  ;;  %v497_v52 = vadd.f32 %v493_v12, %v485_v46  ;;  %v442_v56 = vpop.f32.mrf.mxu3  ;;  %vm8611_vm5 = vnez %v8478_v8  ;;  %v8799_v8 = vld [vmem:[#allocation27_spill] sm:$0xff] }
 0x216   :  { %v498_v62 = vadd.f32 %v494_v10, %v486_v9  ;;  %v517_v3 = vperm.slane %v354_v20, 0  ;;  %v518_v33 = vperm.slane %v355_v61, 0  ;;  %v523_v58 = vperm.slane %v354_v20, 1 }
 0x217   :  { %v524_v0 = vperm.slane %v355_v61, 1  ;;  %v503_v15 = vadd.f32 %v501_v63, %v497_v52  ;;  %v541_v43 = vperm.slane %v354_v20, 3  ;;  %v535_v11 = vperm.slane %v354_v20, 2 }
 0x218   :  { %v504_v19 = vadd.f32 %v502_v55, %v498_v62  ;;  %v519_v59 = vmul.f32 %v517_v3, %v404_v16  ;;  %v520_v7 = vmul.f32 %v518_v33, %v439_v40  ;;  %v525_v4 = vmul.f32 %v523_v58, %v404_v16  ;;  %v8635_v58 = vld [vmem:[#allocation51_spill] sm:$0xff] }
 0x219   :  { %v526_v26 = vmul.f32 %v524_v0, %v439_v40  ;;  %v515_v51 = vadd.f32 %v511_v6, %v503_v15  ;;  %v536_v9 = vperm.slane %v355_v61, 2  ;;  %v542_v12 = vperm.slane %v355_v61, 3  ;;  %v8637_v0 = vld [vmem:[#allocation52_spill] sm:$0xff] }
 0x21a   :  { %v516_v23 = vadd.f32 %v512_v25, %v504_v19  ;;  %v529_v18 = vrot.slane %v525_v4, 4  ;;  %v543_v60 = vmul.f32 %v541_v43, %v407_v31  ;;  %v537_v52 = vmul.f32 %v535_v11, %v407_v31  ;;  %v8638_v25 = vld [vmem:[#allocation55_spill] sm:$0xff]  ;;  %v8639_v15 = vld [vmem:[#allocation56_spill] sm:$0xff]  ;;  %v8640_v43 = vld [vmem:[#allocation57_spill] sm:$0xff] }
 0x21b   :  { %v530_v46 = vrot.slane %v526_v26, 4  ;;  %v521_v10 = vadd.f32 %v519_v59, %v515_v51  ;;  %v544_v35 = vmul.f32 %v542_v12, %v442_v56  ;;  %v538_v62 = vmul.f32 %v536_v9, %v442_v56  ;;  %v8641_v19 = vld [vmem:[#allocation58_spill] sm:$0xff] }
 0x21c   :  { %v522_v48 = vadd.f32 %v520_v7, %v516_v23  ;;  %v547_v33 = vrot.slane %v543_v60, 4  ;;  %vm8612_vm6 = vnez %v8482_v13  ;;  %vm8613_vm2 = vnez %v8484_v14  ;;  %v8633_v60 = vld [vmem:[#allocation49_spill] sm:$0xff] }
 0x21d   :  { %v533_v63 = vadd.f32 %v529_v18, %v521_v10  ;;  %v548_v40 = vrot.slane %v544_v35, 4  ;;  %vm8614_vm15 = vnez %v8488_v21 }
 0x21e   :  { %v534_v55 = vadd.f32 %v530_v46, %v522_v48  ;;  %v8608_v48 = vmov 1.0  }
 0x21f   :  { %v539_v3 = vadd.f32 %v537_v52, %v533_v63 }
 0x220   :  { %v540_v16 = vadd.f32 %v538_v62, %v534_v55 }
 0x221   :  { %v4640_v6 = vadd.f32 %v547_v33, %v539_v3  ;;  %v230_v3 = vld [vmem:[%s7990_s5] sm:$0xf] }
 0x222   :  { %v4642_v20 = vadd.f32 %v548_v40, %v540_v16 }
 0x223   :  { %569 = vmatmul.f32.vlgmr.msrb.gmra.mxu0 %v4640_v6  ;;  %v593_v23 = vmul.f32 %v4640_v6, %v4640_v6 }
 0x224   :  { %589 = vmatmul.f32.vlgmr.msrb.gmra.mxu1 %v4642_v20  ;;  %v594_v61 = vmul.f32 %v4642_v20, %v4642_v20  ;;  %3041 = vmatpush.msk.msrb.mxu0 %vm3878_vm4, %v8608_v48  ;;  %vm8618_vm4 = vnez %v8500_v34 }
 0x225   :  { %3044 = vmatpush.msk.msrb.mxu1 %vm3887_vm7, %v8608_v48  ;;  %611 = vmatmul.f32.vlgmr.msrb.gmra.mxu2 %v593_v23  ;;  %vm8617_vm7 = vnez %v8497_v32  ;;  %v231_v23 = vld [vmem:[%s7991_s6] sm:$0xf] }
 0x226   :  { %631 = vmatmul.f32.vlgmr.msrb.gmra.mxu3 %v594_v61  ;;  %3042 = vmatpush.msk.msrb.mxu0 %vm3901_vm13, %v8608_v48  ;;  %vm8616_vm13 = vnez %v8494_v30 }
 0x227   :  { %3045 = vmatpush.msk.msrb.mxu1 %vm3908_vm14, %v8608_v48  ;;  %3110 = vmatpush.msk.msrb.mxu2 %vm3982_vm10, %v8608_v48  ;;  %vm8615_vm14 = vnez %v8492_v29 }
 0x228   :  { %3126 = vmatpush.msk.msrb.mxu3 %vm8609_vm8, %v8608_v48 }
 0x229   :  { %3111 = vmatpush.msk.msrb.mxu2 %vm8610_vm1, %v8608_v48 }
 0x22a   :  { %3127 = vmatpush.msk.msrb.mxu3 %vm8611_vm5, %v8608_v48 }
 0x22b   :  { %3112 = vmatpush.msk.msrb.mxu2 %vm8612_vm6, %v8608_v48 }
 0x22c   :  { %3128 = vmatpush.msk.msrb.mxu3 %vm8613_vm2, %v8608_v48  ;;  %vm8619_vm2 = vnez %v8505_v37 }
 0x22d   :  { %3113 = vmatpush.msk.msrb.mxu2 %vm8614_vm15, %v8608_v48  ;;  %vm8620_vm15 = vnez %v8508_v38 }
 0x22e   :  { %3129 = vmatpush.msk.msrb.mxu3 %vm8615_vm14, %v8608_v48  ;;  %vm8621_vm14 = vnez %v8512_v41 }
 0x22f   :  { %3114 = vmatpush.msk.msrb.mxu2 %vm8616_vm13, %v8608_v48  ;;  %vm8622_vm13 = vnez %v8516_v44 }
 0x230   :  { %3130 = vmatpush.msk.msrb.mxu3 %vm8617_vm7, %v8608_v48  ;;  %vm8623_vm7 = vnez %v8520_v45 }
 0x231   :  { %3115 = vmatpush.msk.msrb.mxu2 %vm8618_vm4, %v8608_v48  ;;  %vm8624_vm4 = vnez %v8524_v47 }
 0x232   :  { %3131 = vmatpush.msk.msrb.mxu3 %vm8619_vm2, %v8608_v48  ;;  %vm8625_vm2 = vnez %v8528_v49 }
 0x233   :  { %3116 = vmatpush.msk.msrb.mxu2 %vm8620_vm15, %v8608_v48  ;;  %vm8626_vm15 = vnez %v8531_v50 }
 0x234   :  { %3132 = vmatpush.msk.msrb.mxu3 %vm8621_vm14, %v8608_v48  ;;  %vm8627_vm14 = vnez %v8536_v53 }
 0x235   :  { %3117 = vmatpush.msk.msrb.mxu2 %vm8622_vm13, %v8608_v48  ;;  %vm8628_vm13 = vnez %v8539_v54 }
 0x236   :  { %3133 = vmatpush.msk.msrb.mxu3 %vm8623_vm7, %v8608_v48  ;;  %vm8629_vm7 = vnez %v8544_v57 }
 0x237   :  { %3118 = vmatpush.msk.msrb.mxu2 %vm8624_vm4, %v8608_v48  ;;  %vm8630_vm4 = vnez %v8549_v42 }
 0x238   :  { %3134 = vmatpush.msk.msrb.mxu3 %vm8625_vm2, %v8608_v48  ;;  %vm8631_vm2 = vnez %v8553_v36 }
 0x239   :  { %3119 = vmatpush.msk.msrb.mxu2 %vm8626_vm15, %v8608_v48  ;;  %vm8632_vm15 = vnez %v8557_v39 }
 0x23a   :  { %3135 = vmatpush.msk.msrb.mxu3 %vm8627_vm14, %v8608_v48  ;;  %vm8634_vm14 = vnez %v8633_v60 }
 0x23b   :  { %3120 = vmatpush.msk.msrb.mxu2 %vm8628_vm13, %v8608_v48  ;;  %vm8636_vm13 = vnez %v8635_v58 }
 0x23c   :  { %3136 = vmatpush.msk.msrb.mxu3 %vm8629_vm7, %v8608_v48 }
 0x23d   :  { %3121 = vmatpush.msk.msrb.mxu2 %vm8630_vm4, %v8608_v48 }
 0x23e   :  { %3137 = vmatpush.msk.msrb.mxu3 %vm8631_vm2, %v8608_v48 }
 0x23f   :  { %3122 = vmatpush.msk.msrb.mxu2 %vm8632_vm15, %v8608_v48 }
 0x240   :  { %3138 = vmatpush.msk.msrb.mxu3 %vm8634_vm14, %v8608_v48 }
 0x241   :  { %3123 = vmatpush.msk.msrb.mxu2 %vm8636_vm13, %v8608_v48 }
 0x242   :  { %3139 = vmatpush.msk.msrb.mxu3 %vm4466_vm0, %v8608_v48 }
 0x243   :  { %3124 = vmatpush.msk.msrb.mxu2 %vm4498_vm9, %v8608_v48  ;;  %vm8642_vm9 = vcmask 130048  }
 0x244   :  { %3140 = vmatpush.msk.msrb.mxu3 %vm4518_vm12, %v8608_v48  ;;  %vm8643_vm0 = vmmov %vm8642_vm9 }
 0x245   :  { %3125 = vmatpush.msk.msrb.mxu2 %vm4538_vm11, %v8608_v48  ;;  %vm8644_vm13 = vmmov %vm8643_vm0 }
 0x246   :  { %3141 = vmatpush.msk.msrb.mxu3 %vm4555_vm3, %v8608_v48  ;;  %vm8645_vm14 = vmmov %vm8643_vm0 }
 0x2a0   :  { %v570_v59 = vpop.f32.mrf.mxu0 }
 0x2a1   :  { %v590_v7 = vpop.f32.mrf.mxu1 }
 0x2a2   :  { %v591_v31 = vadd.f32 %v590_v7, %v570_v59 }
 0x2a4   :  { %v635_v4 = vmul.f32 0.0625, %v591_v31 }
 0x2a6   :  { %v637_v56 = vmul.f32 %v635_v4, %v635_v4 }
 0x2a8   :  { %v612_v26 = vpop.f32.mrf.mxu2 }
 0x2a9   :  { %v632_v51 = vpop.f32.mrf.mxu3 }
 0x2aa   :  { %v633_v11 = vadd.f32 %v632_v51, %v612_v26 }
 0x2ac   :  { %v636_v18 = vmul.f32 0.0625, %v633_v11 }
 0x2ae   :  { %v638_v46 = vsub.f32 %v636_v18, %v637_v56  ;;  %v3047_v18 = vld [vmem:[%s7986_s1 + $0x4] sm:$0xf] }
 0x2b0   :  { %v639_v9 = vmax.f32 %v638_v46, 0.0 }
 0x2b2   :  { %v640_v12 = vadd.f32 1e-05, %v639_v9 }
 0x2b4   :  { %3781 = vrsqrt.f32 %v640_v12  ;;  %vm647_vm3 = vweird.f32 %v640_v12 }
 0x2ba   :  { %v3782_v10 = vpop.eup %3781 }
 0x2bb   :  { %v642_v35 = vmul.f32 %v3782_v10, %v640_v12  ;;  %vm648_vm11 = vweird.f32 %v3782_v10 }
 0x2bc   :  { %vm649_vm12 = vmor %vm647_vm3, %vm648_vm11  ;;  %vm8648_vm11 = vcmask 31744   ;;  %vm8652_vm3 = vnez %v8492_v29 }
 0x2bd   :  { %v643_v63 = vmul.f32 %v3782_v10, %v642_v35 }
 0x2bf   :  { %v644_v52 = vmul.f32 0.5, %v643_v63 }
 0x2c1   :  { %v645_v55 = vsub.f32 1.5, %v644_v52 }
 0x2c3   :  { %v646_v62 = vmul.f32 %v3782_v10, %v645_v55 }
 0x2c5   :  { %v650_v33 = vsel %vm649_vm12, %v3782_v10, %v646_v62  ;;  %vm8649_vm12 = vmmov %vm8648_vm11  ;;  %v3050_v62 = vld [vmem:[%s7987_s4 + $0x30] sm:$0xff] }
 0x2c6   :  { %v651_v16 = vmul.f32 %v650_v33, %v230_v3  ;;  %v3051_v3 = vld [vmem:[%s7987_s4 + $0x38] sm:$0xff]  ;;  %v3052_v33 = vld [vmem:[%s7987_s4 + $0x40] sm:$0xff] }
 0x2c8   :  { %3037 = vmatmul.msk.f32.vlgmr.msra.gmra.mxu0 %vm8642_vm9, %v651_v16  ;;  %3040 = vmatmul.msk.f32.vlgmr.msra.gmra.mxu1 %vm8643_vm0, %v651_v16  ;;  %v652_v40 = vmul.f32 %v651_v16, %v635_v4  ;;  %vm8650_vm9 = vnez %v8484_v14  ;;  %vm8651_vm0 = vnez %v8488_v21  ;;  %v3053_v16 = vld [vmem:[%s7987_s4 + $0x48] sm:$0xff] }
 0x2ca   :  { %v653_v61 = vsub.f32 %v231_v23, %v652_v40 }
 0x2d0   :  { %3043 = vmatmul.msk.f32.vlgmr.msrb.gmra.mxu0 %vm8644_vm13, %v653_v61  ;;  %3046 = vmatmul.msk.f32.vlgmr.msrb.gmra.mxu1 %vm8645_vm14, %v653_v61  ;;  %vm8646_vm13 = vcmask 1043456  }
 0x2d1   :  { %vm8647_vm14 = vmmov %vm8646_vm13 }
 0x345   :  { %v674_v59 = vpop.f32.mrf.mxu0  ;;  %v694_v7 = vpop.f32.mrf.mxu1 }
 0x346   :  { %v697_v31 = vmul.f32 %v674_v59, %v4640_v6  ;;  %v698_v26 = vmul.f32 %v694_v7, %v4642_v20 }
 0x34d   :  { %v719_v51 = vpop.f32.mrf.mxu0  ;;  %v739_v11 = vpop.f32.mrf.mxu1 }
 0x34e   :  { %v4770_v56 = vadd.f32 %v719_v51, %v697_v31  ;;  %v4772_v4 = vadd.f32 %v739_v11, %v698_v26 }
 0x350   :  { %3058 = vmatpush.msk.msra.mxu0 %vm8646_vm13, %v4770_v56  ;;  %3060 = vmatpush.msk.msra.mxu1 %vm8647_vm14, %v4772_v4  ;;  %vm8653_vm13 = vnez %v8494_v30  ;;  %vm8654_vm14 = vnez %v8497_v32 }
 0x351   :  { %3059 = vmatmul.msk.f32.vlgmr.msra.gmra.mxu0 %vm8648_vm11, %v3047_v18  ;;  %3061 = vmatmul.msk.f32.vlgmr.msra.gmra.mxu1 %vm8649_vm12, %v3047_v18  ;;  %vm8655_vm11 = vnez %v8500_v34  ;;  %vm8656_vm12 = vnez %v8505_v37 }
 0x352   :  { %3078 = vmatpush.msk.msrb.mxu0 %vm3982_vm10, %v8608_v48  ;;  %3094 = vmatpush.msk.msrb.mxu1 %vm8609_vm8, %v8608_v48 }
 0x354   :  { %3079 = vmatpush.msk.msrb.mxu0 %vm8610_vm1, %v8608_v48  ;;  %3095 = vmatpush.msk.msrb.mxu1 %vm8611_vm5, %v8608_v48 }
 0x356   :  { %3080 = vmatpush.msk.msrb.mxu0 %vm8612_vm6, %v8608_v48  ;;  %3096 = vmatpush.msk.msrb.mxu1 %vm8650_vm9, %v8608_v48 }
 0x358   :  { %3081 = vmatpush.msk.msrb.mxu0 %vm8651_vm0, %v8608_v48  ;;  %3097 = vmatpush.msk.msrb.mxu1 %vm8652_vm3, %v8608_v48  ;;  %vm8657_vm0 = vnez %v8508_v38  ;;  %vm8658_vm3 = vnez %v8512_v41 }
 0x35a   :  { %3082 = vmatpush.msk.msrb.mxu0 %vm8653_vm13, %v8608_v48  ;;  %3098 = vmatpush.msk.msrb.mxu1 %vm8654_vm14, %v8608_v48  ;;  %vm8659_vm13 = vnez %v8516_v44  ;;  %vm8660_vm14 = vnez %v8520_v45 }
 0x35c   :  { %3083 = vmatpush.msk.msrb.mxu0 %vm8655_vm11, %v8608_v48  ;;  %3099 = vmatpush.msk.msrb.mxu1 %vm8656_vm12, %v8608_v48  ;;  %vm8661_vm11 = vnez %v8524_v47  ;;  %vm8662_vm12 = vnez %v8528_v49 }
 0x35e   :  { %3084 = vmatpush.msk.msrb.mxu0 %vm8657_vm0, %v8608_v48  ;;  %3100 = vmatpush.msk.msrb.mxu1 %vm8658_vm3, %v8608_v48  ;;  %vm8663_vm0 = vnez %v8531_v50  ;;  %vm8664_vm3 = vnez %v8536_v53 }
 0x360   :  { %3085 = vmatpush.msk.msrb.mxu0 %vm8659_vm13, %v8608_v48  ;;  %3101 = vmatpush.msk.msrb.mxu1 %vm8660_vm14, %v8608_v48  ;;  %vm8665_vm13 = vnez %v8539_v54 }
 0x362   :  { %3086 = vmatpush.msk.msrb.mxu0 %vm8661_vm11, %v8608_v48  ;;  %3102 = vmatpush.msk.msrb.mxu1 %vm8662_vm12, %v8608_v48  ;;  %vm8681_vm11 = vcmask 130048  }
 0x363   :  { %3064 = vmatmul.msk.f32.vlgmr.msra.gmra.mxu2 %vm8681_vm11, %v3050_v62  ;;  %vm8682_vm14 = vmmov %vm8681_vm11 }
 0x364   :  { %3087 = vmatpush.msk.msrb.mxu0 %vm8663_vm0, %v8608_v48  ;;  %3103 = vmatpush.msk.msrb.mxu1 %vm8664_vm3, %v8608_v48  ;;  %vm8666_vm3 = vnez %v8633_v60 }
 0x365   :  { %3072 = vmatmul.msk.f32.vlgmr.msra.gmra.mxu3 %vm8682_vm14, %v3050_v62  ;;  %v3049_v62 = vld [vmem:[%s7989_s3 + $0x4] sm:$0xf] }
 0x366   :  { %3088 = vmatpush.msk.msrb.mxu0 %vm8665_vm13, %v8608_v48  ;;  %3104 = vmatpush.msk.msrb.mxu1 %vm8629_vm7, %v8608_v48  ;;  %vm8667_vm13 = vnez %v8635_v58  ;;  %vm8668_vm7 = vnez %v8637_v0 }
 0x368   :  { %3089 = vmatpush.msk.msrb.mxu0 %vm8630_vm4, %v8608_v48  ;;  %3105 = vmatpush.msk.msrb.mxu1 %vm8631_vm2, %v8608_v48  ;;  %vm8669_vm4 = vnez %v8638_v25  ;;  %vm8670_vm2 = vnez %v8639_v15 }
 0x36a   :  { %3090 = vmatpush.msk.msrb.mxu0 %vm8632_vm15, %v8608_v48  ;;  %3106 = vmatpush.msk.msrb.mxu1 %vm8666_vm3, %v8608_v48  ;;  %vm8671_vm15 = vnez %v8640_v43  ;;  %vm8672_vm3 = vnez %v8641_v19 }
 0x36c   :  { %3091 = vmatpush.msk.msrb.mxu0 %vm8667_vm13, %v8608_v48  ;;  %3107 = vmatpush.msk.msrb.mxu1 %vm8668_vm7, %v8608_v48  ;;  %vm8673_vm13 = vnez %v8457_v22  ;;  %vm8674_vm7 = vnez %v8459_v24  ;;  %v8919_v22 = vld [vmem:[#allocation34_spill] sm:$0xff]  ;;  %v8921_v24 = vld [vmem:[#allocation35_spill] sm:$0xff] }
 0x36e   :  { %3092 = vmatpush.msk.msrb.mxu0 %vm8669_vm4, %v8608_v48  ;;  %3108 = vmatpush.msk.msrb.mxu1 %vm8670_vm2, %v8608_v48  ;;  %vm8675_vm4 = vnez %v8461_v27  ;;  %vm8676_vm2 = vnez %v8463_v28  ;;  %v8923_v27 = vld [vmem:[#allocation38_spill] sm:$0xff] }
 0x370   :  { %3093 = vmatpush.msk.msrb.mxu0 %vm8671_vm15, %v8608_v48  ;;  %3109 = vmatpush.msk.msrb.mxu1 %vm8672_vm3, %v8608_v48  ;;  %vm8677_vm3 = vcmask 1043456  }
 0x371   :  { %vm8678_vm15 = vmmov %vm8677_vm3 }
 0x372   :  { %3142 = vmatpush.msk.msra.mxu0 %vm8673_vm13, %v8608_v48  ;;  %3145 = vmatpush.msk.msra.mxu1 %vm8674_vm7, %v8608_v48  ;;  %vm8679_vm0 = vmmov %vm8677_vm3 }
 0x373   :  { %vm8680_vm12 = vmmov %vm8679_vm0 }
 0x374   :  { %3143 = vmatpush.msk.msra.mxu0 %vm8675_vm4, %v8608_v48  ;;  %3146 = vmatpush.msk.msra.mxu1 %vm8676_vm2, %v8608_v48 }
 0x3ce   :  { %v787_v6 = vpop.f32.mrf.mxu0  ;;  %v807_v20 = vpop.f32.mrf.mxu1 }
 0x3cf   :  { %v815_v46 = vmul.f32 %v787_v6, %v787_v6  ;;  %v816_v9 = vmul.f32 %v807_v20, %v807_v20  ;;  %v810_v12 = vsel %vm8677_vm3, %v787_v6, 0.0  ;;  %v811_v10 = vsel %vm8678_vm15, %v807_v20, 0.0  ;;  %vm8683_vm15 = vmmov %vm8681_vm11 }
 0x3d0   :  { %v812_v35 = vadd.f32 %v811_v10, %v810_v12  ;;  %3065 = vmatmul.msk.f32.gmra.mxu2 %vm8683_vm15, %v3051_v3  ;;  %v3048_v10 = vld [vmem:[%s7988_s2 + $0x4] sm:$0xf] }
 0x3d1   :  { %v817_v63 = vsel %vm8679_vm0, %v815_v46, 0.0  ;;  %v818_v52 = vsel %vm8680_vm12, %v816_v9, 0.0  ;;  %vm8684_vm0 = vmmov %vm8681_vm11 }
 0x3d2   :  { %813 = vadd.xlane.f32.xlu2 %v812_v35  ;;  %v819_v55 = vadd.f32 %v818_v52, %v817_v63  ;;  %3073 = vmatmul.msk.f32.gmra.mxu3 %vm8684_vm0, %v3051_v3  ;;  %vm8685_vm3 = vmmov %vm8684_vm0 }
 0x3d3   :  { %vm8686_vm12 = vmmov %vm8684_vm0 }
 0x3d4   :  { %820 = vadd.xlane.f32.xlu1 %v819_v55  ;;  %vm8687_vm14 = vmmov %vm8684_vm0 }
 0x3d5   :  { %vm8688_vm11 = vmmov %vm8684_vm0 }
 0x3d8   :  { %3066 = vmatmul.msk.f32.gmra.mxu2 %vm8685_vm3, %v3052_v33 }
 0x3da   :  { %3074 = vmatmul.msk.f32.gmra.mxu3 %vm8686_vm12, %v3052_v33  ;;  %v3054_v33 = vld [vmem:[%s7987_s4 + $0x50] sm:$0xff]  ;;  %vm8689_vm12 = vmmov %vm8688_vm11 }
 0x3e0   :  { %3067 = vmatmul.msk.f32.gmra.mxu2 %vm8687_vm14, %v3053_v16  ;;  %vm8690_vm14 = vmmov %vm8688_vm11 }
 0x3e2   :  { %3075 = vmatmul.msk.f32.gmra.mxu3 %vm8688_vm11, %v3053_v16  ;;  %v3055_v16 = vld [vmem:[%s7987_s4 + $0x58] sm:$0xff] }
 0x3e8   :  { %3068 = vmatmul.msk.f32.gmra.mxu2 %vm8689_vm12, %v3054_v33 }
 0x3ea   :  { %3076 = vmatmul.msk.f32.gmra.mxu3 %vm8690_vm14, %v3054_v33 }
 0x3f0   :  { %3069 = vmatmul.msk.f32.gmra.mxu2 %vm8688_vm11, %v3055_v16 }
 0x445   :  { %v814_v40 = vpop.xlane.xlu2 %813 }
 0x446   :  { %v822_v23 = vmul.f32 0.00390625, %v814_v40 }
 0x447   :  { %v821_v61 = vpop.xlane.xlu1 %820 }
 0x448   :  { %v824_v59 = vmul.f32 %v822_v23, %v822_v23  ;;  %v823_v7 = vmul.f32 0.00390625, %v821_v61 }
 0x44a   :  { %v825_v31 = vsub.f32 %v823_v7, %v824_v59 }
 0x44c   :  { %v826_v26 = vmax.f32 %v825_v31, 0.0 }
 0x44e   :  { %v827_v51 = vadd.f32 1e-05, %v826_v26  ;;  %v906_v26 = vpop.f32.mrf.mxu2 }
 0x450   :  { %3783 = vrsqrt.f32 %v827_v51  ;;  %vm834_vm0 = vweird.f32 %v827_v51 }
 0x456   :  { %v3784_v11 = vpop.eup %3783 }
 0x457   :  { %v829_v18 = vmul.f32 %v3784_v11, %v827_v51  ;;  %vm835_vm15 = vweird.f32 %v3784_v11 }
 0x458   :  { %vm836_vm3 = vmor %vm834_vm0, %vm835_vm15  ;;  %vm8692_vm0 = vcmp.lt.s32.totalorder %v3869_v17, 1 }
 0x459   :  { %v830_v46 = vmul.f32 %v3784_v11, %v829_v18  ;;  %vm8691_vm15 = vmmov %vm8688_vm11  ;;  %vm8698_vm11 = vcmp.lt.s32.totalorder %v3869_v17, 127 }
 0x45a   :  { %3077 = vmatmul.msk.f32.gmra.mxu3 %vm8691_vm15, %v3055_v16  ;;  %vm8699_vm15 = vmmov %vm8698_vm11 }
 0x45b   :  { %v831_v9 = vmul.f32 0.5, %v830_v46 }
 0x45d   :  { %v832_v12 = vsub.f32 1.5, %v831_v9 }
 0x45f   :  { %v833_v35 = vmul.f32 %v3784_v11, %v832_v12 }
 0x461   :  { %v837_v63 = vsel %vm836_vm3, %v3784_v11, %v833_v35  ;;  %vm8693_vm3 = vmmov %vm8692_vm0 }
 0x462   :  { %v838_v52 = vmul.f32 %v3048_v10, %v837_v63 }
 0x464   :  { %841 = vperm.xlu0 %3778, %v838_v52   ;;  %v846_v55 = vmul.f32 %v838_v52, %v822_v23  ;;  %v8694_v52 = vld [vmem:[#allocation53_spill] sm:$0xff] }
 0x465   :  { %vm8695_vm12 = vnez %v8694_v52 }
 0x466   :  { %v847_v3 = vsub.f32 %v3049_v62, %v846_v55  ;;  %v8696_v62 = vld [vmem:[#allocation54_spill] sm:$0xff] }
 0x467   :  { %vm8697_vm14 = vnez %v8696_v62 }
 0x46c   :  { %850 = vperm.xlu0 %3778, %v847_v3  }
 0x4d6   :  { %v842_v40 = vpop.permute.xlu0 %841 }
 0x4d7   :  { %v844_v23 = vmul.f32 %v842_v40, %v787_v6  ;;  %v845_v61 = vmul.f32 %v842_v40, %v807_v20  ;;  %v941_v6 = vpop.f32.mrf.mxu3  ;;  %v909_v20 = vpop.f32.mrf.mxu2 }
 0x4de   :  { %v851_v59 = vpop.permute.xlu0 %850 }
 0x4df   :  { %v4931_v7 = vadd.f32 %v851_v59, %v844_v23  ;;  %v4933_v31 = vadd.f32 %v851_v59, %v845_v61  ;;  %v944_v51 = vpop.f32.mrf.mxu3  ;;  %v912_v11 = vpop.f32.mrf.mxu2 }
 0x4e1   :  { %857 = vrot.lane.b32.xlu0 %v4933_v31, %s3794_s25  ;;  %863 = vrot.lane.b32.xlu1 %v4931_v7, %s3793_s24  ;;  %v1019_v15 = vperm.slane %v4931_v7, 3  ;;  %v1001_v52 = vperm.slane %v4931_v7, 1  ;;  %v995_v42 = vperm.slane %v4931_v7, 0 }
 0x4e2   :  { %855 = vrot.lane.b32.xlu2 %v4931_v7, %s3794_s25 }
 0x4e3   :  { %v997_v53 = vmul.f32 %v995_v42, %v912_v11 }
 0x4e7   :  { %v947_v18 = vpop.f32.mrf.mxu3  ;;  %v915_v12 = vpop.f32.mrf.mxu2 }
 0x4e8   :  { %v1021_v50 = vmul.f32 %v1019_v15, %v915_v12 }
 0x4e9   :  { %865 = vrot.lane.b32.xlu0 %v4933_v31, %s3793_s24 }
 0x4ef   :  { %v950_v63 = vpop.f32.mrf.mxu3 }
 0x53c   :  { %v856_v46 = vpop.permute.xlu2 %855 }
 0x553   :  { %v858_v9 = vpop.permute.xlu0 %857 }
 0x554   :  { %v859_v10 = vsel %vm8692_vm0, %v856_v46, %v858_v9  ;;  %v860_v35 = vsel %vm8693_vm3, %v858_v9, %v856_v46 }
 0x555   :  { %v861_v55 = vsel %vm8695_vm12, 0.0, %v860_v35  ;;  %v862_v3 = vsel %vm8697_vm14, 0.0, %v859_v10  ;;  %v1002_v35 = vperm.slane %v4933_v31, 1 }
 0x556   :  { %v959_v33 = vperm.slane %v861_v55, 0  ;;  %v960_v16 = vperm.slane %v862_v3, 0  ;;  %v965_v40 = vperm.slane %v861_v55, 1  ;;  %v966_v23 = vperm.slane %v862_v3, 1 }
 0x557   :  { %v977_v61 = vperm.slane %v861_v55, 2  ;;  %v978_v59 = vperm.slane %v862_v3, 2  ;;  %v983_v19 = vperm.slane %v861_v55, 3  ;;  %v984_v43 = vperm.slane %v862_v3, 3  ;;  %v864_v3 = vpop.permute.xlu1 %863 }
 0x558   :  { %v967_v25 = vmul.f32 %v965_v40, %v906_v26  ;;  %v968_v0 = vmul.f32 %v966_v23, %v941_v6  ;;  %v961_v46 = vmul.f32 %v959_v33, %v906_v26  ;;  %v962_v62 = vmul.f32 %v960_v16, %v941_v6  ;;  %v918_v26 = vpop.f32.mrf.mxu2 }
 0x559   :  { %v985_v9 = vmul.f32 %v983_v19, %v909_v20  ;;  %v986_v60 = vmul.f32 %v984_v43, %v944_v51  ;;  %v979_v39 = vmul.f32 %v977_v61, %v909_v20  ;;  %v980_v36 = vmul.f32 %v978_v59, %v944_v51  ;;  %v953_v43 = vpop.f32.mrf.mxu3  ;;  %v8700_v59 = vld [vmem:[#allocation59_spill] sm:$0xff] }
 0x55a   :  { %v971_v10 = vrot.slane %v967_v25, 4  ;;  %v972_v58 = vrot.slane %v968_v0, 4  ;;  %v996_v55 = vperm.slane %v4933_v31, 0  ;;  %v1020_v0 = vperm.slane %v4933_v31, 3 }
 0x55b   :  { %v866_v57 = vpop.permute.xlu0 %865  ;;  %v989_v25 = vrot.slane %v985_v9, 4  ;;  %v1003_v20 = vmul.f32 %v1001_v52, %v912_v11  ;;  %v1004_v51 = vmul.f32 %v1002_v35, %v947_v18  ;;  %v990_v61 = vrot.slane %v986_v60, 4 }
 0x55c   :  { %v975_v40 = vadd.f32 %v971_v10, %v961_v46  ;;  %v976_v23 = vadd.f32 %v972_v58, %v962_v62  ;;  %v867_v19 = vsel %vm8698_vm11, %v864_v3, %v866_v57  ;;  %v868_v6 = vsel %vm8699_vm15, %v866_v57, %v864_v3  ;;  %v8702_v10 = vld [vmem:[#allocation60_spill] sm:$0xff] }
 0x55d   :  { %vm8701_vm0 = vnez %v8700_v59  ;;  %v1013_v58 = vperm.slane %v4931_v7, 2  ;;  %v1014_v62 = vperm.slane %v4933_v31, 2  ;;  %vm8703_vm3 = vnez %v8702_v10 }
 0x55e   :  { %v981_v33 = vadd.f32 %v979_v39, %v975_v40  ;;  %v982_v16 = vadd.f32 %v980_v36, %v976_v23  ;;  %v869_v46 = vsel %vm8701_vm0, 0.0, %v867_v19  ;;  %v870_v54 = vsel %vm8703_vm3, 0.0, %v868_v6 }
 0x55f   :  { %v998_v9 = vmul.f32 %v996_v55, %v947_v18  ;;  %v1022_v52 = vmul.f32 %v1020_v0, %v950_v63  ;;  %v1037_v35 = vperm.slane %v869_v46, 1  ;;  %v1007_v39 = vrot.slane %v1003_v20, 4 }
 0x560   :  { %v993_v57 = vadd.f32 %v989_v25, %v981_v33  ;;  %v994_v3 = vadd.f32 %v990_v61, %v982_v16  ;;  %v1038_v40 = vperm.slane %v870_v54, 1  ;;  %v1008_v23 = vrot.slane %v1004_v51, 4  ;;  %v921_v42 = vpop.f32.mrf.mxu2 }
 0x561   :  { %v1015_v19 = vmul.f32 %v1013_v58, %v915_v12  ;;  %v1031_v59 = vperm.slane %v869_v46, 0  ;;  %v1016_v7 = vmul.f32 %v1014_v62, %v950_v63  ;;  %v1032_v49 = vperm.slane %v870_v54, 0  ;;  %v956_v20 = vpop.f32.mrf.mxu3 }
 0x562   :  { %v999_v36 = vadd.f32 %v997_v53, %v993_v57  ;;  %v1000_v60 = vadd.f32 %v998_v9, %v994_v3  ;;  %v1025_v10 = vrot.slane %v1021_v50, 4  ;;  %v1026_v6 = vrot.slane %v1022_v52, 4 }
 0x563   :  { %v1039_v25 = vmul.f32 %v1037_v35, %v918_v26  ;;  %v1055_v33 = vperm.slane %v869_v46, 3  ;;  %v1040_v18 = vmul.f32 %v1038_v40, %v953_v43  ;;  %v1056_v55 = vperm.slane %v870_v54, 3 }
 0x564   :  { %v1011_v31 = vadd.f32 %v1007_v39, %v999_v36  ;;  %v1012_v47 = vadd.f32 %v1008_v23, %v1000_v60  ;;  %v1033_v0 = vmul.f32 %v1031_v59, %v918_v26  ;;  %v1049_v53 = vperm.slane %v869_v46, 2 }
 0x565   :  { %v1034_v16 = vmul.f32 %v1032_v49, %v953_v43  ;;  %v1050_v61 = vperm.slane %v870_v54, 2  ;;  %v1043_v63 = vrot.slane %v1039_v25, 4  ;;  %v1057_v58 = vmul.f32 %v1055_v33, %v921_v42 }
 0x566   :  { %v1017_v11 = vadd.f32 %v1015_v19, %v1011_v31  ;;  %v1018_v15 = vadd.f32 %v1016_v7, %v1012_v47  ;;  %v1044_v50 = vrot.slane %v1040_v18, 4  ;;  %v1058_v3 = vmul.f32 %v1056_v55, %v956_v20  ;;  %v8706_v55 = vld [vmem:[#allocation6_spill] sm:$0xff] }
 0x567   :  { %v1051_v52 = vmul.f32 %v1049_v53, %v921_v42  ;;  %v1052_v39 = vmul.f32 %v1050_v61, %v956_v20  ;;  %v1061_v36 = vrot.slane %v1057_v58, 4  ;;  %v8708_v53 = vld [vmem:[#allocation8_spill] sm:$0xff]  ;;  %v8709_v20 = vld [vmem:[#allocation9_spill] sm:$0xff]  ;;  %v8716_v58 = vld [vmem:[#allocation15_spill] sm:$0xff] }
 0x568   :  { %v1029_v51 = vadd.f32 %v1025_v10, %v1017_v11  ;;  %v1030_v12 = vadd.f32 %v1026_v6, %v1018_v15  ;;  %v1062_v26 = vrot.slane %v1058_v3, 4  ;;  %v4992_v6 = vmul.u32 8, %v3869_v17  ;;  %v8714_v61 = vld [vmem:[#allocation13_spill] sm:$0xff] }
 0x56a   :  { %v1035_v62 = vadd.f32 %v1033_v0, %v1029_v51  ;;  %v1036_v57 = vadd.f32 %v1034_v16, %v1030_v12  ;;  %8704 = vst [vmem:[#allocation61_spill] sm:$0xff] %v4992_v6  ;;  %v4997_v15 = vadd.s32 1, %v4992_v6  ;;  %v8707_v0 = vld [vmem:[#allocation7_spill] sm:$0xff]  ;;  %v8710_v16 = vld [vmem:[#allocation10_spill] sm:$0xff]  ;;  %v8713_v12 = vld [vmem:[#allocation12_spill] sm:$0xff]  ;;  %v5785_v17 = vadd.s32 4, %v4992_v6 }
 0x56b   :  { %v8711_v51 = vld [vmem:[#allocation11_spill] sm:$0xff]  ;;  %v5790_v45 = vadd.s32 5, %v4992_v6 }
 0x56c   :  { %v1047_v9 = vadd.f32 %v1043_v63, %v1035_v62  ;;  %v1048_v35 = vadd.f32 %v1044_v50, %v1036_v57  ;;  %8705 = vst [vmem:[#allocation62_spill] sm:$0xff] %v4997_v15  ;;  %vm8194_vm11 = vcmp.eq.s32.totalorder %v8706_v55, %v4997_v15  ;;  %vm8193_vm15 = vcmp.eq.s32.totalorder %v8707_v0, %v4997_v15  ;;  %v8715_v63 = vld [vmem:[#allocation14_spill] sm:$0xff]  ;;  %v8717_v57 = vld [vmem:[#allocation16_spill] sm:$0xff]  ;;  %v8718_v50 = vld [vmem:[#allocation17_spill] sm:$0xff] }
 0x56d   :  { %3186 = vmatpush.msk.msra.mxu2 %vm8194_vm11, %v8608_v48  ;;  %3202 = vmatpush.msk.msra.mxu3 %vm8193_vm15, %v8608_v48  ;;  %vm8195_vm0 = vcmp.eq.s32.totalorder %v8709_v20, %v4997_v15  ;;  %vm8197_vm14 = vcmp.eq.s32.totalorder %v8710_v16, %v4997_v15  ;;  %vm8196_vm3 = vcmp.eq.s32.totalorder %v8711_v51, %v4997_v15 }
 0x56e   :  { %v1053_v47 = vadd.f32 %v1051_v52, %v1047_v9  ;;  %v1054_v60 = vadd.f32 %v1052_v39, %v1048_v35  ;;  %vm8712_vm12 = vcmp.eq.s32.totalorder %v8708_v53, %v4997_v15  ;;  %vm8199_vm15 = vcmp.eq.s32.totalorder %v8713_v12, %v4997_v15  ;;  %v8719_v9 = vld [vmem:[#allocation18_spill] sm:$0xff]  ;;  %v8720_v52 = vld [vmem:[#allocation19_spill] sm:$0xff]  ;;  %v8721_v39 = vld [vmem:[#allocation20_spill] sm:$0xff]  ;;  %8778 = vst [vmem:[#allocation8_spill] sm:$0xff] %v5785_v17 }
 0x56f   :  { %3187 = vmatpush.msk.msra.mxu2 %vm8712_vm12, %v8608_v48  ;;  %3203 = vmatpush.msk.msra.mxu3 %vm8195_vm0, %v8608_v48  ;;  %vm8198_vm11 = vcmp.eq.s32.totalorder %v8714_v61, %v4997_v15  ;;  %vm8201_vm12 = vcmp.eq.s32.totalorder %v8715_v63, %v4997_v15  ;;  %vm8200_vm0 = vcmp.eq.s32.totalorder %v8716_v58, %v4997_v15 }
 0x570   :  { %v4967_v59 = vadd.f32 %v1061_v36, %v1053_v47  ;;  %v4969_v49 = vadd.f32 %v1062_v26, %v1054_v60  ;;  %v8722_v47 = vld [vmem:[#allocation21_spill] sm:$0xff]  ;;  %v8723_v60 = vld [vmem:[#allocation24_spill] sm:$0xff]  ;;  %v8724_v26 = vld [vmem:[#allocation26_spill] sm:$0xff]  ;;  %8779 = vst [vmem:[#allocation9_spill] sm:$0xff] %v5790_v45 }
 0x571   :  { %3188 = vmatpush.msk.msra.mxu2 %vm8197_vm14, %v8608_v48  ;;  %3204 = vmatpush.msk.msra.mxu3 %vm8196_vm3, %v8608_v48  ;;  %vm8203_vm3 = vcmp.eq.s32.totalorder %v8717_v57, %v4997_v15  ;;  %vm8202_vm14 = vcmp.eq.s32.totalorder %v8718_v50, %v4997_v15 }
 0x572   :  { %1083 = vmatmul.f32.vlgmr.msrb.gmra.mxu0 %v4967_v59  ;;  %1103 = vmatmul.f32.vlgmr.msrb.gmra.mxu1 %v4969_v49  ;;  %v1107_v54 = vmul.f32 %v4967_v59, %v4967_v59  ;;  %v1108_v43 = vmul.f32 %v4969_v49, %v4969_v49 }
 0x573   :  { %3148 = vmatpush.msk.msrb.mxu0 %vm8673_vm13, %v8608_v48  ;;  %3151 = vmatpush.msk.msrb.mxu1 %vm8674_vm7, %v8608_v48 }
 0x574   :  { %1125 = vmatmul.f32.vlgmr.msrb.gmra.mxu2 %v1107_v54  ;;  %1145 = vmatmul.f32.vlgmr.msrb.gmra.mxu3 %v1108_v43  ;;  %v8727_v43 = vld [vmem:[#allocation29_spill] sm:$0xff] }
 0x575   :  { %3149 = vmatpush.msk.msrb.mxu0 %vm8675_vm4, %v8608_v48  ;;  %3152 = vmatpush.msk.msrb.mxu1 %vm8676_vm2, %v8608_v48  ;;  %vm8733_vm6 = vcmp.eq.s32.totalorder %v8727_v43, %v4997_v15 }
 0x576   :  { %3189 = vmatpush.msk.msra.mxu2 %vm8199_vm15, %v8608_v48  ;;  %3205 = vmatpush.msk.msra.mxu3 %vm8198_vm11, %v8608_v48  ;;  %vm8204_vm11 = vcmp.eq.s32.totalorder %v8719_v9, %v4997_v15  ;;  %vm8205_vm15 = vcmp.eq.s32.totalorder %v8720_v52, %v4997_v15 }
 0x578   :  { %3190 = vmatpush.msk.msra.mxu2 %vm8201_vm12, %v8608_v48  ;;  %3206 = vmatpush.msk.msra.mxu3 %vm8200_vm0, %v8608_v48  ;;  %vm8725_vm12 = vcmp.eq.s32.totalorder %v8721_v39, %v4997_v15 }
 0x57a   :  { %3191 = vmatpush.msk.msra.mxu2 %vm8203_vm3, %v8608_v48  ;;  %3207 = vmatpush.msk.msra.mxu3 %vm8202_vm14, %v8608_v48 }
 0x57c   :  { %3192 = vmatpush.msk.msra.mxu2 %vm8204_vm11, %v8608_v48  ;;  %3208 = vmatpush.msk.msra.mxu3 %vm8205_vm15, %v8608_v48  ;;  %vm8726_vm11 = vcmp.eq.s32.totalorder %v8722_v47, %v4997_v15 }
 0x57e   :  { %3193 = vmatpush.msk.msra.mxu2 %vm8725_vm12, %v8608_v48  ;;  %3209 = vmatpush.msk.msra.mxu3 %vm8726_vm11, %v8608_v48  ;;  %vm8729_vm12 = vcmp.eq.s32.totalorder %v8723_v60, %v4997_v15  ;;  %vm8730_vm11 = vcmp.eq.s32.totalorder %v8724_v26, %v4997_v15 }
 0x580   :  { %3194 = vmatpush.msk.msra.mxu2 %vm8729_vm12, %v8608_v48  ;;  %3210 = vmatpush.msk.msra.mxu3 %vm8730_vm11, %v8608_v48  ;;  %vm8737_vm11 = vcmask 130048  }
 0x582   :  { %3195 = vmatpush.msk.msra.mxu2 %vm8733_vm6, %v8608_v48 }
 0x5ef   :  { %v1084_v46 = vpop.f32.mrf.mxu0  ;;  %v1104_v10 = vpop.f32.mrf.mxu1 }
 0x5f0   :  { %v1105_v40 = vadd.f32 %v1104_v10, %v1084_v46  ;;  %v8728_v46 = vld [vmem:[#allocation31_spill] sm:$0xff] }
 0x5f1   :  { %vm8734_vm12 = vcmp.eq.s32.totalorder %v8728_v46, %v4997_v15 }
 0x5f2   :  { %v4989_v23 = vmul.f32 0.0625, %v1105_v40  ;;  %v3056_v40 = vld [vmem:[%s7990_s5 + $0x4] sm:$0xf]  ;;  %3211 = vmatpush.msk.msra.mxu3 %vm8734_vm12, %v8608_v48  ;;  %vm8738_vm12 = vmmov %vm8737_vm11 }
 0x5f4   :  { %v1151_v25 = vmul.f32 %v4989_v23, %v4989_v23 }
 0x5f7   :  { %v1126_v19 = vpop.f32.mrf.mxu2  ;;  %v1146_v7 = vpop.f32.mrf.mxu3 }
 0x5f8   :  { %v1147_v31 = vadd.f32 %v1146_v7, %v1126_v19  ;;  %v8731_v19 = vld [vmem:[#allocation34_spill] sm:$0xff]  ;;  %v8732_v7 = vld [vmem:[#allocation35_spill] sm:$0xff] }
 0x5f9   :  { %vm8207_vm14 = vcmp.eq.s32.totalorder %v8731_v19, %v4997_v15  ;;  %vm8208_vm9 = vcmp.eq.s32.totalorder %v8732_v7, %v4997_v15 }
 0x5fa   :  { %v1150_v33 = vmul.f32 0.0625, %v1147_v31  ;;  %3196 = vmatpush.msk.msra.mxu2 %vm8207_vm14, %v8608_v48  ;;  %3212 = vmatpush.msk.msra.mxu3 %vm8208_vm9, %v8608_v48  ;;  %vm8739_vm9 = vcmp.eq.s32.totalorder %v8707_v0, %v4992_v6  ;;  %vm8217_vm14 = vcmp.eq.s32.totalorder %v8715_v63, %v4992_v6 }
 0x5fc   :  { %v1152_v42 = vsub.f32 %v1150_v33, %v1151_v25  ;;  %v8735_v33 = vld [vmem:[#allocation38_spill] sm:$0xff] }
 0x5fd   :  { %vm8210_vm6 = vcmp.eq.s32.totalorder %v8735_v33, %v4997_v15 }
 0x5fe   :  { %v1153_v11 = vmax.f32 %v1152_v42, 0.0  ;;  %v8736_v42 = vld [vmem:[#allocation39_spill] sm:$0xff]  ;;  %3197 = vmatpush.msk.msra.mxu2 %vm8210_vm6, %v8608_v48 }
 0x600   :  { %v1154_v18 = vadd.f32 1e-05, %v1153_v11  ;;  %v8740_v11 = vld [vmem:[#allocation41_spill] sm:$0xff] }
 0x602   :  { %3785 = vrsqrt.f32 %v1154_v18  ;;  %vm1161_vm3 = vweird.f32 %v1154_v18 }
 0x608   :  { %v3786_v62 = vpop.eup %3785 }
 0x609   :  { %v1156_v3 = vmul.f32 %v3786_v62, %v1154_v18  ;;  %vm1162_vm0 = vweird.f32 %v3786_v62  ;;  %v8741_v18 = vld [vmem:[#allocation42_spill] sm:$0xff] }
 0x60a   :  { %vm1163_vm15 = vmor %vm1161_vm3, %vm1162_vm0  ;;  %vm8209_vm0 = vcmp.eq.s32.totalorder %v8706_v55, %v4992_v6  ;;  %vm8216_vm3 = vcmp.eq.s32.totalorder %v8713_v12, %v4992_v6 }
 0x60b   :  { %v1157_v35 = vmul.f32 %v3786_v62, %v1156_v3  ;;  %v8744_v3 = vld [vmem:[#allocation44_spill] sm:$0xff] }
 0x60c   :  { %vm8213_vm6 = vcmp.eq.s32.totalorder %v8744_v3, %v4997_v15 }
 0x60d   :  { %v1158_v36 = vmul.f32 0.5, %v1157_v35  ;;  %v8745_v35 = vld [vmem:[#allocation46_spill] sm:$0xff] }
 0x60f   :  { %v1159_v54 = vsub.f32 1.5, %v1158_v36 }
 0x611   :  { %v1160_v10 = vmul.f32 %v3786_v62, %v1159_v54  ;;  %v8749_v54 = vld [vmem:[#allocation3_spill] sm:$0xff] }
 0x613   :  { %v1164_v31 = vsel %vm1163_vm15, %v3786_v62, %v1160_v10  ;;  %vm8211_vm15 = vcmp.eq.s32.totalorder %v8736_v42, %v4997_v15  ;;  %v8750_v10 = vld [vmem:[#allocation48_spill] sm:$0xff] }
 0x614   :  { %v1165_v25 = vmul.f32 %v3056_v40, %v1164_v31  ;;  %3213 = vmatpush.msk.msra.mxu3 %vm8211_vm15, %v8608_v48  ;;  %vm8214_vm15 = vcmp.eq.s32.totalorder %v8745_v35, %v4997_v15  ;;  %v5233_v40 = vadd.s32 3, %v4992_v6  ;;  %v8755_v31 = vld [vmem:[#allocation2_spill] sm:$0xff] }
 0x616   :  { %3144 = vmatmul.msk.f32.vlgmr.msra.gmra.mxu0 %vm8737_vm11, %v1165_v25  ;;  %3147 = vmatmul.msk.f32.vlgmr.msra.gmra.mxu1 %vm8738_vm12, %v1165_v25  ;;  %vm8212_vm11 = vcmp.eq.s32.totalorder %v8740_v11, %v4997_v15  ;;  %vm8215_vm12 = vcmp.eq.s32.totalorder %v8741_v18, %v4997_v15  ;;  %v1166_v62 = vmul.f32 %v1165_v25, %v4989_v23  ;;  %v3057_v23 = vld [vmem:[%s7991_s6 + $0x4] sm:$0xf]  ;;  %v8756_v25 = vld [vmem:[#allocation50_spill] sm:$0xff] }
 0x617   :  { %3154 = vmatpush.msk.msra.mxu0 %vm8209_vm0, %v8608_v48  ;;  %3170 = vmatpush.msk.msra.mxu1 %vm8739_vm9, %v8608_v48  ;;  %vm8742_vm9 = vcmp.eq.s32.totalorder %v8708_v53, %v4992_v6  ;;  %vm8743_vm0 = vcmp.eq.s32.totalorder %v8709_v20, %v4992_v6  ;;  %8751 = vst [vmem:[#allocation6_spill] sm:$0xff] %v5233_v40 }
 0x618   :  { %3198 = vmatpush.msk.msra.mxu2 %vm8212_vm11, %v8608_v48  ;;  %3214 = vmatpush.msk.msra.mxu3 %vm8215_vm12, %v8608_v48  ;;  %v1167_v36 = vsub.f32 %v3057_v23, %v1166_v62  ;;  %vm8222_vm11 = vcmp.eq.s32.totalorder %v8706_v55, %v5233_v40  ;;  %v5442_v62 = vadd.s32 2, %v4992_v6 }
 0x619   :  { %3155 = vmatpush.msk.msra.mxu0 %vm8742_vm9, %v8608_v48  ;;  %3171 = vmatpush.msk.msra.mxu1 %vm8743_vm0, %v8608_v48  ;;  %vm8746_vm0 = vcmp.eq.s32.totalorder %v8710_v16, %v4992_v6  ;;  %vm8747_vm9 = vcmp.eq.s32.totalorder %v8711_v51, %v4992_v6 }
 0x61a   :  { %3199 = vmatpush.msk.msra.mxu2 %vm8213_vm6, %v8608_v48  ;;  %3215 = vmatpush.msk.msra.mxu3 %vm8214_vm15, %v8608_v48  ;;  %vm8219_vm6 = vcmp.eq.s32.totalorder %v8750_v10, %v4997_v15  ;;  %vm8752_vm15 = vcmask 130048   ;;  %8773 = vst [vmem:[#allocation7_spill] sm:$0xff] %v5442_v62 }
 0x61b   :  { %3156 = vmatpush.msk.msra.mxu0 %vm8746_vm0, %v8608_v48  ;;  %3172 = vmatpush.msk.msra.mxu1 %vm8747_vm9, %v8608_v48  ;;  %vm8748_vm0 = vcmp.eq.s32.totalorder %v8714_v61, %v4992_v6  ;;  %vm8218_vm9 = vcmp.eq.s32.totalorder %v8749_v54, %v4997_v15  ;;  %vm8753_vm12 = vmmov %vm8752_vm15 }
 0x61c   :  { %3200 = vmatpush.msk.msra.mxu2 %vm8218_vm9, %v8608_v48  ;;  %3216 = vmatpush.msk.msra.mxu3 %vm8219_vm6, %v8608_v48  ;;  %vm8223_vm9 = vcmp.eq.s32.totalorder %v8707_v0, %v5233_v40  ;;  %vm8224_vm6 = vcmp.eq.s32.totalorder %v8708_v53, %v5233_v40 }
 0x61d   :  { %3157 = vmatpush.msk.msra.mxu0 %vm8216_vm3, %v8608_v48  ;;  %3173 = vmatpush.msk.msra.mxu1 %vm8748_vm0, %v8608_v48  ;;  %vm8754_vm0 = vcmp.eq.s32.totalorder %v8716_v58, %v4992_v6  ;;  %vm8236_vm3 = vcmp.eq.s32.totalorder %v8744_v3, %v4992_v6 }
 0x61e   :  { %3150 = vmatmul.msk.f32.vlgmr.msrb.gmra.mxu0 %vm8752_vm15, %v1167_v36  ;;  %3153 = vmatmul.msk.f32.vlgmr.msrb.gmra.mxu1 %vm8753_vm12, %v1167_v36  ;;  %vm8220_vm15 = vcmp.eq.s32.totalorder %v8755_v31, %v4997_v15  ;;  %vm8221_vm12 = vcmp.eq.s32.totalorder %v8756_v25, %v4997_v15 }
 0x61f   :  { %3158 = vmatpush.msk.msra.mxu0 %vm8217_vm14, %v8608_v48  ;;  %3174 = vmatpush.msk.msra.mxu1 %vm8754_vm0, %v8608_v48  ;;  %vm8757_vm0 = vcmp.eq.s32.totalorder %v8717_v57, %v4992_v6  ;;  %vm8758_vm14 = vcmp.eq.s32.totalorder %v8718_v50, %v4992_v6 }
 0x620   :  { %3201 = vmatpush.msk.msra.mxu2 %vm8220_vm15, %v8608_v48  ;;  %3217 = vmatpush.msk.msra.mxu3 %vm8221_vm12, %v8608_v48  ;;  %vm8225_vm15 = vcmp.eq.s32.totalorder %v8709_v20, %v5233_v40  ;;  %vm8226_vm12 = vcmp.eq.s32.totalorder %v8710_v16, %v5233_v40 }
 0x621   :  { %3159 = vmatpush.msk.msra.mxu0 %vm8757_vm0, %v8608_v48  ;;  %3175 = vmatpush.msk.msra.mxu1 %vm8758_vm14, %v8608_v48  ;;  %vm8759_vm14 = vcmp.eq.s32.totalorder %v8719_v9, %v4992_v6  ;;  %vm8760_vm0 = vcmp.eq.s32.totalorder %v8720_v52, %v4992_v6 }
 0x622   :  { %3250 = vmatpush.msk.msrb.mxu2 %vm8222_vm11, %v8608_v48  ;;  %3266 = vmatpush.msk.msrb.mxu3 %vm8223_vm9, %v8608_v48  ;;  %vm8227_vm11 = vcmp.eq.s32.totalorder %v8711_v51, %v5233_v40  ;;  %vm8228_vm9 = vcmp.eq.s32.totalorder %v8713_v12, %v5233_v40 }
 0x623   :  { %3160 = vmatpush.msk.msra.mxu0 %vm8759_vm14, %v8608_v48  ;;  %3176 = vmatpush.msk.msra.mxu1 %vm8760_vm0, %v8608_v48  ;;  %vm8761_vm14 = vcmp.eq.s32.totalorder %v8721_v39, %v4992_v6  ;;  %vm8762_vm0 = vcmp.eq.s32.totalorder %v8722_v47, %v4992_v6 }
 0x624   :  { %3251 = vmatpush.msk.msrb.mxu2 %vm8224_vm6, %v8608_v48  ;;  %3267 = vmatpush.msk.msrb.mxu3 %vm8225_vm15, %v8608_v48  ;;  %vm8229_vm6 = vcmp.eq.s32.totalorder %v8714_v61, %v5233_v40  ;;  %vm8230_vm15 = vcmp.eq.s32.totalorder %v8715_v63, %v5233_v40 }
 0x625   :  { %3161 = vmatpush.msk.msra.mxu0 %vm8761_vm14, %v8608_v48  ;;  %3177 = vmatpush.msk.msra.mxu1 %vm8762_vm0, %v8608_v48  ;;  %vm8763_vm14 = vcmp.eq.s32.totalorder %v8723_v60, %v4992_v6  ;;  %vm8764_vm0 = vcmp.eq.s32.totalorder %v8724_v26, %v4992_v6 }
 0x626   :  { %3252 = vmatpush.msk.msrb.mxu2 %vm8226_vm12, %v8608_v48  ;;  %3268 = vmatpush.msk.msrb.mxu3 %vm8227_vm11, %v8608_v48  ;;  %vm8231_vm12 = vcmp.eq.s32.totalorder %v8716_v58, %v5233_v40  ;;  %vm8232_vm11 = vcmp.eq.s32.totalorder %v8717_v57, %v5233_v40 }
 0x627   :  { %3162 = vmatpush.msk.msra.mxu0 %vm8763_vm14, %v8608_v48  ;;  %3178 = vmatpush.msk.msra.mxu1 %vm8764_vm0, %v8608_v48  ;;  %vm8765_vm14 = vcmp.eq.s32.totalorder %v8727_v43, %v4992_v6  ;;  %vm8766_vm0 = vcmp.eq.s32.totalorder %v8728_v46, %v4992_v6 }
 0x628   :  { %3253 = vmatpush.msk.msrb.mxu2 %vm8228_vm9, %v8608_v48  ;;  %3269 = vmatpush.msk.msrb.mxu3 %vm8229_vm6, %v8608_v48  ;;  %vm8233_vm9 = vcmp.eq.s32.totalorder %v8718_v50, %v5233_v40  ;;  %vm8234_vm6 = vcmp.eq.s32.totalorder %v8719_v9, %v5233_v40 }
 0x629   :  { %3163 = vmatpush.msk.msra.mxu0 %vm8765_vm14, %v8608_v48  ;;  %3179 = vmatpush.msk.msra.mxu1 %vm8766_vm0, %v8608_v48  ;;  %vm8767_vm14 = vcmp.eq.s32.totalorder %v8731_v19, %v4992_v6  ;;  %vm8768_vm0 = vcmp.eq.s32.totalorder %v8732_v7, %v4992_v6 }
 0x62a   :  { %3254 = vmatpush.msk.msrb.mxu2 %vm8230_vm15, %v8608_v48  ;;  %3270 = vmatpush.msk.msrb.mxu3 %vm8231_vm12, %v8608_v48  ;;  %vm8235_vm15 = vcmp.eq.s32.totalorder %v8720_v52, %v5233_v40  ;;  %vm8239_vm12 = vcmp.eq.s32.totalorder %v8722_v47, %v5233_v40 }
 0x62b   :  { %3164 = vmatpush.msk.msra.mxu0 %vm8767_vm14, %v8608_v48  ;;  %3180 = vmatpush.msk.msra.mxu1 %vm8768_vm0, %v8608_v48  ;;  %vm8769_vm14 = vcmp.eq.s32.totalorder %v8735_v33, %v4992_v6  ;;  %vm8770_vm0 = vcmp.eq.s32.totalorder %v8736_v42, %v4992_v6 }
 0x62c   :  { %3255 = vmatpush.msk.msrb.mxu2 %vm8232_vm11, %v8608_v48  ;;  %3271 = vmatpush.msk.msrb.mxu3 %vm8233_vm9, %v8608_v48  ;;  %vm8237_vm11 = vcmp.eq.s32.totalorder %v8721_v39, %v5233_v40  ;;  %vm8241_vm9 = vcmp.eq.s32.totalorder %v8755_v31, %v4992_v6 }
 0x62d   :  { %3165 = vmatpush.msk.msra.mxu0 %vm8769_vm14, %v8608_v48  ;;  %3181 = vmatpush.msk.msra.mxu1 %vm8770_vm0, %v8608_v48  ;;  %vm8771_vm14 = vcmp.eq.s32.totalorder %v8740_v11, %v4992_v6  ;;  %vm8772_vm0 = vcmp.eq.s32.totalorder %v8741_v18, %v4992_v6 }
 0x62e   :  { %3256 = vmatpush.msk.msrb.mxu2 %vm8234_vm6, %v8608_v48  ;;  %3272 = vmatpush.msk.msrb.mxu3 %vm8235_vm15, %v8608_v48  ;;  %vm8240_vm6 = vcmp.eq.s32.totalorder %v8724_v26, %v5233_v40  ;;  %vm8243_vm15 = vcmp.eq.s32.totalorder %v8706_v55, %v5442_v62 }
 0x62f   :  { %3166 = vmatpush.msk.msra.mxu0 %vm8771_vm14, %v8608_v48  ;;  %3182 = vmatpush.msk.msra.mxu1 %vm8772_vm0, %v8608_v48  ;;  %vm8774_vm0 = vcmp.eq.s32.totalorder %v8745_v35, %v4992_v6  ;;  %vm8238_vm14 = vcmp.eq.s32.totalorder %v8723_v60, %v5233_v40 }
 0x630   :  { %3257 = vmatpush.msk.msrb.mxu2 %vm8237_vm11, %v8608_v48  ;;  %3273 = vmatpush.msk.msrb.mxu3 %vm8239_vm12, %v8608_v48  ;;  %vm8242_vm11 = vcmp.eq.s32.totalorder %v8707_v0, %v5442_v62  ;;  %vm8244_vm12 = vcmp.eq.s32.totalorder %v8708_v53, %v5442_v62 }
 0x631   :  { %3167 = vmatpush.msk.msra.mxu0 %vm8236_vm3, %v8608_v48  ;;  %3183 = vmatpush.msk.msra.mxu1 %vm8774_vm0, %v8608_v48  ;;  %vm8775_vm0 = vcmp.eq.s32.totalorder %v8749_v54, %v4992_v6  ;;  %vm8776_vm3 = vcmp.eq.s32.totalorder %v8750_v10, %v4992_v6 }
 0x632   :  { %3258 = vmatpush.msk.msrb.mxu2 %vm8238_vm14, %v8608_v48  ;;  %3274 = vmatpush.msk.msrb.mxu3 %vm8240_vm6, %v8608_v48  ;;  %vm8777_vm14 = vcmp.eq.s32.totalorder %v8756_v25, %v4992_v6  ;;  %vm8245_vm6 = vcmp.eq.s32.totalorder %v8709_v20, %v5442_v62 }
 0x633   :  { %3168 = vmatpush.msk.msra.mxu0 %vm8775_vm0, %v8608_v48  ;;  %3184 = vmatpush.msk.msra.mxu1 %vm8776_vm3, %v8608_v48  ;;  %vm8265_vm0 = vcmp.eq.s32.totalorder %v8727_v43, %v5233_v40  ;;  %vm8262_vm3 = vcmp.eq.s32.totalorder %v8728_v46, %v5233_v40 }
 0x634   :  { %3259 = vmatpush.msk.msrb.mxu2 %vm8265_vm0, %v8608_v48  ;;  %3275 = vmatpush.msk.msrb.mxu3 %vm8262_vm3, %v8608_v48  ;;  %vm8270_vm3 = vcmp.eq.s32.totalorder %v8735_v33, %v5233_v40  ;;  %vm8272_vm0 = vcmp.eq.s32.totalorder %v8741_v18, %v5442_v62 }
 0x635   :  { %3169 = vmatpush.msk.msra.mxu0 %vm8241_vm9, %v8608_v48  ;;  %3185 = vmatpush.msk.msra.mxu1 %vm8777_vm14, %v8608_v48  ;;  %vm8246_vm9 = vcmp.eq.s32.totalorder %v8710_v16, %v5442_v62  ;;  %vm8247_vm14 = vcmp.eq.s32.totalorder %v8711_v51, %v5442_v62 }
 0x637   :  { %3218 = vmatpush.msk.msrb.mxu0 %vm8243_vm15, %v8608_v48  ;;  %3234 = vmatpush.msk.msrb.mxu1 %vm8242_vm11, %v8608_v48  ;;  %vm8248_vm11 = vcmp.eq.s32.totalorder %v8713_v12, %v5442_v62  ;;  %vm8249_vm15 = vcmp.eq.s32.totalorder %v8714_v61, %v5442_v62 }
 0x639   :  { %3219 = vmatpush.msk.msrb.mxu0 %vm8244_vm12, %v8608_v48  ;;  %3235 = vmatpush.msk.msrb.mxu1 %vm8245_vm6, %v8608_v48  ;;  %vm8250_vm12 = vcmp.eq.s32.totalorder %v8715_v63, %v5442_v62  ;;  %vm8251_vm6 = vcmp.eq.s32.totalorder %v8716_v58, %v5442_v62 }
 0x63b   :  { %3220 = vmatpush.msk.msrb.mxu0 %vm8246_vm9, %v8608_v48  ;;  %3236 = vmatpush.msk.msrb.mxu1 %vm8247_vm14, %v8608_v48  ;;  %vm8252_vm9 = vcmp.eq.s32.totalorder %v8717_v57, %v5442_v62  ;;  %vm8253_vm14 = vcmp.eq.s32.totalorder %v8718_v50, %v5442_v62 }
 0x63d   :  { %3221 = vmatpush.msk.msrb.mxu0 %vm8248_vm11, %v8608_v48  ;;  %3237 = vmatpush.msk.msrb.mxu1 %vm8249_vm15, %v8608_v48  ;;  %vm8254_vm11 = vcmp.eq.s32.totalorder %v8719_v9, %v5442_v62  ;;  %vm8255_vm15 = vcmp.eq.s32.totalorder %v8720_v52, %v5442_v62 }
 0x63f   :  { %3222 = vmatpush.msk.msrb.mxu0 %vm8250_vm12, %v8608_v48  ;;  %3238 = vmatpush.msk.msrb.mxu1 %vm8251_vm6, %v8608_v48  ;;  %vm8258_vm12 = vcmp.eq.s32.totalorder %v8721_v39, %v5442_v62  ;;  %vm8256_vm6 = vcmp.eq.s32.totalorder %v8722_v47, %v5442_v62 }
 0x641   :  { %3223 = vmatpush.msk.msrb.mxu0 %vm8252_vm9, %v8608_v48  ;;  %3239 = vmatpush.msk.msrb.mxu1 %vm8253_vm14, %v8608_v48  ;;  %vm8257_vm9 = vcmp.eq.s32.totalorder %v8723_v60, %v5442_v62  ;;  %vm8259_vm14 = vcmp.eq.s32.totalorder %v8724_v26, %v5442_v62 }
 0x643   :  { %3224 = vmatpush.msk.msrb.mxu0 %vm8254_vm11, %v8608_v48  ;;  %3240 = vmatpush.msk.msrb.mxu1 %vm8255_vm15, %v8608_v48  ;;  %vm8261_vm11 = vcmp.eq.s32.totalorder %v8727_v43, %v5442_v62  ;;  %vm8260_vm15 = vcmp.eq.s32.totalorder %v8728_v46, %v5442_v62 }
 0x645   :  { %3225 = vmatpush.msk.msrb.mxu0 %vm8258_vm12, %v8608_v48  ;;  %3241 = vmatpush.msk.msrb.mxu1 %vm8256_vm6, %v8608_v48  ;;  %vm8264_vm6 = vcmp.eq.s32.totalorder %v8731_v19, %v5442_v62  ;;  %vm8267_vm12 = vcmp.eq.s32.totalorder %v8731_v19, %v5233_v40 }
 0x646   :  { %3260 = vmatpush.msk.msrb.mxu2 %vm8267_vm12, %v8608_v48  ;;  %vm8302_vm12 = vcmp.eq.s32.totalorder %v8741_v18, %v5233_v40 }
 0x647   :  { %3226 = vmatpush.msk.msrb.mxu0 %vm8257_vm9, %v8608_v48  ;;  %3242 = vmatpush.msk.msrb.mxu1 %vm8259_vm14, %v8608_v48  ;;  %vm8263_vm9 = vcmp.eq.s32.totalorder %v8732_v7, %v5442_v62  ;;  %vm8266_vm14 = vcmp.eq.s32.totalorder %v8732_v7, %v5233_v40 }
 0x648   :  { %3276 = vmatpush.msk.msrb.mxu3 %vm8266_vm14, %v8608_v48  ;;  %vm8303_vm14 = vcmp.eq.s32.totalorder %v8740_v11, %v5233_v40  ;;  %3261 = vmatpush.msk.msrb.mxu2 %vm8270_vm3, %v8608_v48  ;;  %vm8277_vm3 = vcmp.eq.s32.totalorder %v8744_v3, %v5233_v40 }
 0x649   :  { %3227 = vmatpush.msk.msrb.mxu0 %vm8261_vm11, %v8608_v48  ;;  %3243 = vmatpush.msk.msrb.mxu1 %vm8260_vm15, %v8608_v48  ;;  %vm8268_vm15 = vcmp.eq.s32.totalorder %v8735_v33, %v5442_v62  ;;  %vm8269_vm11 = vcmp.eq.s32.totalorder %v8736_v42, %v5442_v62 }
 0x64a   :  { %3262 = vmatpush.msk.msrb.mxu2 %vm8303_vm14, %v8608_v48  ;;  %vm8311_vm14 = vcmp.eq.s32.totalorder %v8709_v20, %v5790_v45 }
 0x64b   :  { %3228 = vmatpush.msk.msrb.mxu0 %vm8264_vm6, %v8608_v48  ;;  %3244 = vmatpush.msk.msrb.mxu1 %vm8263_vm9, %v8608_v48  ;;  %vm8271_vm9 = vcmp.eq.s32.totalorder %v8736_v42, %v5233_v40  ;;  %vm8274_vm6 = vcmp.eq.s32.totalorder %v8740_v11, %v5442_v62 }
 0x64c   :  { %3277 = vmatpush.msk.msrb.mxu3 %vm8271_vm9, %v8608_v48  ;;  %vm8276_vm9 = vcmp.eq.s32.totalorder %v8745_v35, %v5233_v40  ;;  %3263 = vmatpush.msk.msrb.mxu2 %vm8277_vm3, %v8608_v48  ;;  %vm8296_vm3 = vcmp.eq.s32.totalorder %v8756_v25, %v5442_v62 }
 0x64d   :  { %3229 = vmatpush.msk.msrb.mxu0 %vm8268_vm15, %v8608_v48  ;;  %3245 = vmatpush.msk.msrb.mxu1 %vm8269_vm11, %v8608_v48  ;;  %vm8273_vm15 = vcmp.eq.s32.totalorder %v8744_v3, %v5442_v62  ;;  %vm8275_vm11 = vcmp.eq.s32.totalorder %v8745_v35, %v5442_v62 }
 0x64e   :  { %3278 = vmatpush.msk.msrb.mxu3 %vm8302_vm12, %v8608_v48  ;;  %vm8310_vm12 = vcmp.eq.s32.totalorder %v8708_v53, %v5790_v45 }
 0x64f   :  { %3230 = vmatpush.msk.msrb.mxu0 %vm8274_vm6, %v8608_v48  ;;  %3246 = vmatpush.msk.msrb.mxu1 %vm8272_vm0, %v8608_v48  ;;  %vm8279_vm0 = vcmp.eq.s32.totalorder %v8749_v54, %v5442_v62  ;;  %vm8301_vm6 = vcmp.eq.s32.totalorder %v8749_v54, %v5233_v40 }
 0x650   :  { %3279 = vmatpush.msk.msrb.mxu3 %vm8276_vm9, %v8608_v48  ;;  %vm8297_vm9 = vcmp.eq.s32.totalorder %v8755_v31, %v5442_v62  ;;  %3264 = vmatpush.msk.msrb.mxu2 %vm8301_vm6, %v8608_v48  ;;  %vm8309_vm6 = vcmp.eq.s32.totalorder %v8709_v20, %v5785_v17 }
 0x651   :  { %3231 = vmatpush.msk.msrb.mxu0 %vm8273_vm15, %v8608_v48  ;;  %3247 = vmatpush.msk.msrb.mxu1 %vm8275_vm11, %v8608_v48  ;;  %vm8278_vm15 = vcmp.eq.s32.totalorder %v8750_v10, %v5442_v62  ;;  %vm8300_vm11 = vcmp.eq.s32.totalorder %v8750_v10, %v5233_v40 }
 0x652   :  { %3280 = vmatpush.msk.msrb.mxu3 %vm8300_vm11, %v8608_v48  ;;  %vm8308_vm11 = vcmp.eq.s32.totalorder %v8708_v53, %v5785_v17 }
 0x653   :  { %3232 = vmatpush.msk.msrb.mxu0 %vm8279_vm0, %v8608_v48  ;;  %3248 = vmatpush.msk.msrb.mxu1 %vm8278_vm15, %v8608_v48  ;;  %vm8299_vm15 = vcmp.eq.s32.totalorder %v8755_v31, %v5233_v40  ;;  %vm8298_vm0 = vcmp.eq.s32.totalorder %v8756_v25, %v5233_v40 }
 0x654   :  { %3265 = vmatpush.msk.msrb.mxu2 %vm8299_vm15, %v8608_v48  ;;  %3281 = vmatpush.msk.msrb.mxu3 %vm8298_vm0, %v8608_v48  ;;  %vm8306_vm0 = vcmp.eq.s32.totalorder %v8706_v55, %v5790_v45  ;;  %vm8307_vm15 = vcmp.eq.s32.totalorder %v8707_v0, %v5790_v45 }
 0x655   :  { %3233 = vmatpush.msk.msrb.mxu0 %vm8297_vm9, %v8608_v48  ;;  %3249 = vmatpush.msk.msrb.mxu1 %vm8296_vm3, %v8608_v48  ;;  %vm8304_vm3 = vcmp.eq.s32.totalorder %v8706_v55, %v5785_v17  ;;  %vm8305_vm9 = vcmp.eq.s32.totalorder %v8707_v0, %v5785_v17 }
 0x693   :  { %v1188_v23 = vpop.f32.mrf.mxu0  ;;  %v1208_v36 = vpop.f32.mrf.mxu1 }
 0x694   :  { %v1211_v15 = vmul.f32 %v1188_v23, %v4967_v59  ;;  %v1212_v62 = vmul.f32 %v1208_v36, %v4969_v49  ;;  %v8821_v59 = vld [vmem:[#allocation49_spill] sm:$0xff]  ;;  %v8823_v49 = vld [vmem:[#allocation51_spill] sm:$0xff]  ;;  %v8829_v23 = vld [vmem:[#allocation56_spill] sm:$0xff] }
 0x695   :  { %v8831_v36 = vld [vmem:[#allocation57_spill] sm:$0xff] }
 0x69b   :  { %v1233_v44 = vpop.f32.mrf.mxu0  ;;  %v1253_v41 = vpop.f32.mrf.mxu1 }
 0x69c   :  { %v5792_v38 = vadd.f32 %v1233_v44, %v1211_v15  ;;  %v5794_v37 = vadd.f32 %v1253_v41, %v1212_v62  ;;  %v6153_v41 = vadd.s32 6, %v4992_v6  ;;  %v6168_v44 = vadd.s32 7, %v4992_v6  ;;  %v8825_v15 = vld [vmem:[#allocation52_spill] sm:$0xff]  ;;  %v8827_v62 = vld [vmem:[#allocation55_spill] sm:$0xff] }
 0x69e   :  { %1339 = vmatmul.f32.vlgmr.msra.gmra.mxu0 %v5792_v38  ;;  %1359 = vmatmul.f32.vlgmr.msra.gmra.mxu1 %v5794_v37  ;;  %8780 = vst [vmem:[#allocation10_spill] sm:$0xff] %v6153_v41 }
 0x69f   :  { %1444 = vmatmul.f32.vlgmr.msra.gmra.mxu2 %v5792_v38  ;;  %1464 = vmatmul.f32.vlgmr.msra.gmra.mxu3 %v5794_v37  ;;  %8781 = vst [vmem:[#allocation11_spill] sm:$0xff] %v6168_v44 }
 0x6a0   :  { %3282 = vmatpush.msk.msra.mxu0 %vm8304_vm3, %v8608_v48  ;;  %3298 = vmatpush.msk.msra.mxu1 %vm8305_vm9, %v8608_v48  ;;  %vm8319_vm3 = vcmp.eq.s32.totalorder %v8710_v16, %v5785_v17  ;;  %vm8318_vm9 = vcmp.eq.s32.totalorder %v8711_v51, %v5785_v17 }
 0x6a1   :  { %3314 = vmatpush.msk.msra.mxu2 %vm8306_vm0, %v8608_v48  ;;  %3330 = vmatpush.msk.msra.mxu3 %vm8307_vm15, %v8608_v48  ;;  %vm8317_vm0 = vcmp.eq.s32.totalorder %v8710_v16, %v5790_v45  ;;  %vm8312_vm15 = vcmp.eq.s32.totalorder %v8711_v51, %v5790_v45 }
 0x6a2   :  { %3283 = vmatpush.msk.msra.mxu0 %vm8308_vm11, %v8608_v48  ;;  %3299 = vmatpush.msk.msra.mxu1 %vm8309_vm6, %v8608_v48  ;;  %vm8313_vm11 = vcmp.eq.s32.totalorder %v8713_v12, %v5785_v17  ;;  %vm8314_vm6 = vcmp.eq.s32.totalorder %v8714_v61, %v5785_v17 }
 0x6a3   :  { %3315 = vmatpush.msk.msra.mxu2 %vm8310_vm12, %v8608_v48  ;;  %3331 = vmatpush.msk.msra.mxu3 %vm8311_vm14, %v8608_v48  ;;  %vm8315_vm12 = vcmp.eq.s32.totalorder %v8713_v12, %v5790_v45  ;;  %vm8316_vm14 = vcmp.eq.s32.totalorder %v8714_v61, %v5790_v45 }
 0x6a4   :  { %3284 = vmatpush.msk.msra.mxu0 %vm8319_vm3, %v8608_v48  ;;  %3300 = vmatpush.msk.msra.mxu1 %vm8318_vm9, %v8608_v48  ;;  %vm8326_vm9 = vcmp.eq.s32.totalorder %v8717_v57, %v5790_v45  ;;  %vm8327_vm3 = vcmp.eq.s32.totalorder %v8718_v50, %v5790_v45 }
 0x6a5   :  { %3316 = vmatpush.msk.msra.mxu2 %vm8317_vm0, %v8608_v48  ;;  %3332 = vmatpush.msk.msra.mxu3 %vm8312_vm15, %v8608_v48  ;;  %vm8320_vm15 = vcmp.eq.s32.totalorder %v8715_v63, %v5785_v17  ;;  %vm8325_vm0 = vcmp.eq.s32.totalorder %v8718_v50, %v5785_v17 }
 0x6a6   :  { %3285 = vmatpush.msk.msra.mxu0 %vm8313_vm11, %v8608_v48  ;;  %3301 = vmatpush.msk.msra.mxu1 %vm8314_vm6, %v8608_v48  ;;  %vm8321_vm11 = vcmp.eq.s32.totalorder %v8716_v58, %v5785_v17  ;;  %vm8322_vm6 = vcmp.eq.s32.totalorder %v8715_v63, %v5790_v45 }
 0x6a7   :  { %3317 = vmatpush.msk.msra.mxu2 %vm8315_vm12, %v8608_v48  ;;  %3333 = vmatpush.msk.msra.mxu3 %vm8316_vm14, %v8608_v48  ;;  %vm8323_vm12 = vcmp.eq.s32.totalorder %v8716_v58, %v5790_v45  ;;  %vm8324_vm14 = vcmp.eq.s32.totalorder %v8717_v57, %v5785_v17 }
 0x6a8   :  { %1550 = vmatmul.f32.vlgmr.msrb.gmra.mxu0 %v5792_v38  ;;  %1570 = vmatmul.f32.vlgmr.msrb.gmra.mxu1 %v5794_v37 }
 0x6a9   :  { %1656 = vmatmul.f32.vlgmr.msrb.gmra.mxu2 %v5792_v38  ;;  %1676 = vmatmul.f32.vlgmr.msrb.gmra.mxu3 %v5794_v37 }
 0x6aa   :  { %3286 = vmatpush.msk.msra.mxu0 %vm8320_vm15, %v8608_v48  ;;  %3302 = vmatpush.msk.msra.mxu1 %vm8321_vm11, %v8608_v48  ;;  %vm8328_vm15 = vcmp.eq.s32.totalorder %v8719_v9, %v5785_v17  ;;  %vm8329_vm11 = vcmp.eq.s32.totalorder %v8720_v52, %v5785_v17 }
 0x6ab   :  { %3318 = vmatpush.msk.msra.mxu2 %vm8322_vm6, %v8608_v48  ;;  %3334 = vmatpush.msk.msra.mxu3 %vm8323_vm12, %v8608_v48  ;;  %vm8330_vm6 = vcmp.eq.s32.totalorder %v8719_v9, %v5790_v45  ;;  %vm8331_vm12 = vcmp.eq.s32.totalorder %v8720_v52, %v5790_v45 }
 0x6ac   :  { %3287 = vmatpush.msk.msra.mxu0 %vm8324_vm14, %v8608_v48  ;;  %3303 = vmatpush.msk.msra.mxu1 %vm8325_vm0, %v8608_v48  ;;  %vm8332_vm14 = vcmp.eq.s32.totalorder %v8721_v39, %v5785_v17  ;;  %vm8333_vm0 = vcmp.eq.s32.totalorder %v8722_v47, %v5785_v17 }
 0x6ad   :  { %3319 = vmatpush.msk.msra.mxu2 %vm8326_vm9, %v8608_v48  ;;  %3335 = vmatpush.msk.msra.mxu3 %vm8327_vm3, %v8608_v48  ;;  %vm8334_vm9 = vcmp.eq.s32.totalorder %v8721_v39, %v5790_v45  ;;  %vm8335_vm3 = vcmp.eq.s32.totalorder %v8722_v47, %v5790_v45 }
 0x6ae   :  { %3288 = vmatpush.msk.msra.mxu0 %vm8328_vm15, %v8608_v48  ;;  %3304 = vmatpush.msk.msra.mxu1 %vm8329_vm11, %v8608_v48  ;;  %vm8336_vm15 = vcmp.eq.s32.totalorder %v8723_v60, %v5785_v17  ;;  %vm8337_vm11 = vcmp.eq.s32.totalorder %v8724_v26, %v5785_v17 }
 0x6af   :  { %3320 = vmatpush.msk.msra.mxu2 %vm8330_vm6, %v8608_v48  ;;  %3336 = vmatpush.msk.msra.mxu3 %vm8331_vm12, %v8608_v48  ;;  %vm8338_vm6 = vcmp.eq.s32.totalorder %v8723_v60, %v5790_v45  ;;  %vm8339_vm12 = vcmp.eq.s32.totalorder %v8724_v26, %v5790_v45 }
 0x6b0   :  { %3289 = vmatpush.msk.msra.mxu0 %vm8332_vm14, %v8608_v48  ;;  %3305 = vmatpush.msk.msra.mxu1 %vm8333_vm0, %v8608_v48  ;;  %vm8340_vm14 = vcmp.eq.s32.totalorder %v8727_v43, %v5785_v17  ;;  %vm8341_vm0 = vcmp.eq.s32.totalorder %v8728_v46, %v5785_v17 }
 0x6b1   :  { %3321 = vmatpush.msk.msra.mxu2 %vm8334_vm9, %v8608_v48  ;;  %3337 = vmatpush.msk.msra.mxu3 %vm8335_vm3, %v8608_v48  ;;  %vm8342_vm9 = vcmp.eq.s32.totalorder %v8727_v43, %v5790_v45  ;;  %vm8343_vm3 = vcmp.eq.s32.totalorder %v8728_v46, %v5790_v45 }
 0x6b2   :  { %3290 = vmatpush.msk.msra.mxu0 %vm8336_vm15, %v8608_v48  ;;  %3306 = vmatpush.msk.msra.mxu1 %vm8337_vm11, %v8608_v48  ;;  %vm8344_vm15 = vcmp.eq.s32.totalorder %v8731_v19, %v5785_v17  ;;  %vm8345_vm11 = vcmp.eq.s32.totalorder %v8732_v7, %v5785_v17 }
 0x6b3   :  { %3322 = vmatpush.msk.msra.mxu2 %vm8338_vm6, %v8608_v48  ;;  %3338 = vmatpush.msk.msra.mxu3 %vm8339_vm12, %v8608_v48  ;;  %vm8346_vm6 = vcmp.eq.s32.totalorder %v8731_v19, %v5790_v45  ;;  %vm8347_vm12 = vcmp.eq.s32.totalorder %v8732_v7, %v5790_v45 }
 0x6b4   :  { %3291 = vmatpush.msk.msra.mxu0 %vm8340_vm14, %v8608_v48  ;;  %3307 = vmatpush.msk.msra.mxu1 %vm8341_vm0, %v8608_v48  ;;  %vm8348_vm14 = vcmp.eq.s32.totalorder %v8735_v33, %v5785_v17  ;;  %vm8349_vm0 = vcmp.eq.s32.totalorder %v8736_v42, %v5785_v17 }
 0x6b5   :  { %3323 = vmatpush.msk.msra.mxu2 %vm8342_vm9, %v8608_v48  ;;  %3339 = vmatpush.msk.msra.mxu3 %vm8343_vm3, %v8608_v48  ;;  %vm8350_vm9 = vcmp.eq.s32.totalorder %v8735_v33, %v5790_v45  ;;  %vm8351_vm3 = vcmp.eq.s32.totalorder %v8736_v42, %v5790_v45 }
 0x6b6   :  { %3292 = vmatpush.msk.msra.mxu0 %vm8344_vm15, %v8608_v48  ;;  %3308 = vmatpush.msk.msra.mxu1 %vm8345_vm11, %v8608_v48  ;;  %vm8352_vm15 = vcmp.eq.s32.totalorder %v8740_v11, %v5785_v17  ;;  %vm8353_vm11 = vcmp.eq.s32.totalorder %v8741_v18, %v5785_v17 }
 0x6b7   :  { %3324 = vmatpush.msk.msra.mxu2 %vm8346_vm6, %v8608_v48  ;;  %3340 = vmatpush.msk.msra.mxu3 %vm8347_vm12, %v8608_v48  ;;  %vm8354_vm6 = vcmp.eq.s32.totalorder %v8740_v11, %v5790_v45  ;;  %vm8355_vm12 = vcmp.eq.s32.totalorder %v8741_v18, %v5790_v45 }
 0x6b8   :  { %3293 = vmatpush.msk.msra.mxu0 %vm8348_vm14, %v8608_v48  ;;  %3309 = vmatpush.msk.msra.mxu1 %vm8349_vm0, %v8608_v48  ;;  %vm8356_vm14 = vcmp.eq.s32.totalorder %v8744_v3, %v5785_v17  ;;  %vm8357_vm0 = vcmp.eq.s32.totalorder %v8745_v35, %v5785_v17 }
 0x6b9   :  { %3325 = vmatpush.msk.msra.mxu2 %vm8350_vm9, %v8608_v48  ;;  %3341 = vmatpush.msk.msra.mxu3 %vm8351_vm3, %v8608_v48  ;;  %vm8359_vm9 = vcmp.eq.s32.totalorder %v8744_v3, %v5790_v45  ;;  %vm8358_vm3 = vcmp.eq.s32.totalorder %v8745_v35, %v5790_v45 }
 0x6ba   :  { %3294 = vmatpush.msk.msra.mxu0 %vm8352_vm15, %v8608_v48  ;;  %3310 = vmatpush.msk.msra.mxu1 %vm8353_vm11, %v8608_v48  ;;  %vm8367_vm15 = vcmp.eq.s32.totalorder %v8749_v54, %v5785_v17  ;;  %vm8366_vm11 = vcmp.eq.s32.totalorder %v8750_v10, %v5785_v17 }
 0x6bb   :  { %3326 = vmatpush.msk.msra.mxu2 %vm8354_vm6, %v8608_v48  ;;  %3342 = vmatpush.msk.msra.mxu3 %vm8355_vm12, %v8608_v48  ;;  %vm8365_vm6 = vcmp.eq.s32.totalorder %v8749_v54, %v5790_v45  ;;  %vm8360_vm12 = vcmp.eq.s32.totalorder %v8750_v10, %v5790_v45 }
 0x6bc   :  { %3295 = vmatpush.msk.msra.mxu0 %vm8356_vm14, %v8608_v48  ;;  %3311 = vmatpush.msk.msra.mxu1 %vm8357_vm0, %v8608_v48  ;;  %vm8361_vm14 = vcmp.eq.s32.totalorder %v8755_v31, %v5785_v17  ;;  %vm8362_vm0 = vcmp.eq.s32.totalorder %v8756_v25, %v5785_v17 }
 0x6bd   :  { %3327 = vmatpush.msk.msra.mxu2 %vm8359_vm9, %v8608_v48  ;;  %3343 = vmatpush.msk.msra.mxu3 %vm8358_vm3, %v8608_v48  ;;  %vm8363_vm3 = vcmp.eq.s32.totalorder %v8755_v31, %v5790_v45  ;;  %vm8364_vm9 = vcmp.eq.s32.totalorder %v8756_v25, %v5790_v45 }
 0x6be   :  { %3296 = vmatpush.msk.msra.mxu0 %vm8367_vm15, %v8608_v48  ;;  %3312 = vmatpush.msk.msra.mxu1 %vm8366_vm11, %v8608_v48  ;;  %vm8374_vm11 = vcmp.eq.s32.totalorder %v8708_v53, %v6168_v44  ;;  %vm8375_vm15 = vcmp.eq.s32.totalorder %v8709_v20, %v6168_v44 }
 0x6bf   :  { %3328 = vmatpush.msk.msra.mxu2 %vm8365_vm6, %v8608_v48  ;;  %3344 = vmatpush.msk.msra.mxu3 %vm8360_vm12, %v8608_v48  ;;  %vm8368_vm12 = vcmp.eq.s32.totalorder %v8706_v55, %v6153_v41  ;;  %vm8373_vm6 = vcmp.eq.s32.totalorder %v8709_v20, %v6153_v41 }
 0x6c0   :  { %3297 = vmatpush.msk.msra.mxu0 %vm8361_vm14, %v8608_v48  ;;  %3313 = vmatpush.msk.msra.mxu1 %vm8362_vm0, %v8608_v48  ;;  %vm8369_vm14 = vcmp.eq.s32.totalorder %v8707_v0, %v6153_v41  ;;  %vm8370_vm0 = vcmp.eq.s32.totalorder %v8706_v55, %v6168_v44 }
 0x6c1   :  { %3329 = vmatpush.msk.msra.mxu2 %vm8363_vm3, %v8608_v48  ;;  %3345 = vmatpush.msk.msra.mxu3 %vm8364_vm9, %v8608_v48  ;;  %vm8371_vm3 = vcmp.eq.s32.totalorder %v8707_v0, %v6168_v44  ;;  %vm8372_vm9 = vcmp.eq.s32.totalorder %v8708_v53, %v6153_v41 }
 0x6c2   :  { %1762 = vmatmul.f32.vlgmr.msra.gmra.mxu0 %v5792_v38  ;;  %1782 = vmatmul.f32.vlgmr.msra.gmra.mxu1 %v5794_v37 }
 0x6c3   :  { %1868 = vmatmul.f32.vlgmr.msra.gmra.mxu2 %v5792_v38  ;;  %1888 = vmatmul.f32.vlgmr.msra.gmra.mxu3 %v5794_v37 }
 0x6c4   :  { %3346 = vmatpush.msk.msrb.mxu0 %vm8368_vm12, %v8608_v48  ;;  %3362 = vmatpush.msk.msrb.mxu1 %vm8369_vm14, %v8608_v48  ;;  %vm8376_vm12 = vcmp.eq.s32.totalorder %v8710_v16, %v6153_v41  ;;  %vm8377_vm14 = vcmp.eq.s32.totalorder %v8711_v51, %v6153_v41 }
 0x6c5   :  { %3378 = vmatpush.msk.msrb.mxu2 %vm8370_vm0, %v8608_v48  ;;  %3394 = vmatpush.msk.msrb.mxu3 %vm8371_vm3, %v8608_v48  ;;  %vm8378_vm0 = vcmp.eq.s32.totalorder %v8710_v16, %v6168_v44  ;;  %vm8379_vm3 = vcmp.eq.s32.totalorder %v8711_v51, %v6168_v44 }
 0x6c6   :  { %3347 = vmatpush.msk.msrb.mxu0 %vm8372_vm9, %v8608_v48  ;;  %3363 = vmatpush.msk.msrb.mxu1 %vm8373_vm6, %v8608_v48  ;;  %vm8380_vm9 = vcmp.eq.s32.totalorder %v8713_v12, %v6153_v41  ;;  %vm8381_vm6 = vcmp.eq.s32.totalorder %v8714_v61, %v6153_v41 }
 0x6c7   :  { %3379 = vmatpush.msk.msrb.mxu2 %vm8374_vm11, %v8608_v48  ;;  %3395 = vmatpush.msk.msrb.mxu3 %vm8375_vm15, %v8608_v48  ;;  %vm8382_vm11 = vcmp.eq.s32.totalorder %v8713_v12, %v6168_v44  ;;  %vm8383_vm15 = vcmp.eq.s32.totalorder %v8714_v61, %v6168_v44 }
 0x6c8   :  { %3348 = vmatpush.msk.msrb.mxu0 %vm8376_vm12, %v8608_v48  ;;  %3364 = vmatpush.msk.msrb.mxu1 %vm8377_vm14, %v8608_v48  ;;  %vm8384_vm12 = vcmp.eq.s32.totalorder %v8715_v63, %v6153_v41  ;;  %vm8385_vm14 = vcmp.eq.s32.totalorder %v8716_v58, %v6153_v41 }
 0x6c9   :  { %3380 = vmatpush.msk.msrb.mxu2 %vm8378_vm0, %v8608_v48  ;;  %3396 = vmatpush.msk.msrb.mxu3 %vm8379_vm3, %v8608_v48  ;;  %vm8386_vm0 = vcmp.eq.s32.totalorder %v8715_v63, %v6168_v44  ;;  %vm8387_vm3 = vcmp.eq.s32.totalorder %v8716_v58, %v6168_v44 }
 0x6ca   :  { %3349 = vmatpush.msk.msrb.mxu0 %vm8380_vm9, %v8608_v48  ;;  %3365 = vmatpush.msk.msrb.mxu1 %vm8381_vm6, %v8608_v48  ;;  %vm8388_vm9 = vcmp.eq.s32.totalorder %v8717_v57, %v6153_v41  ;;  %vm8389_vm6 = vcmp.eq.s32.totalorder %v8718_v50, %v6153_v41 }
 0x6cb   :  { %3381 = vmatpush.msk.msrb.mxu2 %vm8382_vm11, %v8608_v48  ;;  %3397 = vmatpush.msk.msrb.mxu3 %vm8383_vm15, %v8608_v48  ;;  %vm8390_vm11 = vcmp.eq.s32.totalorder %v8717_v57, %v6168_v44  ;;  %vm8391_vm15 = vcmp.eq.s32.totalorder %v8718_v50, %v6168_v44 }
 0x6cc   :  { %3350 = vmatpush.msk.msrb.mxu0 %vm8384_vm12, %v8608_v48  ;;  %3366 = vmatpush.msk.msrb.mxu1 %vm8385_vm14, %v8608_v48  ;;  %vm8392_vm12 = vcmp.eq.s32.totalorder %v8719_v9, %v6153_v41  ;;  %vm8393_vm14 = vcmp.eq.s32.totalorder %v8720_v52, %v6153_v41 }
 0x6cd   :  { %3382 = vmatpush.msk.msrb.mxu2 %vm8386_vm0, %v8608_v48  ;;  %3398 = vmatpush.msk.msrb.mxu3 %vm8387_vm3, %v8608_v48  ;;  %vm8394_vm0 = vcmp.eq.s32.totalorder %v8719_v9, %v6168_v44  ;;  %vm8395_vm3 = vcmp.eq.s32.totalorder %v8720_v52, %v6168_v44 }
 0x6ce   :  { %3351 = vmatpush.msk.msrb.mxu0 %vm8388_vm9, %v8608_v48  ;;  %3367 = vmatpush.msk.msrb.mxu1 %vm8389_vm6, %v8608_v48  ;;  %vm8396_vm9 = vcmp.eq.s32.totalorder %v8721_v39, %v6153_v41  ;;  %vm8397_vm6 = vcmp.eq.s32.totalorder %v8722_v47, %v6153_v41 }
 0x6cf   :  { %3383 = vmatpush.msk.msrb.mxu2 %vm8390_vm11, %v8608_v48  ;;  %3399 = vmatpush.msk.msrb.mxu3 %vm8391_vm15, %v8608_v48  ;;  %vm8398_vm11 = vcmp.eq.s32.totalorder %v8721_v39, %v6168_v44  ;;  %vm8399_vm15 = vcmp.eq.s32.totalorder %v8722_v47, %v6168_v44 }
 0x6d0   :  { %3352 = vmatpush.msk.msrb.mxu0 %vm8392_vm12, %v8608_v48  ;;  %3368 = vmatpush.msk.msrb.mxu1 %vm8393_vm14, %v8608_v48  ;;  %vm8400_vm12 = vcmp.eq.s32.totalorder %v8723_v60, %v6153_v41  ;;  %vm8401_vm14 = vcmp.eq.s32.totalorder %v8724_v26, %v6153_v41 }
 0x6d1   :  { %3384 = vmatpush.msk.msrb.mxu2 %vm8394_vm0, %v8608_v48  ;;  %3400 = vmatpush.msk.msrb.mxu3 %vm8395_vm3, %v8608_v48  ;;  %vm8402_vm0 = vcmp.eq.s32.totalorder %v8723_v60, %v6168_v44  ;;  %vm8403_vm3 = vcmp.eq.s32.totalorder %v8724_v26, %v6168_v44 }
 0x6d2   :  { %3353 = vmatpush.msk.msrb.mxu0 %vm8396_vm9, %v8608_v48  ;;  %3369 = vmatpush.msk.msrb.mxu1 %vm8397_vm6, %v8608_v48  ;;  %vm8404_vm9 = vcmp.eq.s32.totalorder %v8727_v43, %v6153_v41  ;;  %vm8405_vm6 = vcmp.eq.s32.totalorder %v8728_v46, %v6153_v41 }
 0x6d3   :  { %3385 = vmatpush.msk.msrb.mxu2 %vm8398_vm11, %v8608_v48  ;;  %3401 = vmatpush.msk.msrb.mxu3 %vm8399_vm15, %v8608_v48  ;;  %vm8406_vm11 = vcmp.eq.s32.totalorder %v8727_v43, %v6168_v44  ;;  %vm8407_vm15 = vcmp.eq.s32.totalorder %v8728_v46, %v6168_v44 }
 0x6d4   :  { %3354 = vmatpush.msk.msrb.mxu0 %vm8400_vm12, %v8608_v48  ;;  %3370 = vmatpush.msk.msrb.mxu1 %vm8401_vm14, %v8608_v48  ;;  %vm8408_vm12 = vcmp.eq.s32.totalorder %v8731_v19, %v6153_v41  ;;  %vm8409_vm14 = vcmp.eq.s32.totalorder %v8732_v7, %v6153_v41 }
 0x6d5   :  { %3386 = vmatpush.msk.msrb.mxu2 %vm8402_vm0, %v8608_v48  ;;  %3402 = vmatpush.msk.msrb.mxu3 %vm8403_vm3, %v8608_v48  ;;  %vm8410_vm0 = vcmp.eq.s32.totalorder %v8731_v19, %v6168_v44  ;;  %vm8411_vm3 = vcmp.eq.s32.totalorder %v8732_v7, %v6168_v44 }
 0x6d6   :  { %3355 = vmatpush.msk.msrb.mxu0 %vm8404_vm9, %v8608_v48  ;;  %3371 = vmatpush.msk.msrb.mxu1 %vm8405_vm6, %v8608_v48  ;;  %vm8412_vm9 = vcmp.eq.s32.totalorder %v8735_v33, %v6153_v41  ;;  %vm8413_vm6 = vcmp.eq.s32.totalorder %v8736_v42, %v6153_v41 }
 0x6d7   :  { %3387 = vmatpush.msk.msrb.mxu2 %vm8406_vm11, %v8608_v48  ;;  %3403 = vmatpush.msk.msrb.mxu3 %vm8407_vm15, %v8608_v48  ;;  %vm8414_vm11 = vcmp.eq.s32.totalorder %v8735_v33, %v6168_v44  ;;  %vm8415_vm15 = vcmp.eq.s32.totalorder %v8736_v42, %v6168_v44 }
 0x6d8   :  { %3356 = vmatpush.msk.msrb.mxu0 %vm8408_vm12, %v8608_v48  ;;  %3372 = vmatpush.msk.msrb.mxu1 %vm8409_vm14, %v8608_v48  ;;  %vm8416_vm12 = vcmp.eq.s32.totalorder %v8740_v11, %v6153_v41  ;;  %vm8417_vm14 = vcmp.eq.s32.totalorder %v8741_v18, %v6153_v41 }
 0x6d9   :  { %3388 = vmatpush.msk.msrb.mxu2 %vm8410_vm0, %v8608_v48  ;;  %3404 = vmatpush.msk.msrb.mxu3 %vm8411_vm3, %v8608_v48  ;;  %vm8418_vm0 = vcmp.eq.s32.totalorder %v8740_v11, %v6168_v44  ;;  %vm8419_vm3 = vcmp.eq.s32.totalorder %v8741_v18, %v6168_v44 }
 0x6da   :  { %3357 = vmatpush.msk.msrb.mxu0 %vm8412_vm9, %v8608_v48  ;;  %3373 = vmatpush.msk.msrb.mxu1 %vm8413_vm6, %v8608_v48  ;;  %vm8420_vm9 = vcmp.eq.s32.totalorder %v8744_v3, %v6153_v41  ;;  %vm8421_vm6 = vcmp.eq.s32.totalorder %v8745_v35, %v6153_v41 }
 0x6db   :  { %3389 = vmatpush.msk.msrb.mxu2 %vm8414_vm11, %v8608_v48  ;;  %3405 = vmatpush.msk.msrb.mxu3 %vm8415_vm15, %v8608_v48  ;;  %vm8422_vm11 = vcmp.eq.s32.totalorder %v8744_v3, %v6168_v44  ;;  %vm8423_vm15 = vcmp.eq.s32.totalorder %v8745_v35, %v6168_v44 }
 0x6dc   :  { %3358 = vmatpush.msk.msrb.mxu0 %vm8416_vm12, %v8608_v48  ;;  %3374 = vmatpush.msk.msrb.mxu1 %vm8417_vm14, %v8608_v48  ;;  %vm1895_vm12 = vcmp.eq.s32.totalorder %v8749_v54, %v6153_v41  ;;  %vm1911_vm14 = vcmp.eq.s32.totalorder %v8750_v10, %v6153_v41 }
 0x6dd   :  { %3390 = vmatpush.msk.msrb.mxu2 %vm8418_vm0, %v8608_v48  ;;  %3406 = vmatpush.msk.msrb.mxu3 %vm8419_vm3, %v8608_v48  ;;  %vm2001_vm0 = vcmp.eq.s32.totalorder %v8749_v54, %v6168_v44  ;;  %vm2017_vm3 = vcmp.eq.s32.totalorder %v8750_v10, %v6168_v44 }
 0x6de   :  { %3359 = vmatpush.msk.msrb.mxu0 %vm8420_vm9, %v8608_v48  ;;  %3375 = vmatpush.msk.msrb.mxu1 %vm8421_vm6, %v8608_v48  ;;  %vm8425_vm9 = vcmp.eq.s32.totalorder %v8755_v31, %v6153_v41  ;;  %vm8424_vm6 = vcmp.eq.s32.totalorder %v8756_v25, %v6153_v41 }
 0x6df   :  { %3391 = vmatpush.msk.msrb.mxu2 %vm8422_vm11, %v8608_v48  ;;  %3407 = vmatpush.msk.msrb.mxu3 %vm8423_vm15, %v8608_v48  ;;  %vm8427_vm11 = vcmp.eq.s32.totalorder %v8755_v31, %v6168_v44  ;;  %vm8426_vm15 = vcmp.eq.s32.totalorder %v8756_v25, %v6168_v44 }
 0x6e0   :  { %3360 = vmatpush.msk.msrb.mxu0 %vm1895_vm12, %v8608_v48  ;;  %3376 = vmatpush.msk.msrb.mxu1 %vm1911_vm14, %v8608_v48 }
 0x6e1   :  { %3392 = vmatpush.msk.msrb.mxu2 %vm2001_vm0, %v8608_v48  ;;  %3408 = vmatpush.msk.msrb.mxu3 %vm2017_vm3, %v8608_v48 }
 0x6e2   :  { %3361 = vmatpush.msk.msrb.mxu0 %vm8425_vm9, %v8608_v48  ;;  %3377 = vmatpush.msk.msrb.mxu1 %vm8424_vm6, %v8608_v48  ;;  %vm8782_vm6 = vcmask 1043456  }
 0x6e3   :  { %3393 = vmatpush.msk.msrb.mxu2 %vm8427_vm11, %v8608_v48  ;;  %3409 = vmatpush.msk.msrb.mxu3 %vm8426_vm15, %v8608_v48  ;;  %vm8783_vm9 = vmmov %vm8782_vm6  ;;  %vm8786_vm15 = vnez %v8482_v13  ;;  %vm8787_vm11 = vnez %v8484_v14  ;;  %v8801_v13 = vld [vmem:[#allocation28_spill] sm:$0xff]  ;;  %v8803_v14 = vld [vmem:[#allocation30_spill] sm:$0xff] }
 0x6e4   :  { %1974 = vmatmul.f32.vlgmr.msrb.gmra.mxu0 %v5792_v38  ;;  %1994 = vmatmul.f32.vlgmr.msrb.gmra.mxu1 %v5794_v37 }
 0x6e5   :  { %2080 = vmatmul.f32.vlgmr.msrb.gmra.mxu2 %v5792_v38  ;;  %2100 = vmatmul.f32.vlgmr.msrb.gmra.mxu3 %v5794_v37  ;;  %v3410_v37 = vld [vmem:[%s7986_s1 + $0x8] sm:$0xf]  ;;  %v8815_v38 = vld [vmem:[#allocation43_spill] sm:$0xff] }
 0x6e6   :  { %3421 = vmatpush.msk.msra.mxu0 %vm8782_vm6, %v4770_v56  ;;  %3423 = vmatpush.msk.msra.mxu1 %vm8783_vm9, %v4772_v4  ;;  %vm8784_vm6 = vcmask 31744   ;;  %v8817_v56 = vld [vmem:[#allocation45_spill] sm:$0xff]  ;;  %v8819_v4 = vld [vmem:[#allocation47_spill] sm:$0xff] }
 0x6e7   :  { %3425 = vmatpush.msk.msra.mxu2 %vm8673_vm13, %v8608_v48  ;;  %3433 = vmatpush.msk.msra.mxu3 %vm8674_vm7, %v8608_v48  ;;  %vm8785_vm9 = vmmov %vm8784_vm6 }
 0x6e8   :  { %3441 = vmatpush.msk.msrb.mxu0 %vm3982_vm10, %v8608_v48  ;;  %3457 = vmatpush.msk.msrb.mxu1 %vm8609_vm8, %v8608_v48 }
 0x6e9   :  { %3426 = vmatpush.msk.msra.mxu2 %vm8675_vm4, %v8608_v48  ;;  %3434 = vmatpush.msk.msra.mxu3 %vm8676_vm2, %v8608_v48 }
 0x6ea   :  { %3442 = vmatpush.msk.msrb.mxu0 %vm8610_vm1, %v8608_v48  ;;  %3458 = vmatpush.msk.msrb.mxu1 %vm8611_vm5, %v8608_v48 }
 0x6eb   :  { %3473 = vmatpush.msk.msrb.mxu2 %vm3982_vm10, %v8608_v48  ;;  %3489 = vmatpush.msk.msrb.mxu3 %vm8609_vm8, %v8608_v48  ;;  %vm8788_vm10 = vnez %v8488_v21  ;;  %vm8789_vm8 = vnez %v8492_v29  ;;  %v8805_v21 = vld [vmem:[#allocation32_spill] sm:$0xff]  ;;  %v8807_v29 = vld [vmem:[#allocation33_spill] sm:$0xff] }
 0x6ec   :  { %3422 = vmatmul.msk.f32.vlgmr.msra.gmra.mxu0 %vm8784_vm6, %v3410_v37  ;;  %3424 = vmatmul.msk.f32.vlgmr.msra.gmra.mxu1 %vm8785_vm9, %v3410_v37  ;;  %vm8796_vm6 = vnez %v8795_v2  ;;  %vm8798_vm9 = vnez %v8797_v5  ;;  %v8833_v37 = vld [vmem:[#allocation58_spill] sm:$0xff] }
 0x6ed   :  { %3443 = vmatpush.msk.msrb.mxu0 %vm8786_vm15, %v8608_v48  ;;  %3459 = vmatpush.msk.msrb.mxu1 %vm8787_vm11, %v8608_v48 }
 0x6ee   :  { %3474 = vmatpush.msk.msrb.mxu2 %vm8610_vm1, %v8608_v48  ;;  %3490 = vmatpush.msk.msrb.mxu3 %vm8611_vm5, %v8608_v48  ;;  %vm8790_vm1 = vnez %v8494_v30  ;;  %vm8791_vm5 = vnez %v8497_v32  ;;  %v8809_v30 = vld [vmem:[#allocation36_spill] sm:$0xff]  ;;  %v8811_v32 = vld [vmem:[#allocation37_spill] sm:$0xff] }
 0x6ef   :  { %3444 = vmatpush.msk.msrb.mxu0 %vm8788_vm10, %v8608_v48  ;;  %3460 = vmatpush.msk.msrb.mxu1 %vm8789_vm8, %v8608_v48 }
 0x6f0   :  { %3475 = vmatpush.msk.msrb.mxu2 %vm8786_vm15, %v8608_v48  ;;  %3491 = vmatpush.msk.msrb.mxu3 %vm8787_vm11, %v8608_v48  ;;  %vm8792_vm15 = vnez %v8500_v34  ;;  %vm8794_vm11 = vnez %v8793_v1  ;;  %v8813_v34 = vld [vmem:[#allocation40_spill] sm:$0xff] }
 0x6f1   :  { %3445 = vmatpush.msk.msrb.mxu0 %vm8790_vm1, %v8608_v48  ;;  %3461 = vmatpush.msk.msrb.mxu1 %vm8791_vm5, %v8608_v48 }
 0x6f2   :  { %3476 = vmatpush.msk.msrb.mxu2 %vm8788_vm10, %v8608_v48  ;;  %3492 = vmatpush.msk.msrb.mxu3 %vm8789_vm8, %v8608_v48  ;;  %vm8800_vm10 = vnez %v8799_v8  ;;  %vm8802_vm8 = vnez %v8801_v13 }
 0x6f3   :  { %3446 = vmatpush.msk.msrb.mxu0 %vm8792_vm15, %v8608_v48  ;;  %3462 = vmatpush.msk.msrb.mxu1 %vm8794_vm11, %v8608_v48 }
 0x6f4   :  { %3477 = vmatpush.msk.msrb.mxu2 %vm8790_vm1, %v8608_v48  ;;  %3493 = vmatpush.msk.msrb.mxu3 %vm8791_vm5, %v8608_v48  ;;  %vm8804_vm1 = vnez %v8803_v14  ;;  %vm8806_vm5 = vnez %v8805_v21 }
 0x6f5   :  { %3447 = vmatpush.msk.msrb.mxu0 %vm8796_vm6, %v8608_v48  ;;  %3463 = vmatpush.msk.msrb.mxu1 %vm8798_vm9, %v8608_v48 }
 0x6f6   :  { %3478 = vmatpush.msk.msrb.mxu2 %vm8792_vm15, %v8608_v48  ;;  %3494 = vmatpush.msk.msrb.mxu3 %vm8794_vm11, %v8608_v48  ;;  %vm8808_vm15 = vnez %v8807_v29  ;;  %vm8810_vm11 = vnez %v8809_v30 }
 0x6f7   :  { %3448 = vmatpush.msk.msrb.mxu0 %vm8800_vm10, %v8608_v48  ;;  %3464 = vmatpush.msk.msrb.mxu1 %vm8802_vm8, %v8608_v48 }
 0x6f8   :  { %3479 = vmatpush.msk.msrb.mxu2 %vm8796_vm6, %v8608_v48  ;;  %3495 = vmatpush.msk.msrb.mxu3 %vm8798_vm9, %v8608_v48  ;;  %vm8812_vm6 = vnez %v8811_v32  ;;  %vm8814_vm9 = vnez %v8813_v34 }
 0x6f9   :  { %3449 = vmatpush.msk.msrb.mxu0 %vm8804_vm1, %v8608_v48  ;;  %3465 = vmatpush.msk.msrb.mxu1 %vm8806_vm5, %v8608_v48 }
 0x6fa   :  { %3480 = vmatpush.msk.msrb.mxu2 %vm8800_vm10, %v8608_v48  ;;  %3496 = vmatpush.msk.msrb.mxu3 %vm8802_vm8, %v8608_v48  ;;  %vm8816_vm10 = vnez %v8815_v38  ;;  %vm8818_vm8 = vnez %v8817_v56 }
 0x6fb   :  { %3450 = vmatpush.msk.msrb.mxu0 %vm8808_vm15, %v8608_v48  ;;  %3466 = vmatpush.msk.msrb.mxu1 %vm8810_vm11, %v8608_v48 }
 0x6fc   :  { %3481 = vmatpush.msk.msrb.mxu2 %vm8804_vm1, %v8608_v48  ;;  %3497 = vmatpush.msk.msrb.mxu3 %vm8806_vm5, %v8608_v48  ;;  %vm8820_vm1 = vnez %v8819_v4  ;;  %vm8822_vm5 = vnez %v8821_v59 }
 0x6fd   :  { %3451 = vmatpush.msk.msrb.mxu0 %vm8812_vm6, %v8608_v48  ;;  %3467 = vmatpush.msk.msrb.mxu1 %vm8814_vm9, %v8608_v48 }
 0x6fe   :  { %3482 = vmatpush.msk.msrb.mxu2 %vm8808_vm15, %v8608_v48  ;;  %3498 = vmatpush.msk.msrb.mxu3 %vm8810_vm11, %v8608_v48  ;;  %vm8824_vm15 = vnez %v8823_v49  ;;  %vm8826_vm11 = vnez %v8825_v15 }
 0x6ff   :  { %3452 = vmatpush.msk.msrb.mxu0 %vm8816_vm10, %v8608_v48  ;;  %3468 = vmatpush.msk.msrb.mxu1 %vm8818_vm8, %v8608_v48 }
 0x700   :  { %3483 = vmatpush.msk.msrb.mxu2 %vm8812_vm6, %v8608_v48  ;;  %3499 = vmatpush.msk.msrb.mxu3 %vm8814_vm9, %v8608_v48  ;;  %vm8828_vm6 = vnez %v8827_v62  ;;  %vm8830_vm9 = vnez %v8829_v23 }
 0x701   :  { %3453 = vmatpush.msk.msrb.mxu0 %vm8820_vm1, %v8608_v48  ;;  %3469 = vmatpush.msk.msrb.mxu1 %vm8822_vm5, %v8608_v48 }
 0x702   :  { %3484 = vmatpush.msk.msrb.mxu2 %vm8816_vm10, %v8608_v48  ;;  %3500 = vmatpush.msk.msrb.mxu3 %vm8818_vm8, %v8608_v48  ;;  %vm8832_vm10 = vnez %v8831_v36  ;;  %vm8834_vm8 = vnez %v8833_v37 }
 0x703   :  { %3454 = vmatpush.msk.msrb.mxu0 %vm8824_vm15, %v8608_v48  ;;  %3470 = vmatpush.msk.msrb.mxu1 %vm8826_vm11, %v8608_v48 }
 0x704   :  { %3485 = vmatpush.msk.msrb.mxu2 %vm8820_vm1, %v8608_v48  ;;  %3501 = vmatpush.msk.msrb.mxu3 %vm8822_vm5, %v8608_v48  ;;  %vm2105_vm1 = vcmask 257024   ;;  %vm8835_vm5 = vcmask 1043456  }
 0x705   :  { %3455 = vmatpush.msk.msrb.mxu0 %vm8828_vm6, %v8608_v48  ;;  %3471 = vmatpush.msk.msrb.mxu1 %vm8830_vm9, %v8608_v48 }
 0x706   :  { %3486 = vmatpush.msk.msrb.mxu2 %vm8824_vm15, %v8608_v48  ;;  %3502 = vmatpush.msk.msrb.mxu3 %vm8826_vm11, %v8608_v48  ;;  %vm8836_vm15 = vmmov %vm8835_vm5 }
 0x707   :  { %3456 = vmatpush.msk.msrb.mxu0 %vm8832_vm10, %v8608_v48  ;;  %3472 = vmatpush.msk.msrb.mxu1 %vm8834_vm8, %v8608_v48  ;;  %vm8837_vm11 = vmmov %vm8835_vm5 }
 0x708   :  { %3487 = vmatpush.msk.msrb.mxu2 %vm8828_vm6, %v8608_v48  ;;  %3503 = vmatpush.msk.msrb.mxu3 %vm8830_vm9, %v8608_v48  ;;  %vm8838_vm6 = vmmov %vm8835_vm5  ;;  %vm8839_vm9 = vcmask 130048  }
 0x709   :  { %3505 = vmatpush.msk.msra.mxu0 %vm8673_vm13, %v8608_v48  ;;  %3508 = vmatpush.msk.msra.mxu1 %vm8674_vm7, %v8608_v48 }
 0x70a   :  { %3488 = vmatpush.msk.msrb.mxu2 %vm8832_vm10, %v8608_v48  ;;  %3504 = vmatpush.msk.msrb.mxu3 %vm8834_vm8, %v8608_v48  ;;  %vm8840_vm10 = vmmov %vm8839_vm9 }
 0x70b   :  { %3506 = vmatpush.msk.msra.mxu0 %vm8675_vm4, %v8608_v48  ;;  %3509 = vmatpush.msk.msra.mxu1 %vm8676_vm2, %v8608_v48 }
 0x71b   :  { %v1340_v1 = vpop.f32.mrf.mxu0  ;;  %v1360_v2 = vpop.f32.mrf.mxu1 }
 0x71c   :  { %v1361_v38 = vadd.f32 %v1360_v2, %v1340_v1 }
 0x722   :  { %v1445_v5 = vpop.f32.mrf.mxu2  ;;  %v1465_v8 = vpop.f32.mrf.mxu3 }
 0x723   :  { %v1466_v30 = vadd.f32 %v1465_v8, %v1445_v5 }
 0x725   :  { %v1551_v13 = vpop.f32.mrf.mxu0  ;;  %v1571_v14 = vpop.f32.mrf.mxu1  ;;  %v1468_v56 = vmax.f32 %v1361_v38, %v1466_v30  ;;  %v3414_v30 = vld [vmem:[%s7987_s4 + $0x68] sm:$0xff] }
 0x726   :  { %v1572_v4 = vadd.f32 %v1571_v14, %v1551_v13 }
 0x728   :  { %v1574_v62 = vmax.f32 %v1468_v56, %v1572_v4 }
 0x72c   :  { %v1657_v21 = vpop.f32.mrf.mxu2  ;;  %v1677_v29 = vpop.f32.mrf.mxu3 }
 0x72d   :  { %v1678_v59 = vadd.f32 %v1677_v29, %v1657_v21  ;;  %v3413_v21 = vld [vmem:[%s7987_s4 + $0x60] sm:$0xff]  ;;  %v8841_v29 = vld [vmem:[#allocation62_spill] sm:$0xff] }
 0x72e   :  { %3427 = vmatmul.msk.f32.vlgmr.msra.gmra.mxu2 %vm8839_vm9, %v3413_v21  ;;  %3435 = vmatmul.msk.f32.vlgmr.msra.gmra.mxu3 %vm8840_vm10, %v3413_v21  ;;  %vm8842_vm8 = vcmp.eq.s32.totalorder %v8706_v55, %v8841_v29  ;;  %vm8847_vm9 = vcmp.eq.s32.totalorder %v8711_v51, %v8841_v29  ;;  %vm8848_vm10 = vcmp.eq.s32.totalorder %v8713_v12, %v8841_v29  ;;  %v3418_v21 = vld [vmem:[%s7987_s4 + $0x88] sm:$0xff] }
 0x72f   :  { %v1680_v44 = vmax.f32 %v1574_v62, %v1678_v59  ;;  %3549 = vmatpush.msk.msra.mxu2 %vm8842_vm8, %v8608_v48  ;;  %vm8849_vm8 = vcmp.eq.s32.totalorder %v8714_v61, %v8841_v29 }
 0x73f   :  { %v1763_v32 = vpop.f32.mrf.mxu0  ;;  %v1783_v34 = vpop.f32.mrf.mxu1 }
 0x740   :  { %v1784_v23 = vadd.f32 %v1783_v34, %v1763_v32  ;;  %v3415_v32 = vld [vmem:[%s7987_s4 + $0x70] sm:$0xff]  ;;  %v3416_v34 = vld [vmem:[%s7987_s4 + $0x78] sm:$0xff] }
 0x742   :  { %v1786_v45 = vmax.f32 %v1680_v44, %v1784_v23 }
 0x746   :  { %v1869_v49 = vpop.f32.mrf.mxu2  ;;  %v1889_v15 = vpop.f32.mrf.mxu3 }
 0x747   :  { %v1890_v41 = vadd.f32 %v1889_v15, %v1869_v49 }
 0x749   :  { %v1892_v6 = vmax.f32 %v1786_v45, %v1890_v41 }
 0x761   :  { %v1975_v36 = vpop.f32.mrf.mxu0  ;;  %v1995_v37 = vpop.f32.mrf.mxu1 }
 0x762   :  { %v1996_v17 = vadd.f32 %v1995_v37, %v1975_v36 }
 0x764   :  { %v1998_v5 = vmax.f32 %v1892_v6, %v1996_v17 }
 0x768   :  { %v2081_v40 = vpop.f32.mrf.mxu2  ;;  %v2101_v28 = vpop.f32.mrf.mxu3 }
 0x769   :  { %v2102_v8 = vadd.f32 %v2101_v28, %v2081_v40  ;;  %v6811_v1 = vpop.f32.mrf.mxu0  ;;  %v6813_v2 = vpop.f32.mrf.mxu1 }
 0x76a   :  { %v2172_v13 = vmul.f32 %v6811_v1, %v6811_v1  ;;  %v2173_v14 = vmul.f32 %v6813_v2, %v6813_v2  ;;  %v2167_v44 = vsel %vm8835_vm5, %v6811_v1, 0.0  ;;  %v2168_v45 = vsel %vm8836_vm15, %v6813_v2, 0.0 }
 0x76b   :  { %v2104_v41 = vmax.f32 %v1998_v5, %v2102_v8  ;;  %v2169_v17 = vadd.f32 %v2168_v45, %v2167_v44  ;;  %vm8843_vm5 = vcmp.eq.s32.totalorder %v8707_v0, %v8841_v29  ;;  %vm8844_vm15 = vcmp.eq.s32.totalorder %v8708_v53, %v8841_v29 }
 0x76c   :  { %v2174_v28 = vsel %vm8837_vm11, %v2172_v13, 0.0  ;;  %v2175_v6 = vsel %vm8838_vm6, %v2173_v14, 0.0  ;;  %3565 = vmatpush.msk.msra.mxu3 %vm8843_vm5, %v8608_v48  ;;  %3550 = vmatpush.msk.msra.mxu2 %vm8844_vm15, %v8608_v48  ;;  %vm8845_vm11 = vcmp.eq.s32.totalorder %v8709_v20, %v8841_v29  ;;  %vm8846_vm6 = vcmp.eq.s32.totalorder %v8710_v16, %v8841_v29  ;;  %v3411_v14 = vld [vmem:[%s7988_s2 + $0x8] sm:$0xf] }
 0x76d   :  { %2106 = vst.msk [vmem:[%s7992_s7] sm:$0xf] %vm2105_vm1, %v2104_v41  ;;  %2170 = vadd.xlane.f32.xlu0 %v2169_v17  ;;  %v2176_v40 = vadd.f32 %v2175_v6, %v2174_v28  ;;  %vm8850_vm5 = vcmask 130048   ;;  %v3412_v28 = vld [vmem:[%s7989_s3 + $0x8] sm:$0xf] }
 0x76e   :  { %3566 = vmatpush.msk.msra.mxu3 %vm8845_vm11, %v8608_v48  ;;  %3551 = vmatpush.msk.msra.mxu2 %vm8846_vm6, %v8608_v48  ;;  %vm8851_vm15 = vmmov %vm8850_vm5  ;;  %vm8852_vm11 = vcmp.eq.s32.totalorder %v8715_v63, %v8841_v29  ;;  %vm8853_vm6 = vcmp.eq.s32.totalorder %v8716_v58, %v8841_v29 }
 0x76f   :  { %2177 = vadd.xlane.f32.xlu2 %v2176_v40  ;;  %3428 = vmatmul.msk.f32.gmra.mxu2 %vm8850_vm5, %v3414_v30  ;;  %vm8857_vm5 = vcmp.eq.s32.totalorder %v8720_v52, %v8841_v29  ;;  %v3417_v40 = vld [vmem:[%s7987_s4 + $0x80] sm:$0xff] }
 0x770   :  { %3567 = vmatpush.msk.msra.mxu3 %vm8847_vm9, %v8608_v48  ;;  %3552 = vmatpush.msk.msra.mxu2 %vm8848_vm10, %v8608_v48  ;;  %vm8854_vm9 = vcmp.eq.s32.totalorder %v8717_v57, %v8841_v29  ;;  %vm8855_vm10 = vcmp.eq.s32.totalorder %v8718_v50, %v8841_v29 }
 0x771   :  { %3436 = vmatmul.msk.f32.gmra.mxu3 %vm8851_vm15, %v3414_v30  ;;  %vm8858_vm15 = vcmp.eq.s32.totalorder %v8721_v39, %v8841_v29 }
 0x772   :  { %3568 = vmatpush.msk.msra.mxu3 %vm8849_vm8, %v8608_v48  ;;  %3553 = vmatpush.msk.msra.mxu2 %vm8852_vm11, %v8608_v48  ;;  %vm8856_vm8 = vcmp.eq.s32.totalorder %v8719_v9, %v8841_v29  ;;  %vm8859_vm11 = vcmp.eq.s32.totalorder %v8722_v47, %v8841_v29 }
 0x774   :  { %3569 = vmatpush.msk.msra.mxu3 %vm8853_vm6, %v8608_v48  ;;  %3554 = vmatpush.msk.msra.mxu2 %vm8854_vm9, %v8608_v48  ;;  %vm8860_vm6 = vcmask 130048  }
 0x775   :  { %vm8861_vm9 = vmmov %vm8860_vm6 }
 0x776   :  { %3570 = vmatpush.msk.msra.mxu3 %vm8855_vm10, %v8608_v48  ;;  %3555 = vmatpush.msk.msra.mxu2 %vm8856_vm8, %v8608_v48  ;;  %vm8862_vm10 = vcmp.eq.s32.totalorder %v8723_v60, %v8841_v29  ;;  %vm8863_vm8 = vcmp.eq.s32.totalorder %v8724_v26, %v8841_v29 }
 0x777   :  { %3429 = vmatmul.msk.f32.gmra.mxu2 %vm8860_vm6, %v3415_v32  ;;  %vm8867_vm6 = vcmp.eq.s32.totalorder %v8732_v7, %v8841_v29  ;;  %v8893_v7 = vld [vmem:[#allocation59_spill] sm:$0xff] }
 0x778   :  { %3571 = vmatpush.msk.msra.mxu3 %vm8857_vm5, %v8608_v48  ;;  %3556 = vmatpush.msk.msra.mxu2 %vm8858_vm15, %v8608_v48  ;;  %vm8864_vm5 = vcmp.eq.s32.totalorder %v8727_v43, %v8841_v29  ;;  %vm8865_vm15 = vcmp.eq.s32.totalorder %v8728_v46, %v8841_v29 }
 0x779   :  { %3437 = vmatmul.msk.f32.gmra.mxu3 %vm8861_vm9, %v3415_v32  ;;  %vm8868_vm9 = vcmp.eq.s32.totalorder %v8735_v33, %v8841_v29 }
 0x77a   :  { %3572 = vmatpush.msk.msra.mxu3 %vm8859_vm11, %v8608_v48  ;;  %3557 = vmatpush.msk.msra.mxu2 %vm8862_vm10, %v8608_v48  ;;  %vm8866_vm11 = vcmp.eq.s32.totalorder %v8731_v19, %v8841_v29  ;;  %vm8869_vm10 = vcmp.eq.s32.totalorder %v8736_v42, %v8841_v29 }
 0x77c   :  { %3573 = vmatpush.msk.msra.mxu3 %vm8863_vm8, %v8608_v48  ;;  %3558 = vmatpush.msk.msra.mxu2 %vm8864_vm5, %v8608_v48  ;;  %vm8870_vm8 = vcmask 130048  }
 0x77d   :  { %vm8871_vm5 = vmmov %vm8870_vm8 }
 0x77e   :  { %3574 = vmatpush.msk.msra.mxu3 %vm8865_vm15, %v8608_v48  ;;  %3559 = vmatpush.msk.msra.mxu2 %vm8866_vm11, %v8608_v48  ;;  %vm8872_vm15 = vcmp.eq.s32.totalorder %v8740_v11, %v8841_v29  ;;  %vm8873_vm11 = vcmp.eq.s32.totalorder %v8741_v18, %v8841_v29 }
 0x77f   :  { %3430 = vmatmul.msk.f32.gmra.mxu2 %vm8870_vm8, %v3416_v34  ;;  %vm8877_vm8 = vcmp.eq.s32.totalorder %v8750_v10, %v8841_v29 }
 0x780   :  { %3575 = vmatpush.msk.msra.mxu3 %vm8867_vm6, %v8608_v48  ;;  %3560 = vmatpush.msk.msra.mxu2 %vm8868_vm9, %v8608_v48  ;;  %vm8874_vm6 = vcmp.eq.s32.totalorder %v8744_v3, %v8841_v29  ;;  %vm8875_vm9 = vcmp.eq.s32.totalorder %v8745_v35, %v8841_v29 }
 0x781   :  { %3438 = vmatmul.msk.f32.gmra.mxu3 %vm8871_vm5, %v3416_v34  ;;  %vm8878_vm5 = vcmp.eq.s32.totalorder %v8755_v31, %v8841_v29 }
 0x782   :  { %3576 = vmatpush.msk.msra.mxu3 %vm8869_vm10, %v8608_v48  ;;  %3561 = vmatpush.msk.msra.mxu2 %vm8872_vm15, %v8608_v48  ;;  %vm8876_vm10 = vcmp.eq.s32.totalorder %v8749_v54, %v8841_v29  ;;  %vm8879_vm15 = vcmp.eq.s32.totalorder %v8756_v25, %v8841_v29 }
 0x784   :  { %3577 = vmatpush.msk.msra.mxu3 %vm8873_vm11, %v8608_v48  ;;  %3562 = vmatpush.msk.msra.mxu2 %vm8874_vm6, %v8608_v48 }
 0x786   :  { %3578 = vmatpush.msk.msra.mxu3 %vm8875_vm9, %v8608_v48  ;;  %3563 = vmatpush.msk.msra.mxu2 %vm8876_vm10, %v8608_v48  ;;  %vm8880_vm10 = vcmask 130048  }
 0x787   :  { %3431 = vmatmul.msk.f32.gmra.mxu2 %vm8880_vm10, %v3417_v40 }
 0x788   :  { %3579 = vmatpush.msk.msra.mxu3 %vm8877_vm8, %v8608_v48  ;;  %3564 = vmatpush.msk.msra.mxu2 %vm8878_vm5, %v8608_v48  ;;  %vm8881_vm8 = vmmov %vm8880_vm10 }
 0x789   :  { %3439 = vmatmul.msk.f32.gmra.mxu3 %vm8881_vm8, %v3417_v40  ;;  %vm8882_vm5 = vmmov %vm8881_vm8 }
 0x78a   :  { %3580 = vmatpush.msk.msra.mxu3 %vm8879_vm15, %v8608_v48  ;;  %vm8883_vm15 = vmmov %vm8882_vm5 }
 0x78f   :  { %3432 = vmatmul.msk.f32.gmra.mxu2 %vm8882_vm5, %v3418_v21 }
 0x791   :  { %3440 = vmatmul.msk.f32.gmra.mxu3 %vm8883_vm15, %v3418_v21  ;;  %vm8894_vm15 = vnez %v8893_v7 }
 0x7e0   :  { %v2171_v38 = vpop.xlane.xlu0 %2170 }
 0x7e1   :  { %v2179_v56 = vmul.f32 0.00390625, %v2171_v38 }
 0x7e2   :  { %v2178_v4 = vpop.xlane.xlu2 %2177 }
 0x7e3   :  { %v2181_v59 = vmul.f32 %v2179_v56, %v2179_v56  ;;  %v2180_v49 = vmul.f32 0.00390625, %v2178_v4  ;;  %v2298_v4 = vpop.f32.mrf.mxu3 }
 0x7e5   :  { %v2182_v15 = vsub.f32 %v2180_v49, %v2181_v59 }
 0x7e7   :  { %v2183_v62 = vmax.f32 %v2182_v15, 0.0 }
 0x7e9   :  { %v2184_v23 = vadd.f32 1e-05, %v2183_v62 }
 0x7eb   :  { %3787 = vrsqrt.f32 %v2184_v23  ;;  %vm2191_vm6 = vweird.f32 %v2184_v23 }
 0x7f1   :  { %v3788_v36 = vpop.eup %3787 }
 0x7f2   :  { %v2186_v37 = vmul.f32 %v3788_v36, %v2184_v23  ;;  %vm2192_vm11 = vweird.f32 %v3788_v36 }
 0x7f3   :  { %vm2193_vm9 = vmor %vm2191_vm6, %vm2192_vm11 }
 0x7f4   :  { %v2187_v5 = vmul.f32 %v3788_v36, %v2186_v37  ;;  %v2301_v59 = vpop.f32.mrf.mxu3 }
 0x7f6   :  { %v2188_v8 = vmul.f32 0.5, %v2187_v5  ;;  %v8884_v5 = vld [vmem:[#allocation4_spill] sm:$0xff] }
 0x7f7   :  { %vm8885_vm11 = vcmp.lt.s32.totalorder %v8884_v5, 1  ;;  %vm8891_vm8 = vcmp.lt.s32.totalorder %v8884_v5, 127 }
 0x7f8   :  { %v2189_v13 = vsub.f32 1.5, %v2188_v8  ;;  %vm8886_vm6 = vmmov %vm8885_vm11 }
 0x7f9   :  { %vm8892_vm5 = vmmov %vm8891_vm8 }
 0x7fa   :  { %v2190_v44 = vmul.f32 %v3788_v36, %v2189_v13 }
 0x7fc   :  { %v2194_v45 = vsel %vm2193_vm9, %v3788_v36, %v2190_v44  ;;  %v2304_v15 = vpop.f32.mrf.mxu3 }
 0x7fd   :  { %v2195_v41 = vmul.f32 %v3411_v14, %v2194_v45  ;;  %v8887_v14 = vld [vmem:[#allocation53_spill] sm:$0xff]  ;;  %v8889_v45 = vld [vmem:[#allocation54_spill] sm:$0xff] }
 0x7fe   :  { %vm8888_vm9 = vnez %v8887_v14  ;;  %vm8890_vm10 = vnez %v8889_v45 }
 0x7ff   :  { %2198 = vperm.xlu1 %3777, %v2195_v41   ;;  %v2203_v17 = vmul.f32 %v2195_v41, %v2179_v56 }
 0x801   :  { %v2204_v6 = vsub.f32 %v3412_v28, %v2203_v17 }
 0x804   :  { %v2307_v37 = vpop.f32.mrf.mxu3 }
 0x807   :  { %2207 = vperm.xlu1 %3777, %v2204_v6  }
 0x871   :  { %v2199_v29 = vpop.permute.xlu1 %2198 }
 0x872   :  { %v2201_v30 = vmul.f32 %v2199_v29, %v6811_v1  ;;  %v2202_v32 = vmul.f32 %v2199_v29, %v6813_v2  ;;  %v2263_v1 = vpop.f32.mrf.mxu2 }
 0x879   :  { %v2208_v34 = vpop.permute.xlu1 %2207 }
 0x87a   :  { %v6995_v38 = vadd.f32 %v2208_v34, %v2201_v30  ;;  %v6997_v56 = vadd.f32 %v2208_v34, %v2202_v32  ;;  %v2266_v2 = vpop.f32.mrf.mxu2 }
 0x87c   :  { %2222 = vrot.lane.b32.xlu2 %v6997_v56, %s3793_s24  ;;  %2220 = vrot.lane.b32.xlu0 %v6995_v38, %s3793_s24  ;;  %v2359_v10 = vperm.slane %v6997_v56, 1  ;;  %v2371_v33 = vperm.slane %v6997_v56, 2 }
 0x87d   :  { %2212 = vrot.lane.b32.xlu1 %v6995_v38, %s3794_s25 }
 0x882   :  { %v2269_v49 = vpop.f32.mrf.mxu2 }
 0x885   :  { %2214 = vrot.lane.b32.xlu1 %v6997_v56, %s3794_s25 }
 0x88a   :  { %v2272_v36 = vpop.f32.mrf.mxu2 }
 0x8d6   :  { %v2223_v14 = vpop.permute.xlu2 %2222 }
 0x8ee   :  { %v2221_v30 = vpop.permute.xlu0 %2220 }
 0x8ef   :  { %v2213_v62 = vpop.permute.xlu1 %2212  ;;  %v2224_v3 = vsel %vm8891_vm8, %v2221_v30, %v2223_v14 }
 0x8f7   :  { %v2215_v23 = vpop.permute.xlu1 %2214 }
 0x8f8   :  { %v2216_v8 = vsel %vm8885_vm11, %v2213_v62, %v2215_v23  ;;  %v2217_v13 = vsel %vm8886_vm6, %v2215_v23, %v2213_v62 }
 0x8f9   :  { %v2218_v44 = vsel %vm8888_vm9, 0.0, %v2217_v13  ;;  %v2219_v41 = vsel %vm8890_vm10, 0.0, %v2216_v8  ;;  %v2358_v13 = vperm.slane %v6995_v38, 1 }
 0x8fa   :  { %v2316_v17 = vperm.slane %v2218_v44, 0  ;;  %v2317_v28 = vperm.slane %v2219_v41, 0  ;;  %v2322_v6 = vperm.slane %v2218_v44, 1  ;;  %v2323_v40 = vperm.slane %v2219_v41, 1 }
 0x8fb   :  { %v2340_v21 = vperm.slane %v2218_v44, 3  ;;  %v2341_v29 = vperm.slane %v2219_v41, 3  ;;  %v2334_v25 = vperm.slane %v2218_v44, 2  ;;  %v2335_v31 = vperm.slane %v2219_v41, 2 }
 0x8fc   :  { %v2324_v32 = vmul.f32 %v2322_v6, %v2263_v1  ;;  %v2325_v34 = vmul.f32 %v2323_v40, %v2298_v4  ;;  %v2318_v62 = vmul.f32 %v2316_v17, %v2263_v1  ;;  %v2319_v23 = vmul.f32 %v2317_v28, %v2298_v4  ;;  %v2275_v40 = vpop.f32.mrf.mxu2  ;;  %v2310_v1 = vpop.f32.mrf.mxu3 }
 0x8fd   :  { %v2342_v54 = vmul.f32 %v2340_v21, %v2266_v2  ;;  %v2343_v35 = vmul.f32 %v2341_v29, %v2301_v59  ;;  %v2225_v6 = vsel %vm8892_vm5, %v2223_v14, %v2221_v30  ;;  %v2353_v44 = vperm.slane %v6997_v56, 0 }
 0x8fe   :  { %v2328_v45 = vrot.slane %v2324_v32, 4  ;;  %v2329_v8 = vrot.slane %v2325_v34, 4  ;;  %v2352_v41 = vperm.slane %v6995_v38, 0  ;;  %v2336_v28 = vmul.f32 %v2334_v25, %v2266_v2 }
 0x8ff   :  { %v2337_v18 = vmul.f32 %v2335_v31, %v2301_v59  ;;  %v2376_v32 = vperm.slane %v6995_v38, 3  ;;  %v2377_v21 = vperm.slane %v6997_v56, 3  ;;  %v2361_v29 = vmul.f32 %v2359_v10, %v2304_v15 }
 0x900   :  { %v2332_v4 = vadd.f32 %v2328_v45, %v2318_v62  ;;  %v2333_v17 = vadd.f32 %v2329_v8, %v2319_v23  ;;  %v2360_v34 = vmul.f32 %v2358_v13, %v2269_v49  ;;  %v2346_v5 = vrot.slane %v2342_v54, 4  ;;  %v8895_v23 = vld [vmem:[#allocation60_spill] sm:$0xff] }
 0x901   :  { %v2347_v30 = vrot.slane %v2343_v35, 4  ;;  %v2370_v14 = vperm.slane %v6995_v38, 2  ;;  %v2226_v62 = vsel %vm8894_vm15, 0.0, %v2224_v3  ;;  %vm8896_vm11 = vnez %v8895_v23 }
 0x902   :  { %v2338_v11 = vadd.f32 %v2336_v28, %v2332_v4  ;;  %v2339_v42 = vadd.f32 %v2337_v18, %v2333_v17  ;;  %v2227_v31 = vsel %vm8896_vm11, 0.0, %v2225_v6  ;;  %v2355_v25 = vmul.f32 %v2353_v44, %v2304_v15 }
 0x903   :  { %v2354_v45 = vmul.f32 %v2352_v41, %v2269_v49  ;;  %v2378_v10 = vmul.f32 %v2376_v32, %v2272_v36  ;;  %v2379_v13 = vmul.f32 %v2377_v21, %v2307_v37  ;;  %v2365_v8 = vrot.slane %v2361_v29, 4 }
 0x904   :  { %v2350_v2 = vadd.f32 %v2346_v5, %v2338_v11  ;;  %v2351_v59 = vadd.f32 %v2347_v30, %v2339_v42  ;;  %v2364_v18 = vrot.slane %v2360_v34, 4  ;;  %v2394_v54 = vperm.slane %v2226_v62, 1  ;;  %v2278_v44 = vpop.f32.mrf.mxu2  ;;  %v2313_v41 = vpop.f32.mrf.mxu3 }
 0x905   :  { %v2395_v35 = vperm.slane %v2227_v31, 1  ;;  %v2372_v17 = vmul.f32 %v2370_v14, %v2272_v36  ;;  %v2373_v56 = vmul.f32 %v2371_v33, %v2307_v37  ;;  %v2388_v28 = vperm.slane %v2226_v62, 0 }
 0x906   :  { %v2356_v4 = vadd.f32 %v2354_v45, %v2350_v2  ;;  %v2357_v38 = vadd.f32 %v2355_v25, %v2351_v59  ;;  %v2389_v7 = vperm.slane %v2227_v31, 0  ;;  %v2382_v23 = vrot.slane %v2378_v10, 4 }
 0x907   :  { %v2383_v6 = vrot.slane %v2379_v13, 4  ;;  %v2412_v15 = vperm.slane %v2226_v62, 3  ;;  %v2413_v11 = vperm.slane %v2227_v31, 3  ;;  %v2396_v42 = vmul.f32 %v2394_v54, %v2275_v40 }
 0x908   :  { %v2368_v3 = vadd.f32 %v2364_v18, %v2356_v4  ;;  %v2369_v19 = vadd.f32 %v2365_v8, %v2357_v38  ;;  %v2397_v49 = vmul.f32 %v2395_v35, %v2310_v1  ;;  %v2406_v29 = vperm.slane %v2226_v62, 2 }
 0x909   :  { %v2407_v34 = vperm.slane %v2227_v31, 2  ;;  %v2390_v5 = vmul.f32 %v2388_v28, %v2275_v40  ;;  %v2391_v30 = vmul.f32 %v2389_v7, %v2310_v1  ;;  %v2414_v37 = vmul.f32 %v2412_v15, %v2278_v44  ;;  %v8927_v28 = vld [vmem:[#allocation41_spill] sm:$0xff]  ;;  %v8929_v7 = vld [vmem:[#allocation42_spill] sm:$0xff]  ;;  %v8937_v15 = vld [vmem:[#allocation48_spill] sm:$0xff] }
 0x90a   :  { %v2374_v32 = vadd.f32 %v2372_v17, %v2368_v3  ;;  %v2375_v21 = vadd.f32 %v2373_v56, %v2369_v19  ;;  %v2415_v14 = vmul.f32 %v2413_v11, %v2313_v41  ;;  %v2400_v25 = vrot.slane %v2396_v42, 4  ;;  %v8898_v17 = vld [vmem:[#allocation6_spill] sm:$0xff]  ;;  %v8925_v56 = vld [vmem:[#allocation39_spill] sm:$0xff]  ;;  %v8931_v3 = vld [vmem:[#allocation44_spill] sm:$0xff] }
 0x90b   :  { %v2401_v2 = vrot.slane %v2397_v49, 4  ;;  %v2408_v10 = vmul.f32 %v2406_v29, %v2278_v44  ;;  %v2409_v13 = vmul.f32 %v2407_v34, %v2313_v41  ;;  %v2418_v54 = vrot.slane %v2414_v37, 4  ;;  %v8939_v11 = vld [vmem:[#allocation2_spill] sm:$0xff] }
 0x90c   :  { %v2386_v36 = vadd.f32 %v2382_v23, %v2374_v32  ;;  %v2387_v33 = vadd.f32 %v2383_v6, %v2375_v21  ;;  %v2419_v35 = vrot.slane %v2415_v14, 4  ;;  %vm8899_vm6 = vcmp.eq.s32.totalorder %v8706_v55, %v8898_v17  ;;  %v8933_v23 = vld [vmem:[#allocation46_spill] sm:$0xff]  ;;  %v8935_v6 = vld [vmem:[#allocation3_spill] sm:$0xff] }
 0x90d   :  { %vm8904_vm9 = vcmp.eq.s32.totalorder %v8711_v51, %v8898_v17  ;;  %vm8905_vm10 = vcmp.eq.s32.totalorder %v8713_v12, %v8898_v17  ;;  %vm8906_vm8 = vcmp.eq.s32.totalorder %v8714_v61, %v8898_v17  ;;  %vm8907_vm5 = vcmp.eq.s32.totalorder %v8715_v63, %v8898_v17  ;;  %v8941_v42 = vld [vmem:[#allocation50_spill] sm:$0xff] }
 0x90e   :  { %v2392_v59 = vadd.f32 %v2390_v5, %v2386_v36  ;;  %v2393_v45 = vadd.f32 %v2391_v30, %v2387_v33  ;;  %vm8908_vm15 = vcmp.eq.s32.totalorder %v8716_v58, %v8898_v17  ;;  %vm8909_vm11 = vcmp.eq.s32.totalorder %v8717_v57, %v8898_v17 }
 0x910   :  { %v2404_v8 = vadd.f32 %v2400_v25, %v2392_v59  ;;  %v2405_v18 = vadd.f32 %v2401_v2, %v2393_v45 }
 0x912   :  { %v2410_v4 = vadd.f32 %v2408_v10, %v2404_v8  ;;  %v2411_v19 = vadd.f32 %v2409_v13, %v2405_v18  ;;  %v3419_v13 = vld [vmem:[%s7990_s5 + $0x8] sm:$0xf] }
 0x914   :  { %v7031_v62 = vadd.f32 %v2418_v54, %v2410_v4  ;;  %v7033_v40 = vadd.f32 %v2419_v35, %v2411_v19  ;;  %v8945_v54 = vld [vmem:[#allocation61_spill] sm:$0xff]  ;;  %v3420_v4 = vld [vmem:[%s7991_s6 + $0x8] sm:$0xf] }
 0x916   :  { %2440 = vmatmul.f32.vlgmr.msrb.gmra.mxu0 %v7031_v62  ;;  %2460 = vmatmul.f32.vlgmr.msrb.gmra.mxu1 %v7033_v40  ;;  %v2464_v1 = vmul.f32 %v7031_v62, %v7031_v62  ;;  %v2465_v31 = vmul.f32 %v7033_v40, %v7033_v40 }
 0x917   :  { %3511 = vmatpush.msk.msrb.mxu0 %vm8673_vm13, %v8608_v48  ;;  %3514 = vmatpush.msk.msrb.mxu1 %vm8674_vm7, %v8608_v48  ;;  %vm8900_vm13 = vcmp.eq.s32.totalorder %v8707_v0, %v8898_v17  ;;  %vm8901_vm7 = vcmp.eq.s32.totalorder %v8708_v53, %v8898_v17 }
 0x918   :  { %2482 = vmatmul.f32.vlgmr.msrb.gmra.mxu2 %v2464_v1  ;;  %2502 = vmatmul.f32.vlgmr.msrb.gmra.mxu3 %v2465_v31  ;;  %v8980_v1 = vld [vmem:[#allocation7_spill] sm:$0xff] }
 0x919   :  { %3512 = vmatpush.msk.msrb.mxu0 %vm8675_vm4, %v8608_v48  ;;  %3515 = vmatpush.msk.msrb.mxu1 %vm8676_vm2, %v8608_v48  ;;  %vm8902_vm4 = vcmp.eq.s32.totalorder %v8709_v20, %v8898_v17  ;;  %vm8903_vm2 = vcmp.eq.s32.totalorder %v8710_v16, %v8898_v17 }
 0x91a   :  { %3613 = vmatpush.msk.msrb.mxu2 %vm8899_vm6, %v8608_v48  ;;  %3629 = vmatpush.msk.msrb.mxu3 %vm8900_vm13, %v8608_v48  ;;  %vm8910_vm6 = vcmp.eq.s32.totalorder %v8718_v50, %v8898_v17  ;;  %vm8911_vm13 = vcmp.eq.s32.totalorder %v8719_v9, %v8898_v17 }
 0x91c   :  { %3614 = vmatpush.msk.msrb.mxu2 %vm8901_vm7, %v8608_v48  ;;  %3630 = vmatpush.msk.msrb.mxu3 %vm8902_vm4, %v8608_v48  ;;  %vm8912_vm7 = vcmp.eq.s32.totalorder %v8720_v52, %v8898_v17  ;;  %vm8913_vm4 = vcmp.eq.s32.totalorder %v8721_v39, %v8898_v17 }
 0x91e   :  { %3615 = vmatpush.msk.msrb.mxu2 %vm8903_vm2, %v8608_v48  ;;  %3631 = vmatpush.msk.msrb.mxu3 %vm8904_vm9, %v8608_v48  ;;  %vm8914_vm2 = vcmp.eq.s32.totalorder %v8722_v47, %v8898_v17  ;;  %vm8915_vm9 = vcmp.eq.s32.totalorder %v8723_v60, %v8898_v17 }
 0x920   :  { %3616 = vmatpush.msk.msrb.mxu2 %vm8905_vm10, %v8608_v48  ;;  %3632 = vmatpush.msk.msrb.mxu3 %vm8906_vm8, %v8608_v48  ;;  %vm8916_vm10 = vcmp.eq.s32.totalorder %v8724_v26, %v8898_v17  ;;  %vm8917_vm8 = vcmp.eq.s32.totalorder %v8727_v43, %v8898_v17 }
 0x922   :  { %3617 = vmatpush.msk.msrb.mxu2 %vm8907_vm5, %v8608_v48  ;;  %3633 = vmatpush.msk.msrb.mxu3 %vm8908_vm15, %v8608_v48  ;;  %vm8918_vm5 = vcmp.eq.s32.totalorder %v8728_v46, %v8898_v17  ;;  %vm8920_vm15 = vcmp.eq.s32.totalorder %v8919_v22, %v8898_v17 }
 0x924   :  { %3618 = vmatpush.msk.msrb.mxu2 %vm8909_vm11, %v8608_v48  ;;  %3634 = vmatpush.msk.msrb.mxu3 %vm8910_vm6, %v8608_v48  ;;  %vm8922_vm11 = vcmp.eq.s32.totalorder %v8921_v24, %v8898_v17  ;;  %vm8924_vm6 = vcmp.eq.s32.totalorder %v8923_v27, %v8898_v17 }
 0x926   :  { %3619 = vmatpush.msk.msrb.mxu2 %vm8911_vm13, %v8608_v48  ;;  %3635 = vmatpush.msk.msrb.mxu3 %vm8912_vm7, %v8608_v48  ;;  %vm8926_vm13 = vcmp.eq.s32.totalorder %v8925_v56, %v8898_v17  ;;  %vm8928_vm7 = vcmp.eq.s32.totalorder %v8927_v28, %v8898_v17 }
 0x928   :  { %3620 = vmatpush.msk.msrb.mxu2 %vm8913_vm4, %v8608_v48  ;;  %3636 = vmatpush.msk.msrb.mxu3 %vm8914_vm2, %v8608_v48  ;;  %vm8930_vm4 = vcmp.eq.s32.totalorder %v8929_v7, %v8898_v17  ;;  %vm8932_vm2 = vcmp.eq.s32.totalorder %v8931_v3, %v8898_v17 }
 0x92a   :  { %3621 = vmatpush.msk.msrb.mxu2 %vm8915_vm9, %v8608_v48  ;;  %3637 = vmatpush.msk.msrb.mxu3 %vm8916_vm10, %v8608_v48  ;;  %vm8934_vm9 = vcmp.eq.s32.totalorder %v8933_v23, %v8898_v17  ;;  %vm8936_vm10 = vcmp.eq.s32.totalorder %v8935_v6, %v8898_v17 }
 0x92c   :  { %3622 = vmatpush.msk.msrb.mxu2 %vm8917_vm8, %v8608_v48  ;;  %3638 = vmatpush.msk.msrb.mxu3 %vm8918_vm5, %v8608_v48  ;;  %vm8938_vm8 = vcmp.eq.s32.totalorder %v8937_v15, %v8898_v17  ;;  %vm8940_vm5 = vcmp.eq.s32.totalorder %v8939_v11, %v8898_v17 }
 0x92e   :  { %3623 = vmatpush.msk.msrb.mxu2 %vm8920_vm15, %v8608_v48  ;;  %3639 = vmatpush.msk.msrb.mxu3 %vm8922_vm11, %v8608_v48  ;;  %vm8942_vm15 = vcmp.eq.s32.totalorder %v8941_v42, %v8898_v17 }
 0x930   :  { %3624 = vmatpush.msk.msrb.mxu2 %vm8924_vm6, %v8608_v48  ;;  %3640 = vmatpush.msk.msrb.mxu3 %vm8926_vm13, %v8608_v48 }
 0x932   :  { %3625 = vmatpush.msk.msrb.mxu2 %vm8928_vm7, %v8608_v48  ;;  %3641 = vmatpush.msk.msrb.mxu3 %vm8930_vm4, %v8608_v48  ;;  %vm8943_vm7 = vcmask 130048  }
 0x933   :  { %vm8944_vm4 = vmmov %vm8943_vm7 }
 0x934   :  { %3626 = vmatpush.msk.msrb.mxu2 %vm8932_vm2, %v8608_v48  ;;  %3642 = vmatpush.msk.msrb.mxu3 %vm8934_vm9, %v8608_v48  ;;  %vm8946_vm2 = vcmp.eq.s32.totalorder %v8706_v55, %v8945_v54  ;;  %vm8947_vm9 = vcmp.eq.s32.totalorder %v8707_v0, %v8945_v54 }
 0x936   :  { %3627 = vmatpush.msk.msrb.mxu2 %vm8936_vm10, %v8608_v48  ;;  %3643 = vmatpush.msk.msrb.mxu3 %vm8938_vm8, %v8608_v48  ;;  %vm8948_vm10 = vcmp.eq.s32.totalorder %v8708_v53, %v8945_v54  ;;  %vm8949_vm8 = vcmp.eq.s32.totalorder %v8709_v20, %v8945_v54 }
 0x938   :  { %3628 = vmatpush.msk.msrb.mxu2 %vm8940_vm5, %v8608_v48  ;;  %3644 = vmatpush.msk.msrb.mxu3 %vm8942_vm15, %v8608_v48  ;;  %vm8950_vm5 = vcmp.eq.s32.totalorder %v8710_v16, %v8945_v54  ;;  %vm8951_vm15 = vcmp.eq.s32.totalorder %v8711_v51, %v8945_v54 }
 0x993   :  { %v2441_v49 = vpop.f32.mrf.mxu0  ;;  %v2461_v44 = vpop.f32.mrf.mxu1 }
 0x994   :  { %v2462_v41 = vadd.f32 %v2461_v44, %v2441_v49 }
 0x996   :  { %v2506_v32 = vmul.f32 0.0625, %v2462_v41 }
 0x998   :  { %v2508_v5 = vmul.f32 %v2506_v32, %v2506_v32 }
 0x99b   :  { %v2483_v21 = vpop.f32.mrf.mxu2  ;;  %v2503_v29 = vpop.f32.mrf.mxu3 }
 0x99c   :  { %v2504_v34 = vadd.f32 %v2503_v29, %v2483_v21  ;;  %v9013_v29 = vld [vmem:[#allocation8_spill] sm:$0xff] }
 0x99e   :  { %v2507_v30 = vmul.f32 0.0625, %v2504_v34  ;;  %v9082_v34 = vld [vmem:[#allocation11_spill] sm:$0xff] }
 0x9a0   :  { %v2509_v36 = vsub.f32 %v2507_v30, %v2508_v5 }
 0x9a2   :  { %v2510_v33 = vmax.f32 %v2509_v36, 0.0 }
 0x9a4   :  { %v2511_v37 = vadd.f32 1e-05, %v2510_v33 }
 0x9a6   :  { %3789 = vrsqrt.f32 %v2511_v37  ;;  %vm2518_vm6 = vweird.f32 %v2511_v37 }
 0x9ac   :  { %v3790_v14 = vpop.eup %3789 }
 0x9ad   :  { %v2513_v25 = vmul.f32 %v3790_v14, %v2511_v37  ;;  %vm2519_vm11 = vweird.f32 %v3790_v14 }
 0x9ae   :  { %vm2520_vm13 = vmor %vm2518_vm6, %vm2519_vm11  ;;  %vm8952_vm11 = vcmp.eq.s32.totalorder %v8713_v12, %v8945_v54  ;;  %vm8953_vm6 = vcmp.eq.s32.totalorder %v8714_v61, %v8945_v54 }
 0x9af   :  { %v2514_v2 = vmul.f32 %v3790_v14, %v2513_v25 }
 0x9b1   :  { %v2515_v59 = vmul.f32 0.5, %v2514_v2 }
 0x9b3   :  { %v2516_v45 = vsub.f32 1.5, %v2515_v59 }
 0x9b5   :  { %v2517_v10 = vmul.f32 %v3790_v14, %v2516_v45 }
 0x9b7   :  { %v2521_v8 = vsel %vm2520_vm13, %v3790_v14, %v2517_v10  ;;  %vm8954_vm13 = vmmov %vm8944_vm4 }
 0x9b8   :  { %v2522_v18 = vmul.f32 %v3419_v13, %v2521_v8 }
 0x9ba   :  { %3507 = vmatmul.msk.f32.vlgmr.msra.gmra.mxu0 %vm8943_vm7, %v2522_v18  ;;  %3510 = vmatmul.msk.f32.vlgmr.msra.gmra.mxu1 %vm8944_vm4, %v2522_v18  ;;  %v2523_v35 = vmul.f32 %v2522_v18, %v2506_v32  ;;  %vm8955_vm7 = vmmov %vm8944_vm4  ;;  %vm8956_vm4 = vcmp.eq.s32.totalorder %v8715_v63, %v8945_v54 }
 0x9bb   :  { %3517 = vmatpush.msk.msra.mxu0 %vm8946_vm2, %v8608_v48  ;;  %3533 = vmatpush.msk.msra.mxu1 %vm8947_vm9, %v8608_v48  ;;  %vm8957_vm2 = vcmp.eq.s32.totalorder %v8716_v58, %v8945_v54  ;;  %vm8958_vm9 = vcmp.eq.s32.totalorder %v8717_v57, %v8945_v54 }
 0x9bc   :  { %v2524_v19 = vsub.f32 %v3420_v4, %v2523_v35 }
 0x9bd   :  { %3518 = vmatpush.msk.msra.mxu0 %vm8948_vm10, %v8608_v48  ;;  %3534 = vmatpush.msk.msra.mxu1 %vm8949_vm8, %v8608_v48  ;;  %vm8959_vm10 = vcmp.eq.s32.totalorder %v8718_v50, %v8945_v54  ;;  %vm8960_vm8 = vcmp.eq.s32.totalorder %v8719_v9, %v8945_v54 }
 0x9bf   :  { %3519 = vmatpush.msk.msra.mxu0 %vm8950_vm5, %v8608_v48  ;;  %3535 = vmatpush.msk.msra.mxu1 %vm8951_vm15, %v8608_v48  ;;  %vm8961_vm5 = vcmp.eq.s32.totalorder %v8720_v52, %v8945_v54  ;;  %vm8962_vm15 = vcmp.eq.s32.totalorder %v8721_v39, %v8945_v54 }
 0x9c1   :  { %3520 = vmatpush.msk.msra.mxu0 %vm8952_vm11, %v8608_v48  ;;  %3536 = vmatpush.msk.msra.mxu1 %vm8953_vm6, %v8608_v48  ;;  %vm8963_vm11 = vcmp.eq.s32.totalorder %v8722_v47, %v8945_v54  ;;  %vm8964_vm6 = vcmp.eq.s32.totalorder %v8723_v60, %v8945_v54 }
 0x9c2   :  { %3513 = vmatmul.msk.f32.vlgmr.msrb.gmra.mxu0 %vm8954_vm13, %v2524_v19  ;;  %3516 = vmatmul.msk.f32.vlgmr.msrb.gmra.mxu1 %vm8955_vm7, %v2524_v19  ;;  %vm8965_vm13 = vcmp.eq.s32.totalorder %v8724_v26, %v8945_v54  ;;  %vm8966_vm7 = vcmp.eq.s32.totalorder %v8727_v43, %v8945_v54 }
 0x9c3   :  { %3521 = vmatpush.msk.msra.mxu0 %vm8956_vm4, %v8608_v48  ;;  %3537 = vmatpush.msk.msra.mxu1 %vm8957_vm2, %v8608_v48  ;;  %vm8967_vm4 = vcmp.eq.s32.totalorder %v8728_v46, %v8945_v54  ;;  %vm8968_vm2 = vcmp.eq.s32.totalorder %v8919_v22, %v8945_v54 }
 0x9c5   :  { %3522 = vmatpush.msk.msra.mxu0 %vm8958_vm9, %v8608_v48  ;;  %3538 = vmatpush.msk.msra.mxu1 %vm8959_vm10, %v8608_v48  ;;  %vm8969_vm9 = vcmp.eq.s32.totalorder %v8921_v24, %v8945_v54  ;;  %vm8970_vm10 = vcmp.eq.s32.totalorder %v8923_v27, %v8945_v54 }
 0x9c7   :  { %3523 = vmatpush.msk.msra.mxu0 %vm8960_vm8, %v8608_v48  ;;  %3539 = vmatpush.msk.msra.mxu1 %vm8961_vm5, %v8608_v48  ;;  %vm8971_vm8 = vcmp.eq.s32.totalorder %v8925_v56, %v8945_v54  ;;  %vm8972_vm5 = vcmp.eq.s32.totalorder %v8927_v28, %v8945_v54 }
 0x9c9   :  { %3524 = vmatpush.msk.msra.mxu0 %vm8962_vm15, %v8608_v48  ;;  %3540 = vmatpush.msk.msra.mxu1 %vm8963_vm11, %v8608_v48  ;;  %vm8973_vm15 = vcmp.eq.s32.totalorder %v8929_v7, %v8945_v54  ;;  %vm8974_vm11 = vcmp.eq.s32.totalorder %v8931_v3, %v8945_v54 }
 0x9cb   :  { %3525 = vmatpush.msk.msra.mxu0 %vm8964_vm6, %v8608_v48  ;;  %3541 = vmatpush.msk.msra.mxu1 %vm8965_vm13, %v8608_v48  ;;  %vm8975_vm6 = vcmp.eq.s32.totalorder %v8933_v23, %v8945_v54  ;;  %vm8976_vm13 = vcmp.eq.s32.totalorder %v8935_v6, %v8945_v54 }
 0x9cd   :  { %3526 = vmatpush.msk.msra.mxu0 %vm8966_vm7, %v8608_v48  ;;  %3542 = vmatpush.msk.msra.mxu1 %vm8967_vm4, %v8608_v48  ;;  %vm8977_vm7 = vcmp.eq.s32.totalorder %v8937_v15, %v8945_v54  ;;  %vm8978_vm4 = vcmp.eq.s32.totalorder %v8939_v11, %v8945_v54 }
 0x9cf   :  { %3527 = vmatpush.msk.msra.mxu0 %vm8968_vm2, %v8608_v48  ;;  %3543 = vmatpush.msk.msra.mxu1 %vm8969_vm9, %v8608_v48  ;;  %vm8979_vm2 = vcmp.eq.s32.totalorder %v8941_v42, %v8945_v54  ;;  %vm8981_vm9 = vcmp.eq.s32.totalorder %v8706_v55, %v8980_v1 }
 0x9d1   :  { %3528 = vmatpush.msk.msra.mxu0 %vm8970_vm10, %v8608_v48  ;;  %3544 = vmatpush.msk.msra.mxu1 %vm8971_vm8, %v8608_v48  ;;  %vm8982_vm10 = vcmp.eq.s32.totalorder %v8707_v0, %v8980_v1  ;;  %vm8983_vm8 = vcmp.eq.s32.totalorder %v8708_v53, %v8980_v1 }
 0x9d3   :  { %3529 = vmatpush.msk.msra.mxu0 %vm8972_vm5, %v8608_v48  ;;  %3545 = vmatpush.msk.msra.mxu1 %vm8973_vm15, %v8608_v48  ;;  %vm8984_vm5 = vcmp.eq.s32.totalorder %v8709_v20, %v8980_v1  ;;  %vm8985_vm15 = vcmp.eq.s32.totalorder %v8710_v16, %v8980_v1 }
 0x9d5   :  { %3530 = vmatpush.msk.msra.mxu0 %vm8974_vm11, %v8608_v48  ;;  %3546 = vmatpush.msk.msra.mxu1 %vm8975_vm6, %v8608_v48  ;;  %vm8986_vm11 = vcmp.eq.s32.totalorder %v8711_v51, %v8980_v1  ;;  %vm8987_vm6 = vcmp.eq.s32.totalorder %v8713_v12, %v8980_v1 }
 0x9d7   :  { %3531 = vmatpush.msk.msra.mxu0 %vm8976_vm13, %v8608_v48  ;;  %3547 = vmatpush.msk.msra.mxu1 %vm8977_vm7, %v8608_v48  ;;  %vm8988_vm13 = vcmp.eq.s32.totalorder %v8714_v61, %v8980_v1  ;;  %vm8989_vm7 = vcmp.eq.s32.totalorder %v8715_v63, %v8980_v1 }
 0x9d9   :  { %3532 = vmatpush.msk.msra.mxu0 %vm8978_vm4, %v8608_v48  ;;  %3548 = vmatpush.msk.msra.mxu1 %vm8979_vm2, %v8608_v48  ;;  %vm8990_vm4 = vcmp.eq.s32.totalorder %v8716_v58, %v8980_v1  ;;  %vm8991_vm2 = vcmp.eq.s32.totalorder %v8717_v57, %v8980_v1 }
 0x9db   :  { %3581 = vmatpush.msk.msrb.mxu0 %vm8981_vm9, %v8608_v48  ;;  %3597 = vmatpush.msk.msrb.mxu1 %vm8982_vm10, %v8608_v48  ;;  %vm8992_vm9 = vcmp.eq.s32.totalorder %v8718_v50, %v8980_v1  ;;  %vm8993_vm10 = vcmp.eq.s32.totalorder %v8719_v9, %v8980_v1 }
 0x9dd   :  { %3582 = vmatpush.msk.msrb.mxu0 %vm8983_vm8, %v8608_v48  ;;  %3598 = vmatpush.msk.msrb.mxu1 %vm8984_vm5, %v8608_v48  ;;  %vm8994_vm8 = vcmp.eq.s32.totalorder %v8720_v52, %v8980_v1  ;;  %vm8995_vm5 = vcmp.eq.s32.totalorder %v8721_v39, %v8980_v1 }
 0x9df   :  { %3583 = vmatpush.msk.msrb.mxu0 %vm8985_vm15, %v8608_v48  ;;  %3599 = vmatpush.msk.msrb.mxu1 %vm8986_vm11, %v8608_v48  ;;  %vm8996_vm15 = vcmp.eq.s32.totalorder %v8722_v47, %v8980_v1  ;;  %vm8997_vm11 = vcmp.eq.s32.totalorder %v8723_v60, %v8980_v1 }
 0x9e1   :  { %3584 = vmatpush.msk.msrb.mxu0 %vm8987_vm6, %v8608_v48  ;;  %3600 = vmatpush.msk.msrb.mxu1 %vm8988_vm13, %v8608_v48  ;;  %vm8998_vm6 = vcmp.eq.s32.totalorder %v8724_v26, %v8980_v1  ;;  %vm8999_vm13 = vcmp.eq.s32.totalorder %v8727_v43, %v8980_v1 }
 0x9e3   :  { %3585 = vmatpush.msk.msrb.mxu0 %vm8989_vm7, %v8608_v48  ;;  %3601 = vmatpush.msk.msrb.mxu1 %vm8990_vm4, %v8608_v48  ;;  %vm9000_vm7 = vcmp.eq.s32.totalorder %v8728_v46, %v8980_v1  ;;  %vm9001_vm4 = vcmp.eq.s32.totalorder %v8919_v22, %v8980_v1 }
 0x9e5   :  { %3586 = vmatpush.msk.msrb.mxu0 %vm8991_vm2, %v8608_v48  ;;  %3602 = vmatpush.msk.msrb.mxu1 %vm8992_vm9, %v8608_v48  ;;  %vm9002_vm2 = vcmp.eq.s32.totalorder %v8921_v24, %v8980_v1  ;;  %vm9003_vm9 = vcmp.eq.s32.totalorder %v8923_v27, %v8980_v1 }
 0x9e7   :  { %3587 = vmatpush.msk.msrb.mxu0 %vm8993_vm10, %v8608_v48  ;;  %3603 = vmatpush.msk.msrb.mxu1 %vm8994_vm8, %v8608_v48  ;;  %vm9004_vm10 = vcmp.eq.s32.totalorder %v8925_v56, %v8980_v1  ;;  %vm9005_vm8 = vcmp.eq.s32.totalorder %v8927_v28, %v8980_v1 }
 0x9e9   :  { %3588 = vmatpush.msk.msrb.mxu0 %vm8995_vm5, %v8608_v48  ;;  %3604 = vmatpush.msk.msrb.mxu1 %vm8996_vm15, %v8608_v48  ;;  %vm9006_vm5 = vcmp.eq.s32.totalorder %v8929_v7, %v8980_v1  ;;  %vm9007_vm15 = vcmp.eq.s32.totalorder %v8931_v3, %v8980_v1 }
 0x9eb   :  { %3589 = vmatpush.msk.msrb.mxu0 %vm8997_vm11, %v8608_v48  ;;  %3605 = vmatpush.msk.msrb.mxu1 %vm8998_vm6, %v8608_v48  ;;  %vm9008_vm11 = vcmp.eq.s32.totalorder %v8933_v23, %v8980_v1  ;;  %vm9009_vm6 = vcmp.eq.s32.totalorder %v8935_v6, %v8980_v1 }
 0x9ed   :  { %3590 = vmatpush.msk.msrb.mxu0 %vm8999_vm13, %v8608_v48  ;;  %3606 = vmatpush.msk.msrb.mxu1 %vm9000_vm7, %v8608_v48  ;;  %vm9010_vm13 = vcmp.eq.s32.totalorder %v8937_v15, %v8980_v1  ;;  %vm9011_vm7 = vcmp.eq.s32.totalorder %v8939_v11, %v8980_v1 }
 0x9ef   :  { %3591 = vmatpush.msk.msrb.mxu0 %vm9001_vm4, %v8608_v48  ;;  %3607 = vmatpush.msk.msrb.mxu1 %vm9002_vm2, %v8608_v48  ;;  %vm9012_vm4 = vcmp.eq.s32.totalorder %v8941_v42, %v8980_v1  ;;  %vm9014_vm2 = vcmp.eq.s32.totalorder %v8706_v55, %v9013_v29 }
 0x9f1   :  { %3592 = vmatpush.msk.msrb.mxu0 %vm9003_vm9, %v8608_v48  ;;  %3608 = vmatpush.msk.msrb.mxu1 %vm9004_vm10, %v8608_v48  ;;  %vm9015_vm9 = vcmp.eq.s32.totalorder %v8707_v0, %v9013_v29 }
 0x9f3   :  { %3593 = vmatpush.msk.msrb.mxu0 %vm9005_vm8, %v8608_v48  ;;  %3609 = vmatpush.msk.msrb.mxu1 %vm9006_vm5, %v8608_v48  ;;  %vm9019_vm5 = vcmp.eq.s32.totalorder %v8708_v53, %v9013_v29 }
 0x9f5   :  { %3594 = vmatpush.msk.msrb.mxu0 %vm9007_vm15, %v8608_v48  ;;  %3610 = vmatpush.msk.msrb.mxu1 %vm9008_vm11, %v8608_v48  ;;  %vm9020_vm15 = vcmp.eq.s32.totalorder %v8709_v20, %v9013_v29 }
 0x9f7   :  { %3595 = vmatpush.msk.msrb.mxu0 %vm9009_vm6, %v8608_v48  ;;  %3611 = vmatpush.msk.msrb.mxu1 %vm9010_vm13, %v8608_v48  ;;  %vm9023_vm13 = vcmp.eq.s32.totalorder %v8710_v16, %v9013_v29 }
 0x9f9   :  { %3596 = vmatpush.msk.msrb.mxu0 %vm9011_vm7, %v8608_v48  ;;  %3612 = vmatpush.msk.msrb.mxu1 %vm9012_vm4, %v8608_v48  ;;  %vm9024_vm7 = vcmp.eq.s32.totalorder %v8711_v51, %v9013_v29 }
 0xa37   :  { %v2545_v31 = vpop.f32.mrf.mxu0  ;;  %v2565_v38 = vpop.f32.mrf.mxu1 }
 0xa38   :  { %v2568_v17 = vmul.f32 %v2545_v31, %v7031_v62  ;;  %v2569_v49 = vmul.f32 %v2565_v38, %v7033_v40  ;;  %v9016_v62 = vld [vmem:[#allocation9_spill] sm:$0xff]  ;;  %v9079_v40 = vld [vmem:[#allocation10_spill] sm:$0xff] }
 0xa39   :  { %vm9017_vm10 = vcmp.eq.s32.totalorder %v8706_v55, %v9016_v62  ;;  %vm9018_vm8 = vcmp.eq.s32.totalorder %v8707_v0, %v9016_v62  ;;  %vm9021_vm11 = vcmp.eq.s32.totalorder %v8708_v53, %v9016_v62  ;;  %vm9022_vm6 = vcmp.eq.s32.totalorder %v8709_v20, %v9016_v62 }
 0xa3a   :  { %vm9025_vm4 = vcmp.eq.s32.totalorder %v8710_v16, %v9016_v62 }
 0xa3f   :  { %v2590_v44 = vpop.f32.mrf.mxu0  ;;  %v2610_v41 = vpop.f32.mrf.mxu1 }
 0xa40   :  { %v7449_v32 = vadd.f32 %v2590_v44, %v2568_v17  ;;  %v7451_v21 = vadd.f32 %v2610_v41, %v2569_v49 }
 0xa42   :  { %2631 = vmatmul.f32.vlgmr.msra.gmra.mxu0 %v7449_v32  ;;  %2651 = vmatmul.f32.vlgmr.msra.gmra.mxu1 %v7451_v21 }
 0xa43   :  { %2671 = vmatmul.f32.vlgmr.msra.gmra.mxu2 %v7449_v32  ;;  %2691 = vmatmul.f32.vlgmr.msra.gmra.mxu3 %v7451_v21 }
 0xa44   :  { %3645 = vmatpush.msk.msra.mxu0 %vm9014_vm2, %v8608_v48  ;;  %3661 = vmatpush.msk.msra.mxu1 %vm9015_vm9, %v8608_v48  ;;  %vm9026_vm2 = vcmp.eq.s32.totalorder %v8711_v51, %v9016_v62  ;;  %vm9027_vm9 = vcmp.eq.s32.totalorder %v8713_v12, %v9013_v29 }
 0xa45   :  { %3677 = vmatpush.msk.msra.mxu2 %vm9017_vm10, %v8608_v48  ;;  %3693 = vmatpush.msk.msra.mxu3 %vm9018_vm8, %v8608_v48  ;;  %vm9028_vm10 = vcmp.eq.s32.totalorder %v8714_v61, %v9013_v29  ;;  %vm9029_vm8 = vcmp.eq.s32.totalorder %v8713_v12, %v9016_v62 }
 0xa46   :  { %3646 = vmatpush.msk.msra.mxu0 %vm9019_vm5, %v8608_v48  ;;  %3662 = vmatpush.msk.msra.mxu1 %vm9020_vm15, %v8608_v48  ;;  %vm9030_vm5 = vcmp.eq.s32.totalorder %v8714_v61, %v9016_v62  ;;  %vm9031_vm15 = vcmp.eq.s32.totalorder %v8715_v63, %v9013_v29 }
 0xa47   :  { %3678 = vmatpush.msk.msra.mxu2 %vm9021_vm11, %v8608_v48  ;;  %3694 = vmatpush.msk.msra.mxu3 %vm9022_vm6, %v8608_v48  ;;  %vm9032_vm11 = vcmp.eq.s32.totalorder %v8716_v58, %v9013_v29  ;;  %vm9033_vm6 = vcmp.eq.s32.totalorder %v8715_v63, %v9016_v62 }
 0xa48   :  { %3647 = vmatpush.msk.msra.mxu0 %vm9023_vm13, %v8608_v48  ;;  %3663 = vmatpush.msk.msra.mxu1 %vm9024_vm7, %v8608_v48  ;;  %vm9034_vm13 = vcmp.eq.s32.totalorder %v8716_v58, %v9016_v62  ;;  %vm9035_vm7 = vcmp.eq.s32.totalorder %v8717_v57, %v9013_v29 }
 0xa49   :  { %3679 = vmatpush.msk.msra.mxu2 %vm9025_vm4, %v8608_v48  ;;  %3695 = vmatpush.msk.msra.mxu3 %vm9026_vm2, %v8608_v48  ;;  %vm9036_vm4 = vcmp.eq.s32.totalorder %v8718_v50, %v9013_v29  ;;  %vm9037_vm2 = vcmp.eq.s32.totalorder %v8717_v57, %v9016_v62 }
 0xa4a   :  { %3648 = vmatpush.msk.msra.mxu0 %vm9027_vm9, %v8608_v48  ;;  %3664 = vmatpush.msk.msra.mxu1 %vm9028_vm10, %v8608_v48  ;;  %vm9038_vm9 = vcmp.eq.s32.totalorder %v8718_v50, %v9016_v62  ;;  %vm9039_vm10 = vcmp.eq.s32.totalorder %v8719_v9, %v9013_v29 }
 0xa4b   :  { %3680 = vmatpush.msk.msra.mxu2 %vm9029_vm8, %v8608_v48  ;;  %3696 = vmatpush.msk.msra.mxu3 %vm9030_vm5, %v8608_v48  ;;  %vm9040_vm8 = vcmp.eq.s32.totalorder %v8720_v52, %v9013_v29  ;;  %vm9041_vm5 = vcmp.eq.s32.totalorder %v8719_v9, %v9016_v62 }
 0xa4c   :  { %2712 = vmatmul.f32.vlgmr.msrb.gmra.mxu0 %v7449_v32  ;;  %2732 = vmatmul.f32.vlgmr.msrb.gmra.mxu1 %v7451_v21 }
 0xa4d   :  { %2753 = vmatmul.f32.vlgmr.msrb.gmra.mxu2 %v7449_v32  ;;  %2773 = vmatmul.f32.vlgmr.msrb.gmra.mxu3 %v7451_v21 }
 0xa4e   :  { %3649 = vmatpush.msk.msra.mxu0 %vm9031_vm15, %v8608_v48  ;;  %3665 = vmatpush.msk.msra.mxu1 %vm9032_vm11, %v8608_v48  ;;  %vm9042_vm15 = vcmp.eq.s32.totalorder %v8720_v52, %v9016_v62  ;;  %vm9043_vm11 = vcmp.eq.s32.totalorder %v8721_v39, %v9013_v29 }
 0xa4f   :  { %3681 = vmatpush.msk.msra.mxu2 %vm9033_vm6, %v8608_v48  ;;  %3697 = vmatpush.msk.msra.mxu3 %vm9034_vm13, %v8608_v48  ;;  %vm9044_vm6 = vcmp.eq.s32.totalorder %v8722_v47, %v9013_v29  ;;  %vm9045_vm13 = vcmp.eq.s32.totalorder %v8721_v39, %v9016_v62 }
 0xa50   :  { %3650 = vmatpush.msk.msra.mxu0 %vm9035_vm7, %v8608_v48  ;;  %3666 = vmatpush.msk.msra.mxu1 %vm9036_vm4, %v8608_v48  ;;  %vm9046_vm7 = vcmp.eq.s32.totalorder %v8722_v47, %v9016_v62  ;;  %vm9047_vm4 = vcmp.eq.s32.totalorder %v8723_v60, %v9013_v29 }
 0xa51   :  { %3682 = vmatpush.msk.msra.mxu2 %vm9037_vm2, %v8608_v48  ;;  %3698 = vmatpush.msk.msra.mxu3 %vm9038_vm9, %v8608_v48  ;;  %vm9048_vm2 = vcmp.eq.s32.totalorder %v8724_v26, %v9013_v29  ;;  %vm9049_vm9 = vcmp.eq.s32.totalorder %v8723_v60, %v9016_v62 }
 0xa52   :  { %3651 = vmatpush.msk.msra.mxu0 %vm9039_vm10, %v8608_v48  ;;  %3667 = vmatpush.msk.msra.mxu1 %vm9040_vm8, %v8608_v48  ;;  %vm9050_vm10 = vcmp.eq.s32.totalorder %v8724_v26, %v9016_v62  ;;  %vm9051_vm8 = vcmp.eq.s32.totalorder %v8727_v43, %v9013_v29 }
 0xa53   :  { %3683 = vmatpush.msk.msra.mxu2 %vm9041_vm5, %v8608_v48  ;;  %3699 = vmatpush.msk.msra.mxu3 %vm9042_vm15, %v8608_v48  ;;  %vm9052_vm5 = vcmp.eq.s32.totalorder %v8728_v46, %v9013_v29  ;;  %vm9053_vm15 = vcmp.eq.s32.totalorder %v8727_v43, %v9016_v62 }
 0xa54   :  { %3652 = vmatpush.msk.msra.mxu0 %vm9043_vm11, %v8608_v48  ;;  %3668 = vmatpush.msk.msra.mxu1 %vm9044_vm6, %v8608_v48  ;;  %vm9054_vm11 = vcmp.eq.s32.totalorder %v8728_v46, %v9016_v62  ;;  %vm9055_vm6 = vcmp.eq.s32.totalorder %v8919_v22, %v9013_v29 }
 0xa55   :  { %3684 = vmatpush.msk.msra.mxu2 %vm9045_vm13, %v8608_v48  ;;  %3700 = vmatpush.msk.msra.mxu3 %vm9046_vm7, %v8608_v48  ;;  %vm9056_vm13 = vcmp.eq.s32.totalorder %v8921_v24, %v9013_v29  ;;  %vm9057_vm7 = vcmp.eq.s32.totalorder %v8919_v22, %v9016_v62 }
 0xa56   :  { %3653 = vmatpush.msk.msra.mxu0 %vm9047_vm4, %v8608_v48  ;;  %3669 = vmatpush.msk.msra.mxu1 %vm9048_vm2, %v8608_v48  ;;  %vm9058_vm4 = vcmp.eq.s32.totalorder %v8921_v24, %v9016_v62  ;;  %vm9059_vm2 = vcmp.eq.s32.totalorder %v8923_v27, %v9013_v29 }
 0xa57   :  { %3685 = vmatpush.msk.msra.mxu2 %vm9049_vm9, %v8608_v48  ;;  %3701 = vmatpush.msk.msra.mxu3 %vm9050_vm10, %v8608_v48  ;;  %vm9060_vm9 = vcmp.eq.s32.totalorder %v8925_v56, %v9013_v29  ;;  %vm9061_vm10 = vcmp.eq.s32.totalorder %v8923_v27, %v9016_v62 }
 0xa58   :  { %3654 = vmatpush.msk.msra.mxu0 %vm9051_vm8, %v8608_v48  ;;  %3670 = vmatpush.msk.msra.mxu1 %vm9052_vm5, %v8608_v48  ;;  %vm9062_vm8 = vcmp.eq.s32.totalorder %v8925_v56, %v9016_v62  ;;  %vm9063_vm5 = vcmp.eq.s32.totalorder %v8927_v28, %v9013_v29 }
 0xa59   :  { %3686 = vmatpush.msk.msra.mxu2 %vm9053_vm15, %v8608_v48  ;;  %3702 = vmatpush.msk.msra.mxu3 %vm9054_vm11, %v8608_v48  ;;  %vm9064_vm15 = vcmp.eq.s32.totalorder %v8929_v7, %v9013_v29  ;;  %vm9065_vm11 = vcmp.eq.s32.totalorder %v8927_v28, %v9016_v62 }
 0xa5a   :  { %3655 = vmatpush.msk.msra.mxu0 %vm9055_vm6, %v8608_v48  ;;  %3671 = vmatpush.msk.msra.mxu1 %vm9056_vm13, %v8608_v48  ;;  %vm9066_vm6 = vcmp.eq.s32.totalorder %v8929_v7, %v9016_v62  ;;  %vm9067_vm13 = vcmp.eq.s32.totalorder %v8931_v3, %v9013_v29 }
 0xa5b   :  { %3687 = vmatpush.msk.msra.mxu2 %vm9057_vm7, %v8608_v48  ;;  %3703 = vmatpush.msk.msra.mxu3 %vm9058_vm4, %v8608_v48  ;;  %vm9068_vm7 = vcmp.eq.s32.totalorder %v8933_v23, %v9013_v29  ;;  %vm9069_vm4 = vcmp.eq.s32.totalorder %v8931_v3, %v9016_v62 }
 0xa5c   :  { %3656 = vmatpush.msk.msra.mxu0 %vm9059_vm2, %v8608_v48  ;;  %3672 = vmatpush.msk.msra.mxu1 %vm9060_vm9, %v8608_v48  ;;  %vm9070_vm2 = vcmp.eq.s32.totalorder %v8933_v23, %v9016_v62  ;;  %vm9071_vm9 = vcmp.eq.s32.totalorder %v8935_v6, %v9013_v29 }
 0xa5d   :  { %3688 = vmatpush.msk.msra.mxu2 %vm9061_vm10, %v8608_v48  ;;  %3704 = vmatpush.msk.msra.mxu3 %vm9062_vm8, %v8608_v48  ;;  %vm9072_vm10 = vcmp.eq.s32.totalorder %v8937_v15, %v9013_v29  ;;  %vm9073_vm8 = vcmp.eq.s32.totalorder %v8935_v6, %v9016_v62 }
 0xa5e   :  { %3657 = vmatpush.msk.msra.mxu0 %vm9063_vm5, %v8608_v48  ;;  %3673 = vmatpush.msk.msra.mxu1 %vm9064_vm15, %v8608_v48  ;;  %vm9074_vm5 = vcmp.eq.s32.totalorder %v8937_v15, %v9016_v62  ;;  %vm9075_vm15 = vcmp.eq.s32.totalorder %v8939_v11, %v9013_v29 }
 0xa5f   :  { %3689 = vmatpush.msk.msra.mxu2 %vm9065_vm11, %v8608_v48  ;;  %3705 = vmatpush.msk.msra.mxu3 %vm9066_vm6, %v8608_v48  ;;  %vm9076_vm11 = vcmp.eq.s32.totalorder %v8941_v42, %v9013_v29  ;;  %vm9077_vm6 = vcmp.eq.s32.totalorder %v8939_v11, %v9016_v62 }
 0xa60   :  { %3658 = vmatpush.msk.msra.mxu0 %vm9067_vm13, %v8608_v48  ;;  %3674 = vmatpush.msk.msra.mxu1 %vm9068_vm7, %v8608_v48  ;;  %vm9078_vm13 = vcmp.eq.s32.totalorder %v8941_v42, %v9016_v62  ;;  %vm9080_vm7 = vcmp.eq.s32.totalorder %v8706_v55, %v9079_v40 }
 0xa61   :  { %3690 = vmatpush.msk.msra.mxu2 %vm9069_vm4, %v8608_v48  ;;  %3706 = vmatpush.msk.msra.mxu3 %vm9070_vm2, %v8608_v48  ;;  %vm9081_vm4 = vcmp.eq.s32.totalorder %v8707_v0, %v9079_v40  ;;  %vm9083_vm2 = vcmp.eq.s32.totalorder %v8706_v55, %v9082_v34 }
 0xa62   :  { %3659 = vmatpush.msk.msra.mxu0 %vm9071_vm9, %v8608_v48  ;;  %3675 = vmatpush.msk.msra.mxu1 %vm9072_vm10, %v8608_v48  ;;  %vm9084_vm9 = vcmp.eq.s32.totalorder %v8707_v0, %v9082_v34  ;;  %vm9085_vm10 = vcmp.eq.s32.totalorder %v8708_v53, %v9079_v40 }
 0xa63   :  { %3691 = vmatpush.msk.msra.mxu2 %vm9073_vm8, %v8608_v48  ;;  %3707 = vmatpush.msk.msra.mxu3 %vm9074_vm5, %v8608_v48  ;;  %vm9086_vm8 = vcmp.eq.s32.totalorder %v8709_v20, %v9079_v40  ;;  %vm9087_vm5 = vcmp.eq.s32.totalorder %v8708_v53, %v9082_v34 }
 0xa64   :  { %3660 = vmatpush.msk.msra.mxu0 %vm9075_vm15, %v8608_v48  ;;  %3676 = vmatpush.msk.msra.mxu1 %vm9076_vm11, %v8608_v48  ;;  %vm9088_vm15 = vcmp.eq.s32.totalorder %v8709_v20, %v9082_v34  ;;  %vm9089_vm11 = vcmp.eq.s32.totalorder %v8710_v16, %v9079_v40 }
 0xa65   :  { %3692 = vmatpush.msk.msra.mxu2 %vm9077_vm6, %v8608_v48  ;;  %3708 = vmatpush.msk.msra.mxu3 %vm9078_vm13, %v8608_v48  ;;  %vm9090_vm6 = vcmp.eq.s32.totalorder %v8711_v51, %v9079_v40  ;;  %vm9091_vm13 = vcmp.eq.s32.totalorder %v8710_v16, %v9082_v34 }
 0xa66   :  { %2794 = vmatmul.f32.vlgmr.msra.gmra.mxu0 %v7449_v32  ;;  %2814 = vmatmul.f32.vlgmr.msra.gmra.mxu1 %v7451_v21 }
 0xa67   :  { %2835 = vmatmul.f32.vlgmr.msra.gmra.mxu2 %v7449_v32  ;;  %2855 = vmatmul.f32.vlgmr.msra.gmra.mxu3 %v7451_v21 }
 0xa68   :  { %3709 = vmatpush.msk.msrb.mxu0 %vm9080_vm7, %v8608_v48  ;;  %3725 = vmatpush.msk.msrb.mxu1 %vm9081_vm4, %v8608_v48  ;;  %vm9092_vm7 = vcmp.eq.s32.totalorder %v8711_v51, %v9082_v34  ;;  %vm9093_vm4 = vcmp.eq.s32.totalorder %v8713_v12, %v9079_v40 }
 0xa69   :  { %3741 = vmatpush.msk.msrb.mxu2 %vm9083_vm2, %v8608_v48  ;;  %3757 = vmatpush.msk.msrb.mxu3 %vm9084_vm9, %v8608_v48  ;;  %vm9094_vm2 = vcmp.eq.s32.totalorder %v8714_v61, %v9079_v40  ;;  %vm9095_vm9 = vcmp.eq.s32.totalorder %v8713_v12, %v9082_v34 }
 0xa6a   :  { %3710 = vmatpush.msk.msrb.mxu0 %vm9085_vm10, %v8608_v48  ;;  %3726 = vmatpush.msk.msrb.mxu1 %vm9086_vm8, %v8608_v48  ;;  %vm9096_vm10 = vcmp.eq.s32.totalorder %v8714_v61, %v9082_v34  ;;  %vm9097_vm8 = vcmp.eq.s32.totalorder %v8715_v63, %v9079_v40 }
 0xa6b   :  { %3742 = vmatpush.msk.msrb.mxu2 %vm9087_vm5, %v8608_v48  ;;  %3758 = vmatpush.msk.msrb.mxu3 %vm9088_vm15, %v8608_v48  ;;  %vm9098_vm5 = vcmp.eq.s32.totalorder %v8716_v58, %v9079_v40  ;;  %vm9099_vm15 = vcmp.eq.s32.totalorder %v8715_v63, %v9082_v34 }
 0xa6c   :  { %3711 = vmatpush.msk.msrb.mxu0 %vm9089_vm11, %v8608_v48  ;;  %3727 = vmatpush.msk.msrb.mxu1 %vm9090_vm6, %v8608_v48  ;;  %vm9100_vm11 = vcmp.eq.s32.totalorder %v8716_v58, %v9082_v34  ;;  %vm9101_vm6 = vcmp.eq.s32.totalorder %v8717_v57, %v9079_v40 }
 0xa6d   :  { %3743 = vmatpush.msk.msrb.mxu2 %vm9091_vm13, %v8608_v48  ;;  %3759 = vmatpush.msk.msrb.mxu3 %vm9092_vm7, %v8608_v48  ;;  %vm9102_vm13 = vcmp.eq.s32.totalorder %v8718_v50, %v9079_v40  ;;  %vm9103_vm7 = vcmp.eq.s32.totalorder %v8717_v57, %v9082_v34 }
 0xa6e   :  { %3712 = vmatpush.msk.msrb.mxu0 %vm9093_vm4, %v8608_v48  ;;  %3728 = vmatpush.msk.msrb.mxu1 %vm9094_vm2, %v8608_v48  ;;  %vm9104_vm4 = vcmp.eq.s32.totalorder %v8718_v50, %v9082_v34  ;;  %vm9105_vm2 = vcmp.eq.s32.totalorder %v8719_v9, %v9079_v40 }
 0xa6f   :  { %3744 = vmatpush.msk.msrb.mxu2 %vm9095_vm9, %v8608_v48  ;;  %3760 = vmatpush.msk.msrb.mxu3 %vm9096_vm10, %v8608_v48  ;;  %vm9106_vm9 = vcmp.eq.s32.totalorder %v8720_v52, %v9079_v40  ;;  %vm9107_vm10 = vcmp.eq.s32.totalorder %v8719_v9, %v9082_v34 }
 0xa70   :  { %3713 = vmatpush.msk.msrb.mxu0 %vm9097_vm8, %v8608_v48  ;;  %3729 = vmatpush.msk.msrb.mxu1 %vm9098_vm5, %v8608_v48  ;;  %vm9108_vm8 = vcmp.eq.s32.totalorder %v8720_v52, %v9082_v34  ;;  %vm9109_vm5 = vcmp.eq.s32.totalorder %v8721_v39, %v9079_v40 }
 0xa71   :  { %3745 = vmatpush.msk.msrb.mxu2 %vm9099_vm15, %v8608_v48  ;;  %3761 = vmatpush.msk.msrb.mxu3 %vm9100_vm11, %v8608_v48  ;;  %vm9110_vm15 = vcmp.eq.s32.totalorder %v8722_v47, %v9079_v40  ;;  %vm9111_vm11 = vcmp.eq.s32.totalorder %v8721_v39, %v9082_v34 }
 0xa72   :  { %3714 = vmatpush.msk.msrb.mxu0 %vm9101_vm6, %v8608_v48  ;;  %3730 = vmatpush.msk.msrb.mxu1 %vm9102_vm13, %v8608_v48  ;;  %vm9112_vm6 = vcmp.eq.s32.totalorder %v8722_v47, %v9082_v34  ;;  %vm9113_vm13 = vcmp.eq.s32.totalorder %v8723_v60, %v9079_v40 }
 0xa73   :  { %3746 = vmatpush.msk.msrb.mxu2 %vm9103_vm7, %v8608_v48  ;;  %3762 = vmatpush.msk.msrb.mxu3 %vm9104_vm4, %v8608_v48  ;;  %vm9114_vm7 = vcmp.eq.s32.totalorder %v8724_v26, %v9079_v40  ;;  %vm9115_vm4 = vcmp.eq.s32.totalorder %v8723_v60, %v9082_v34 }
 0xa74   :  { %3715 = vmatpush.msk.msrb.mxu0 %vm9105_vm2, %v8608_v48  ;;  %3731 = vmatpush.msk.msrb.mxu1 %vm9106_vm9, %v8608_v48  ;;  %vm9116_vm2 = vcmp.eq.s32.totalorder %v8724_v26, %v9082_v34  ;;  %vm9117_vm9 = vcmp.eq.s32.totalorder %v8727_v43, %v9079_v40 }
 0xa75   :  { %3747 = vmatpush.msk.msrb.mxu2 %vm9107_vm10, %v8608_v48  ;;  %3763 = vmatpush.msk.msrb.mxu3 %vm9108_vm8, %v8608_v48  ;;  %vm9118_vm10 = vcmp.eq.s32.totalorder %v8728_v46, %v9079_v40  ;;  %vm9119_vm8 = vcmp.eq.s32.totalorder %v8727_v43, %v9082_v34 }
 0xa76   :  { %3716 = vmatpush.msk.msrb.mxu0 %vm9109_vm5, %v8608_v48  ;;  %3732 = vmatpush.msk.msrb.mxu1 %vm9110_vm15, %v8608_v48  ;;  %vm9120_vm5 = vcmp.eq.s32.totalorder %v8728_v46, %v9082_v34  ;;  %vm9121_vm15 = vcmp.eq.s32.totalorder %v8919_v22, %v9079_v40 }
 0xa77   :  { %3748 = vmatpush.msk.msrb.mxu2 %vm9111_vm11, %v8608_v48  ;;  %3764 = vmatpush.msk.msrb.mxu3 %vm9112_vm6, %v8608_v48  ;;  %vm9122_vm11 = vcmp.eq.s32.totalorder %v8921_v24, %v9079_v40  ;;  %vm9123_vm6 = vcmp.eq.s32.totalorder %v8919_v22, %v9082_v34 }
 0xa78   :  { %3717 = vmatpush.msk.msrb.mxu0 %vm9113_vm13, %v8608_v48  ;;  %3733 = vmatpush.msk.msrb.mxu1 %vm9114_vm7, %v8608_v48  ;;  %vm9124_vm13 = vcmp.eq.s32.totalorder %v8921_v24, %v9082_v34  ;;  %vm9125_vm7 = vcmp.eq.s32.totalorder %v8923_v27, %v9079_v40 }
 0xa79   :  { %3749 = vmatpush.msk.msrb.mxu2 %vm9115_vm4, %v8608_v48  ;;  %3765 = vmatpush.msk.msrb.mxu3 %vm9116_vm2, %v8608_v48  ;;  %vm9126_vm4 = vcmp.eq.s32.totalorder %v8925_v56, %v9079_v40  ;;  %vm9127_vm2 = vcmp.eq.s32.totalorder %v8923_v27, %v9082_v34 }
 0xa7a   :  { %3718 = vmatpush.msk.msrb.mxu0 %vm9117_vm9, %v8608_v48  ;;  %3734 = vmatpush.msk.msrb.mxu1 %vm9118_vm10, %v8608_v48  ;;  %vm9128_vm9 = vcmp.eq.s32.totalorder %v8925_v56, %v9082_v34  ;;  %vm9129_vm10 = vcmp.eq.s32.totalorder %v8927_v28, %v9079_v40 }
 0xa7b   :  { %3750 = vmatpush.msk.msrb.mxu2 %vm9119_vm8, %v8608_v48  ;;  %3766 = vmatpush.msk.msrb.mxu3 %vm9120_vm5, %v8608_v48  ;;  %vm9130_vm8 = vcmp.eq.s32.totalorder %v8929_v7, %v9079_v40  ;;  %vm9131_vm5 = vcmp.eq.s32.totalorder %v8927_v28, %v9082_v34 }
 0xa7c   :  { %3719 = vmatpush.msk.msrb.mxu0 %vm9121_vm15, %v8608_v48  ;;  %3735 = vmatpush.msk.msrb.mxu1 %vm9122_vm11, %v8608_v48  ;;  %vm9132_vm15 = vcmp.eq.s32.totalorder %v8929_v7, %v9082_v34  ;;  %vm9133_vm11 = vcmp.eq.s32.totalorder %v8931_v3, %v9079_v40 }
 0xa7d   :  { %3751 = vmatpush.msk.msrb.mxu2 %vm9123_vm6, %v8608_v48  ;;  %3767 = vmatpush.msk.msrb.mxu3 %vm9124_vm13, %v8608_v48  ;;  %vm9134_vm6 = vcmp.eq.s32.totalorder %v8933_v23, %v9079_v40  ;;  %vm9135_vm13 = vcmp.eq.s32.totalorder %v8931_v3, %v9082_v34 }
 0xa7e   :  { %3720 = vmatpush.msk.msrb.mxu0 %vm9125_vm7, %v8608_v48  ;;  %3736 = vmatpush.msk.msrb.mxu1 %vm9126_vm4, %v8608_v48  ;;  %vm9136_vm7 = vcmp.eq.s32.totalorder %v8933_v23, %v9082_v34  ;;  %vm9137_vm4 = vcmp.eq.s32.totalorder %v8939_v11, %v9079_v40 }
 0xa7f   :  { %3752 = vmatpush.msk.msrb.mxu2 %vm9127_vm2, %v8608_v48  ;;  %3768 = vmatpush.msk.msrb.mxu3 %vm9128_vm9, %v8608_v48 }
 0xa80   :  { %3721 = vmatpush.msk.msrb.mxu0 %vm9129_vm10, %v8608_v48  ;;  %3737 = vmatpush.msk.msrb.mxu1 %vm9130_vm8, %v8608_v48 }
 0xa81   :  { %3753 = vmatpush.msk.msrb.mxu2 %vm9131_vm5, %v8608_v48  ;;  %3769 = vmatpush.msk.msrb.mxu3 %vm9132_vm15, %v8608_v48 }
 0xa82   :  { %3722 = vmatpush.msk.msrb.mxu0 %vm9133_vm11, %v8608_v48  ;;  %3738 = vmatpush.msk.msrb.mxu1 %vm9134_vm6, %v8608_v48 }
 0xa83   :  { %3754 = vmatpush.msk.msrb.mxu2 %vm9135_vm13, %v8608_v48  ;;  %3770 = vmatpush.msk.msrb.mxu3 %vm9136_vm7, %v8608_v48 }
 0xa84   :  { %3723 = vmatpush.msk.msrb.mxu0 %vm1895_vm12, %v8608_v48  ;;  %3739 = vmatpush.msk.msrb.mxu1 %vm1911_vm14, %v8608_v48  ;;  %vm9138_vm12 = vcmp.eq.s32.totalorder %v8941_v42, %v9079_v40  ;;  %vm9139_vm14 = vcmp.eq.s32.totalorder %v8939_v11, %v9082_v34 }
 0xa85   :  { %3755 = vmatpush.msk.msrb.mxu2 %vm2001_vm0, %v8608_v48  ;;  %3771 = vmatpush.msk.msrb.mxu3 %vm2017_vm3, %v8608_v48  ;;  %vm9140_vm0 = vcmp.eq.s32.totalorder %v8941_v42, %v9082_v34 }
 0xa86   :  { %3724 = vmatpush.msk.msrb.mxu0 %vm9137_vm4, %v8608_v48  ;;  %3740 = vmatpush.msk.msrb.mxu1 %vm9138_vm12, %v8608_v48 }
 0xa87   :  { %3756 = vmatpush.msk.msrb.mxu2 %vm9139_vm14, %v8608_v48  ;;  %3772 = vmatpush.msk.msrb.mxu3 %vm9140_vm0, %v8608_v48 }
 0xa88   :  { %2876 = vmatmul.f32.vlgmr.msrb.gmra.mxu0 %v7449_v32  ;;  %2896 = vmatmul.f32.vlgmr.msrb.gmra.mxu1 %v7451_v21 }
 0xa89   :  { %2917 = vmatmul.f32.vlgmr.msrb.gmra.mxu2 %v7449_v32  ;;  %2937 = vmatmul.f32.vlgmr.msrb.gmra.mxu3 %v7451_v21 }
 0xabf   :  { %v2632_v55 = vpop.f32.mrf.mxu0  ;;  %v2652_v0 = vpop.f32.mrf.mxu1 }
 0xac0   :  { %v2653_v48 = vadd.f32 %v2652_v0, %v2632_v55 }
 0xac6   :  { %v2672_v53 = vpop.f32.mrf.mxu2  ;;  %v2692_v20 = vpop.f32.mrf.mxu3 }
 0xac7   :  { %v2693_v63 = vadd.f32 %v2692_v20, %v2672_v53 }
 0xac9   :  { %v2713_v16 = vpop.f32.mrf.mxu0  ;;  %v2733_v51 = vpop.f32.mrf.mxu1  ;;  %v2695_v50 = vmax.f32 %v2653_v48, %v2693_v63 }
 0xaca   :  { %v2734_v9 = vadd.f32 %v2733_v51, %v2713_v16 }
 0xacc   :  { %v2736_v60 = vmax.f32 %v2695_v50, %v2734_v9 }
 0xad0   :  { %v2754_v12 = vpop.f32.mrf.mxu2  ;;  %v2774_v61 = vpop.f32.mrf.mxu3 }
 0xad1   :  { %v2775_v52 = vadd.f32 %v2774_v61, %v2754_v12 }
 0xad3   :  { %v2777_v22 = vmax.f32 %v2736_v60, %v2775_v52 }
 0xae3   :  { %v2795_v58 = vpop.f32.mrf.mxu0  ;;  %v2815_v57 = vpop.f32.mrf.mxu1 }
 0xae4   :  { %v2816_v26 = vadd.f32 %v2815_v57, %v2795_v58 }
 0xae6   :  { %v2818_v27 = vmax.f32 %v2777_v22, %v2816_v26 }
 0xaea   :  { %v2836_v39 = vpop.f32.mrf.mxu2  ;;  %v2856_v47 = vpop.f32.mrf.mxu3 }
 0xaeb   :  { %v2857_v24 = vadd.f32 %v2856_v47, %v2836_v39 }
 0xaed   :  { %v2859_v28 = vmax.f32 %v2818_v27, %v2857_v24 }
 0xb05   :  { %v2877_v43 = vpop.f32.mrf.mxu0  ;;  %v2897_v46 = vpop.f32.mrf.mxu1 }
 0xb06   :  { %v2898_v56 = vadd.f32 %v2897_v46, %v2877_v43 }
 0xb08   :  { %v2900_v23 = vmax.f32 %v2859_v28, %v2898_v56 }
 0xb0c   :  { %v2918_v7 = vpop.f32.mrf.mxu2  ;;  %v2938_v3 = vpop.f32.mrf.mxu3 }
 0xb0d   :  { %v2939_v6 = vadd.f32 %v2938_v3, %v2918_v7 }
 0xb0f   :  { %v2941_v15 = vmax.f32 %v2900_v23, %v2939_v6 }
 0xb11   :  { %2942 = vst.msk [vmem:[%s7993_s8] sm:$0xf] %vm2105_vm1, %v2941_v15 }

</bundles_post_ra>
